<compile_context>
chip_gen: v7x
topology: tpu7x:2x2x1
jax: 0.10.0
libtpu: 0.0.40
codegen_flags: <defaults>
</compile_context>

<pallas_src>
import jax
import jax.numpy as jnp
import numpy as np
from jax.experimental import pallas as pl
from jax.experimental.pallas import tpu as pltpu

# ---- static configuration (small, consistent with the module's forward) -----
B, L = 2, 64                       # batch, 1-D signal length
C, K, STRIDE, PAD = 16, 5, 2, 2    # Conv1d(1, C, kernel=5, stride=2, padding=2)
H = 32                             # GRU hidden size
LP = (L + 2 * PAD - K) // STRIDE + 1   # conv output length (= 32 here)
BP = 8                             # batch rows padded to one full sublane tile


def conv_gru_kernel(xw_ref, wf3_ref, bf3_ref, whh3_ref, bhn_ref, out_ref, gi_scr):
    """xw:  (LP*BP, K)  strided conv windows, row = t*BP + b (rows b>=B are zero).
       wf3: (K, 3H)     folded conv + input-projection weights, gates r|z|n.
       bf3: (1, 3H)     folded biases (bhh_r / bhh_z already absorbed).
       whh3:(H, 3H)     concatenated recurrent weights (= W_hh^T).
       bhn: (1, H)      recurrent bias of the n gate (must stay inside r*(...)).
       out: (B, H)      last hidden state.
       gi_scr: (LP*BP, 3H) VMEM scratch for the precomputed gate inputs."""
    # ---- Prologue: entire input path = ONE MXU matmul, lane-dense 96-wide store.
    gi_scr[...] = (jnp.dot(xw_ref[...], wf3_ref[...],
                           preferred_element_type=jnp.float32) + bf3_ref[...])

    whh3 = whh3_ref[...]                                    # (H, 3H), loop-invariant
    bhn_b = jnp.broadcast_to(bhn_ref[...], (BP, H))         # hoisted: one broadcast

    # ---- GRU recurrence, PyTorch gate order (r, z, n), fully unrolled ----------
    h = jnp.zeros((BP, H), jnp.float32)
    for t in range(LP):                  # LP static -> full unroll, static slices
        gi = gi_scr[t * BP:(t + 1) * BP, :]                 # (BP, 3H) aligned tile
        gh = jnp.dot(h, whh3, preferred_element_type=jnp.float32)   # single dot/step
        rz = jax.nn.sigmoid(gi[:, :2 * H] + gh[:, :2 * H])  # one EUP push for r|z
        r = rz[:, :H]
        z = rz[:, H:]
        n = jnp.tanh(gi[:, 2 * H:] + r * (gh[:, 2 * H:] + bhn_b))
        h = n + z * (h - n)              # == (1-z)*n + z*h, one op shorter chain
    out_ref[...] = h[:B, :]              # h[-1] of the GRU (real batch rows only)


def prepare_params(conv_w, conv_b, w_ih, w_hh, b_ih, b_hh):
    """Fold Conv1d into the GRU input projection; keep gates fused (r|z|n)."""
    hp = jax.lax.Precision.HIGHEST       # pin precision: fold is exact standalone
    cw = conv_w[:, 0, :]                                    # (C, K)
    wih_t = w_ih.T                                          # (C, 3H)
    wf3 = jnp.matmul(cw.T, wih_t, precision=hp)             # (K, 3H)
    b_fold = jnp.matmul(conv_b[None, :], wih_t, precision=hp)[0] + b_ih   # (3H,)
    # bhh_r / bhh_z are plain additive terms -> absorb into the input-side bias.
    bf3 = b_fold.at[:2 * H].add(b_hh[:2 * H]).reshape(1, 3 * H)
    return dict(
        wf3=wf3,
        bf3=bf3,
        whh3=w_hh.T,                                        # (H, 3H), gates r|z|n
        bhn=b_hh[2 * H:].reshape(1, H),
    )


@jax.jit
def pretrained_rnn_forward(x, params):
    """x: (B, L) float32  ->  (B, H) float32  (last GRU hidden state)."""
    xp = jnp.pad(x, ((0, 0), (PAD, PAD)))                   # (B, L + 2*PAD)
    # Strided conv windows: taps[j][b, t] = xp[b, STRIDE*t + j]
    taps = [jax.lax.slice(xp, (0, j), (B, j + STRIDE * (LP - 1) + 1), (1, STRIDE))
            for j in range(K)]                              # each (B, LP)
    xw = jnp.stack(taps, axis=-1).transpose(1, 0, 2)        # (LP, B, K)
    # Pad batch rows to BP=8 so each timestep owns a full, aligned sublane tile.
    xw = jnp.pad(xw, ((0, 0), (0, BP - B), (0, 0))).reshape(LP * BP, K)

    args = (xw, params["wf3"], params["bf3"], params["whh3"], params["bhn"])
    vspec = pl.BlockSpec(memory_space=pltpu.MemorySpace.VMEM)

    return pl.pallas_call(
        conv_gru_kernel,
        out_shape=jax.ShapeDtypeStruct((B, H), jnp.float32),
        in_specs=[vspec] * len(args),
        out_specs=vspec,
        scratch_shapes=[pltpu.VMEM((LP * BP, 3 * H), jnp.float32)],
    )(*args)


def reference_forward(x, conv_w, conv_b, w_ih, w_hh, b_ih, b_hh):
    """Pure-JAX reference matching PyTorch Conv1d + GRU semantics (unfused)."""
    xp = jnp.pad(x, ((0, 0), (PAD, PAD)))
    conv = []
    for t in range(LP):
        win = xp[:, STRIDE * t: STRIDE * t + K]             # (B, K)
        conv.append(win @ conv_w[:, 0, :].T + conv_b)       # (B, C)
    h = jnp.zeros((B, H), jnp.float32)
    for t in range(LP):
        gi = conv[t] @ w_ih.T + b_ih
        gh = h @ w_hh.T + b_hh
        r = jax.nn.sigmoid(gi[:, :H] + gh[:, :H])
        z = jax.nn.sigmoid(gi[:, H:2 * H] + gh[:, H:2 * H])
        n = jnp.tanh(gi[:, 2 * H:] + r * gh[:, 2 * H:])
        h = (1.0 - z) * n + z * h
    return h


if __name__ == "__main__":
    key = jax.random.PRNGKey(0)
    kx, k1, k2, k3, k4, k5, k6 = jax.random.split(key, 7)

    x = jax.random.normal(kx, (B, L), jnp.float32)

    # TODO(synk): the real module torch.load()s discriminator-6.state; no checkpoint
    # I/O here — deterministic synthetic "pretrained" weights (PyTorch-native shapes).
    conv_w = 0.1 * jax.random.normal(k1, (C, 1, K), jnp.float32)   # Conv1d.weight
    conv_b = 0.1 * jax.random.normal(k2, (C,), jnp.float32)        # Conv1d.bias
    w_ih = 0.1 * jax.random.normal(k3, (3 * H, C), jnp.float32)    # GRU.weight_ih_l0
    w_hh = 0.1 * jax.random.normal(k4, (3 * H, H), jnp.float32)    # GRU.weight_hh_l0
    b_ih = 0.1 * jax.random.normal(k5, (3 * H,), jnp.float32)      # GRU.bias_ih_l0
    b_hh = 0.1 * jax.random.normal(k6, (3 * H,), jnp.float32)      # GRU.bias_hh_l0

    params = prepare_params(conv_w, conv_b, w_ih, w_hh, b_ih, b_hh)
    with jax.default_matmul_precision("highest"):
        ref = reference_forward(x, conv_w, conv_b, w_ih, w_hh, b_ih, b_hh)

    out = jax.block_until_ready(pretrained_rnn_forward(x, params))

    assert out.shape == (B, H)
    np.testing.assert_allclose(np.asarray(out), np.asarray(ref),
                               rtol=5e-4, atol=5e-4)
    print("KERNEL_OK")
</pallas_src>

<mosaic_0001>
module attributes {stable_mosaic.version = 11 : i64} {
  func.func @conv_gru_kernel(%arg0: memref<256x5xf32, #tpu.memory_space<vmem>>, %arg1: memref<5x96xf32, #tpu.memory_space<vmem>>, %arg2: memref<1x96xf32, #tpu.memory_space<vmem>>, %arg3: memref<32x96xf32, #tpu.memory_space<vmem>>, %arg4: memref<1x32xf32, #tpu.memory_space<vmem>>, %arg5: memref<2x32xf32, #tpu.memory_space<vmem>>, %arg6: memref<256x96xf32, #tpu.memory_space<vmem>>) attributes {dimension_semantics = [], scalar_prefetch = 0 : i64, scratch_operands = 1 : i64, tpu.core_type = #tpu.core_type<tc>} {
    %c0 = arith.constant 0 : index
    %c0_0 = arith.constant 0 : index
    %0 = vector.load %arg0[%c0, %c0_0] : memref<256x5xf32, #tpu.memory_space<vmem>>, vector<256x5xf32>
    %c0_1 = arith.constant 0 : index
    %c0_2 = arith.constant 0 : index
    %1 = vector.load %arg1[%c0_1, %c0_2] : memref<5x96xf32, #tpu.memory_space<vmem>>, vector<5x96xf32>
    %cst = arith.constant dense<0.000000e+00> : vector<256x96xf32>
    %2 = tpu.matmul %0, %1, %cst {dimension_numbers = #tpu.dot_dimension_numbers<[1], [0], [0], [1], [0, 0, 1, 1], [], []>} : vector<256x5xf32>, vector<5x96xf32>, vector<256x96xf32> -> vector<256x96xf32>
    %c0_3 = arith.constant 0 : index
    %c0_4 = arith.constant 0 : index
    %3 = vector.load %arg2[%c0_3, %c0_4] : memref<1x96xf32, #tpu.memory_space<vmem>>, vector<1x96xf32>
    %4 = vector.broadcast %3 : vector<1x96xf32> to vector<256x96xf32>
    %5 = arith.addf %2, %4 : vector<256x96xf32>
    %c0_5 = arith.constant 0 : index
    %c0_6 = arith.constant 0 : index
    %6 = vector.load %arg6[%c0_5, %c0_6] : memref<256x96xf32, #tpu.memory_space<vmem>>, vector<256x96xf32>
    tpu.vector_store %arg6[%c0_5, %c0_6], %5 {strides = array<i32>} : memref<256x96xf32, #tpu.memory_space<vmem>>, vector<256x96xf32>,
    %c0_7 = arith.constant 0 : index
    %c0_8 = arith.constant 0 : index
    %7 = vector.load %arg3[%c0_7, %c0_8] : memref<32x96xf32, #tpu.memory_space<vmem>>, vector<32x96xf32>
    %c0_9 = arith.constant 0 : index
    %c0_10 = arith.constant 0 : index
    %8 = vector.load %arg4[%c0_9, %c0_10] : memref<1x32xf32, #tpu.memory_space<vmem>>, vector<1x32xf32>
    %9 = vector.shape_cast %8 : vector<1x32xf32> to vector<1x32xf32>
    %10 = vector.broadcast %9 : vector<1x32xf32> to vector<8x32xf32>
    %cst_11 = arith.constant 0.000000e+00 : f32
    %11 = vector.broadcast %cst_11 : f32 to vector<8x32xf32>
    %c0_12 = arith.constant 0 : index
    %c0_13 = arith.constant 0 : index
    %12 = vector.load %arg6[%c0_12, %c0_13] : memref<256x96xf32, #tpu.memory_space<vmem>>, vector<8x96xf32>
    %cst_14 = arith.constant dense<0.000000e+00> : vector<8x96xf32>
    %13 = tpu.matmul %11, %7, %cst_14 {dimension_numbers = #tpu.dot_dimension_numbers<[1], [0], [0], [1], [0, 0, 1, 1], [], []>} : vector<8x32xf32>, vector<32x96xf32>, vector<8x96xf32> -> vector<8x96xf32>
    %14 = vector.extract_strided_slice %12 {offsets = [0, 0], sizes = [8, 64], strides = [1, 1]} : vector<8x96xf32> to vector<8x64xf32>
    %15 = vector.extract_strided_slice %13 {offsets = [0, 0], sizes = [8, 64], strides = [1, 1]} : vector<8x96xf32> to vector<8x64xf32>
    %16 = arith.addf %14, %15 : vector<8x64xf32>
    %17 = arith.negf %16 : vector<8x64xf32>
    %18 = math.exp %17 : vector<8x64xf32>
    %cst_15 = arith.constant 1.000000e+00 : f32
    %19 = vector.broadcast %cst_15 : f32 to vector<8x64xf32>
    %20 = arith.addf %19, %18 : vector<8x64xf32>
    %21 = arith.divf %19, %20 : vector<8x64xf32>
    %22 = vector.extract_strided_slice %21 {offsets = [0, 0], sizes = [8, 32], strides = [1, 1]} : vector<8x64xf32> to vector<8x32xf32>
    %23 = vector.extract_strided_slice %21 {offsets = [0, 32], sizes = [8, 32], strides = [1, 1]} : vector<8x64xf32> to vector<8x32xf32>
    %24 = vector.extract_strided_slice %12 {offsets = [0, 64], sizes = [8, 32], strides = [1, 1]} : vector<8x96xf32> to vector<8x32xf32>
    %25 = vector.extract_strided_slice %13 {offsets = [0, 64], sizes = [8, 32], strides = [1, 1]} : vector<8x96xf32> to vector<8x32xf32>
    %26 = arith.addf %25, %10 : vector<8x32xf32>
    %27 = arith.mulf %22, %26 : vector<8x32xf32>
    %28 = arith.addf %24, %27 : vector<8x32xf32>
    %29 = math.tanh %28 : vector<8x32xf32>
    %30 = arith.subf %11, %29 : vector<8x32xf32>
    %31 = arith.mulf %23, %30 : vector<8x32xf32>
    %32 = arith.addf %29, %31 : vector<8x32xf32>
    %c8 = arith.constant 8 : index
    %c0_16 = arith.constant 0 : index
    %33 = vector.load %arg6[%c8, %c0_16] : memref<256x96xf32, #tpu.memory_space<vmem>>, vector<8x96xf32>
    %cst_17 = arith.constant dense<0.000000e+00> : vector<8x96xf32>
    %34 = tpu.matmul %32, %7, %cst_17 {dimension_numbers = #tpu.dot_dimension_numbers<[1], [0], [0], [1], [0, 0, 1, 1], [], []>} : vector<8x32xf32>, vector<32x96xf32>, vector<8x96xf32> -> vector<8x96xf32>
    %35 = vector.extract_strided_slice %33 {offsets = [0, 0], sizes = [8, 64], strides = [1, 1]} : vector<8x96xf32> to vector<8x64xf32>
    %36 = vector.extract_strided_slice %34 {offsets = [0, 0], sizes = [8, 64], strides = [1, 1]} : vector<8x96xf32> to vector<8x64xf32>
    %37 = arith.addf %35, %36 : vector<8x64xf32>
    %38 = arith.negf %37 : vector<8x64xf32>
    %39 = math.exp %38 : vector<8x64xf32>
    %cst_18 = arith.constant 1.000000e+00 : f32
    %40 = vector.broadcast %cst_18 : f32 to vector<8x64xf32>
    %41 = arith.addf %40, %39 : vector<8x64xf32>
    %42 = arith.divf %40, %41 : vector<8x64xf32>
    %43 = vector.extract_strided_slice %42 {offsets = [0, 0], sizes = [8, 32], strides = [1, 1]} : vector<8x64xf32> to vector<8x32xf32>
    %44 = vector.extract_strided_slice %42 {offsets = [0, 32], sizes = [8, 32], strides = [1, 1]} : vector<8x64xf32> to vector<8x32xf32>
    %45 = vector.extract_strided_slice %33 {offsets = [0, 64], sizes = [8, 32], strides = [1, 1]} : vector<8x96xf32> to vector<8x32xf32>
    %46 = vector.extract_strided_slice %34 {offsets = [0, 64], sizes = [8, 32], strides = [1, 1]} : vector<8x96xf32> to vector<8x32xf32>
    %47 = arith.addf %46, %10 : vector<8x32xf32>
    %48 = arith.mulf %43, %47 : vector<8x32xf32>
    %49 = arith.addf %45, %48 : vector<8x32xf32>
    %50 = math.tanh %49 : vector<8x32xf32>
    %51 = arith.subf %32, %50 : vector<8x32xf32>
    %52 = arith.mulf %44, %51 : vector<8x32xf32>
    %53 = arith.addf %50, %52 : vector<8x32xf32>
    %c16 = arith.constant 16 : index
    %c0_19 = arith.constant 0 : index
    %54 = vector.load %arg6[%c16, %c0_19] : memref<256x96xf32, #tpu.memory_space<vmem>>, vector<8x96xf32>
    %cst_20 = arith.constant dense<0.000000e+00> : vector<8x96xf32>
    %55 = tpu.matmul %53, %7, %cst_20 {dimension_numbers = #tpu.dot_dimension_numbers<[1], [0], [0], [1], [0, 0, 1, 1], [], []>} : vector<8x32xf32>, vector<32x96xf32>, vector<8x96xf32> -> vector<8x96xf32>
    %56 = vector.extract_strided_slice %54 {offsets = [0, 0], sizes = [8, 64], strides = [1, 1]} : vector<8x96xf32> to vector<8x64xf32>
    %57 = vector.extract_strided_slice %55 {offsets = [0, 0], sizes = [8, 64], strides = [1, 1]} : vector<8x96xf32> to vector<8x64xf32>
    %58 = arith.addf %56, %57 : vector<8x64xf32>
    %59 = arith.negf %58 : vector<8x64xf32>
    %60 = math.exp %59 : vector<8x64xf32>
    %cst_21 = arith.constant 1.000000e+00 : f32
    %61 = vector.broadcast %cst_21 : f32 to vector<8x64xf32>
    %62 = arith.addf %61, %60 : vector<8x64xf32>
    %63 = arith.divf %61, %62 : vector<8x64xf32>
    %64 = vector.extract_strided_slice %63 {offsets = [0, 0], sizes = [8, 32], strides = [1, 1]} : vector<8x64xf32> to vector<8x32xf32>
    %65 = vector.extract_strided_slice %63 {offsets = [0, 32], sizes = [8, 32], strides = [1, 1]} : vector<8x64xf32> to vector<8x32xf32>
    %66 = vector.extract_strided_slice %54 {offsets = [0, 64], sizes = [8, 32], strides = [1, 1]} : vector<8x96xf32> to vector<8x32xf32>
    %67 = vector.extract_strided_slice %55 {offsets = [0, 64], sizes = [8, 32], strides = [1, 1]} : vector<8x96xf32> to vector<8x32xf32>
    %68 = arith.addf %67, %10 : vector<8x32xf32>
    %69 = arith.mulf %64, %68 : vector<8x32xf32>
    %70 = arith.addf %66, %69 : vector<8x32xf32>
    %71 = math.tanh %70 : vector<8x32xf32>
    %72 = arith.subf %53, %71 : vector<8x32xf32>
    %73 = arith.mulf %65, %72 : vector<8x32xf32>
    %74 = arith.addf %71, %73 : vector<8x32xf32>
    %c24 = arith.constant 24 : index
    %c0_22 = arith.constant 0 : index
    %75 = vector.load %arg6[%c24, %c0_22] : memref<256x96xf32, #tpu.memory_space<vmem>>, vector<8x96xf32>
    %cst_23 = arith.constant dense<0.000000e+00> : vector<8x96xf32>
    %76 = tpu.matmul %74, %7, %cst_23 {dimension_numbers = #tpu.dot_dimension_numbers<[1], [0], [0], [1], [0, 0, 1, 1], [], []>} : vector<8x32xf32>, vector<32x96xf32>, vector<8x96xf32> -> vector<8x96xf32>
    %77 = vector.extract_strided_slice %75 {offsets = [0, 0], sizes = [8, 64], strides = [1, 1]} : vector<8x96xf32> to vector<8x64xf32>
    %78 = vector.extract_strided_slice %76 {offsets = [0, 0], sizes = [8, 64], strides = [1, 1]} : vector<8x96xf32> to vector<8x64xf32>
    %79 = arith.addf %77, %78 : vector<8x64xf32>
    %80 = arith.negf %79 : vector<8x64xf32>
    %81 = math.exp %80 : vector<8x64xf32>
    %cst_24 = arith.constant 1.000000e+00 : f32
    %82 = vector.broadcast %cst_24 : f32 to vector<8x64xf32>
    %83 = arith.addf %82, %81 : vector<8x64xf32>
    %84 = arith.divf %82, %83 : vector<8x64xf32>
    %85 = vector.extract_strided_slice %84 {offsets = [0, 0], sizes = [8, 32], strides = [1, 1]} : vector<8x64xf32> to vector<8x32xf32>
    %86 = vector.extract_strided_slice %84 {offsets = [0, 32], sizes = [8, 32], strides = [1, 1]} : vector<8x64xf32> to vector<8x32xf32>
    %87 = vector.extract_strided_slice %75 {offsets = [0, 64], sizes = [8, 32], strides = [1, 1]} : vector<8x96xf32> to vector<8x32xf32>
    %88 = vector.extract_strided_slice %76 {offsets = [0, 64], sizes = [8, 32], strides = [1, 1]} : vector<8x96xf32> to vector<8x32xf32>
    %89 = arith.addf %88, %10 : vector<8x32xf32>
    %90 = arith.mulf %85, %89 : vector<8x32xf32>
    %91 = arith.addf %87, %90 : vector<8x32xf32>
    %92 = math.tanh %91 : vector<8x32xf32>
    %93 = arith.subf %74, %92 : vector<8x32xf32>
    %94 = arith.mulf %86, %93 : vector<8x32xf32>
    %95 = arith.addf %92, %94 : vector<8x32xf32>
    %c32 = arith.constant 32 : index
    %c0_25 = arith.constant 0 : index
    %96 = vector.load %arg6[%c32, %c0_25] : memref<256x96xf32, #tpu.memory_space<vmem>>, vector<8x96xf32>
    %cst_26 = arith.constant dense<0.000000e+00> : vector<8x96xf32>
    %97 = tpu.matmul %95, %7, %cst_26 {dimension_numbers = #tpu.dot_dimension_numbers<[1], [0], [0], [1], [0, 0, 1, 1], [], []>} : vector<8x32xf32>, vector<32x96xf32>, vector<8x96xf32> -> vector<8x96xf32>
    %98 = vector.extract_strided_slice %96 {offsets = [0, 0], sizes = [8, 64], strides = [1, 1]} : vector<8x96xf32> to vector<8x64xf32>
    %99 = vector.extract_strided_slice %97 {offsets = [0, 0], sizes = [8, 64], strides = [1, 1]} : vector<8x96xf32> to vector<8x64xf32>
    %100 = arith.addf %98, %99 : vector<8x64xf32>
    %101 = arith.negf %100 : vector<8x64xf32>
    %102 = math.exp %101 : vector<8x64xf32>
    %cst_27 = arith.constant 1.000000e+00 : f32
    %103 = vector.broadcast %cst_27 : f32 to vector<8x64xf32>
    %104 = arith.addf %103, %102 : vector<8x64xf32>
    %105 = arith.divf %103, %104 : vector<8x64xf32>
    %106 = vector.extract_strided_slice %105 {offsets = [0, 0], sizes = [8, 32], strides = [1, 1]} : vector<8x64xf32> to vector<8x32xf32>
    %107 = vector.extract_strided_slice %105 {offsets = [0, 32], sizes = [8, 32], strides = [1, 1]} : vector<8x64xf32> to vector<8x32xf32>
    %108 = vector.extract_strided_slice %96 {offsets = [0, 64], sizes = [8, 32], strides = [1, 1]} : vector<8x96xf32> to vector<8x32xf32>
    %109 = vector.extract_strided_slice %97 {offsets = [0, 64], sizes = [8, 32], strides = [1, 1]} : vector<8x96xf32> to vector<8x32xf32>
    %110 = arith.addf %109, %10 : vector<8x32xf32>
    %111 = arith.mulf %106, %110 : vector<8x32xf32>
    %112 = arith.addf %108, %111 : vector<8x32xf32>
    %113 = math.tanh %112 : vector<8x32xf32>
    %114 = arith.subf %95, %113 : vector<8x32xf32>
    %115 = arith.mulf %107, %114 : vector<8x32xf32>
    %116 = arith.addf %113, %115 : vector<8x32xf32>
    %c40 = arith.constant 40 : index
    %c0_28 = arith.constant 0 : index
    %117 = vector.load %arg6[%c40, %c0_28] : memref<256x96xf32, #tpu.memory_space<vmem>>, vector<8x96xf32>
    %cst_29 = arith.constant dense<0.000000e+00> : vector<8x96xf32>
    %118 = tpu.matmul %116, %7, %cst_29 {dimension_numbers = #tpu.dot_dimension_numbers<[1], [0], [0], [1], [0, 0, 1, 1], [], []>} : vector<8x32xf32>, vector<32x96xf32>, vector<8x96xf32> -> vector<8x96xf32>
    %119 = vector.extract_strided_slice %117 {offsets = [0, 0], sizes = [8, 64], strides = [1, 1]} : vector<8x96xf32> to vector<8x64xf32>
    %120 = vector.extract_strided_slice %118 {offsets = [0, 0], sizes = [8, 64], strides = [1, 1]} : vector<8x96xf32> to vector<8x64xf32>
    %121 = arith.addf %119, %120 : vector<8x64xf32>
    %122 = arith.negf %121 : vector<8x64xf32>
    %123 = math.exp %122 : vector<8x64xf32>
    %cst_30 = arith.constant 1.000000e+00 : f32
    %124 = vector.broadcast %cst_30 : f32 to vector<8x64xf32>
    %125 = arith.addf %124, %123 : vector<8x64xf32>
    %126 = arith.divf %124, %125 : vector<8x64xf32>
    %127 = vector.extract_strided_slice %126 {offsets = [0, 0], sizes = [8, 32], strides = [1, 1]} : vector<8x64xf32> to vector<8x32xf32>
    %128 = vector.extract_strided_slice %126 {offsets = [0, 32], sizes = [8, 32], strides = [1, 1]} : vector<8x64xf32> to vector<8x32xf32>
    %129 = vector.extract_strided_slice %117 {offsets = [0, 64], sizes = [8, 32], strides = [1, 1]} : vector<8x96xf32> to vector<8x32xf32>
    %130 = vector.extract_strided_slice %118 {offsets = [0, 64], sizes = [8, 32], strides = [1, 1]} : vector<8x96xf32> to vector<8x32xf32>
    %131 = arith.addf %130, %10 : vector<8x32xf32>
    %132 = arith.mulf %127, %131 : vector<8x32xf32>
    %133 = arith.addf %129, %132 : vector<8x32xf32>
    %134 = math.tanh %133 : vector<8x32xf32>
    %135 = arith.subf %116, %134 : vector<8x32xf32>
    %136 = arith.mulf %128, %135 : vector<8x32xf32>
    %137 = arith.addf %134, %136 : vector<8x32xf32>
    %c48 = arith.constant 48 : index
    %c0_31 = arith.constant 0 : index
    %138 = vector.load %arg6[%c48, %c0_31] : memref<256x96xf32, #tpu.memory_space<vmem>>, vector<8x96xf32>
    %cst_32 = arith.constant dense<0.000000e+00> : vector<8x96xf32>
    %139 = tpu.matmul %137, %7, %cst_32 {dimension_numbers = #tpu.dot_dimension_numbers<[1], [0], [0], [1], [0, 0, 1, 1], [], []>} : vector<8x32xf32>, vector<32x96xf32>, vector<8x96xf32> -> vector<8x96xf32>
    %140 = vector.extract_strided_slice %138 {offsets = [0, 0], sizes = [8, 64], strides = [1, 1]} : vector<8x96xf32> to vector<8x64xf32>
    %141 = vector.extract_strided_slice %139 {offsets = [0, 0], sizes = [8, 64], strides = [1, 1]} : vector<8x96xf32> to vector<8x64xf32>
    %142 = arith.addf %140, %141 : vector<8x64xf32>
    %143 = arith.negf %142 : vector<8x64xf32>
    %144 = math.exp %143 : vector<8x64xf32>
    %cst_33 = arith.constant 1.000000e+00 : f32
    %145 = vector.broadcast %cst_33 : f32 to vector<8x64xf32>
    %146 = arith.addf %145, %144 : vector<8x64xf32>
    %147 = arith.divf %145, %146 : vector<8x64xf32>
    %148 = vector.extract_strided_slice %147 {offsets = [0, 0], sizes = [8, 32], strides = [1, 1]} : vector<8x64xf32> to vector<8x32xf32>
    %149 = vector.extract_strided_slice %147 {offsets = [0, 32], sizes = [8, 32], strides = [1, 1]} : vector<8x64xf32> to vector<8x32xf32>
    %150 = vector.extract_strided_slice %138 {offsets = [0, 64], sizes = [8, 32], strides = [1, 1]} : vector<8x96xf32> to vector<8x32xf32>
    %151 = vector.extract_strided_slice %139 {offsets = [0, 64], sizes = [8, 32], strides = [1, 1]} : vector<8x96xf32> to vector<8x32xf32>
    %152 = arith.addf %151, %10 : vector<8x32xf32>
    %153 = arith.mulf %148, %152 : vector<8x32xf32>
    %154 = arith.addf %150, %153 : vector<8x32xf32>
    %155 = math.tanh %154 : vector<8x32xf32>
    %156 = arith.subf %137, %155 : vector<8x32xf32>
    %157 = arith.mulf %149, %156 : vector<8x32xf32>
    %158 = arith.addf %155, %157 : vector<8x32xf32>
    %c56 = arith.constant 56 : index
    %c0_34 = arith.constant 0 : index
    %159 = vector.load %arg6[%c56, %c0_34] : memref<256x96xf32, #tpu.memory_space<vmem>>, vector<8x96xf32>
    %cst_35 = arith.constant dense<0.000000e+00> : vector<8x96xf32>
    %160 = tpu.matmul %158, %7, %cst_35 {dimension_numbers = #tpu.dot_dimension_numbers<[1], [0], [0], [1], [0, 0, 1, 1], [], []>} : vector<8x32xf32>, vector<32x96xf32>, vector<8x96xf32> -> vector<8x96xf32>
    %161 = vector.extract_strided_slice %159 {offsets = [0, 0], sizes = [8, 64], strides = [1, 1]} : vector<8x96xf32> to vector<8x64xf32>
    %162 = vector.extract_strided_slice %160 {offsets = [0, 0], sizes = [8, 64], strides = [1, 1]} : vector<8x96xf32> to vector<8x64xf32>
    %163 = arith.addf %161, %162 : vector<8x64xf32>
    %164 = arith.negf %163 : vector<8x64xf32>
    %165 = math.exp %164 : vector<8x64xf32>
    %cst_36 = arith.constant 1.000000e+00 : f32
    %166 = vector.broadcast %cst_36 : f32 to vector<8x64xf32>
    %167 = arith.addf %166, %165 : vector<8x64xf32>
    %168 = arith.divf %166, %167 : vector<8x64xf32>
    %169 = vector.extract_strided_slice %168 {offsets = [0, 0], sizes = [8, 32], strides = [1, 1]} : vector<8x64xf32> to vector<8x32xf32>
    %170 = vector.extract_strided_slice %168 {offsets = [0, 32], sizes = [8, 32], strides = [1, 1]} : vector<8x64xf32> to vector<8x32xf32>
    %171 = vector.extract_strided_slice %159 {offsets = [0, 64], sizes = [8, 32], strides = [1, 1]} : vector<8x96xf32> to vector<8x32xf32>
    %172 = vector.extract_strided_slice %160 {offsets = [0, 64], sizes = [8, 32], strides = [1, 1]} : vector<8x96xf32> to vector<8x32xf32>
    %173 = arith.addf %172, %10 : vector<8x32xf32>
    %174 = arith.mulf %169, %173 : vector<8x32xf32>
    %175 = arith.addf %171, %174 : vector<8x32xf32>
    %176 = math.tanh %175 : vector<8x32xf32>
    %177 = arith.subf %158, %176 : vector<8x32xf32>
    %178 = arith.mulf %170, %177 : vector<8x32xf32>
    %179 = arith.addf %176, %178 : vector<8x32xf32>
    %c64 = arith.constant 64 : index
    %c0_37 = arith.constant 0 : index
    %180 = vector.load %arg6[%c64, %c0_37] : memref<256x96xf32, #tpu.memory_space<vmem>>, vector<8x96xf32>
    %cst_38 = arith.constant dense<0.000000e+00> : vector<8x96xf32>
    %181 = tpu.matmul %179, %7, %cst_38 {dimension_numbers = #tpu.dot_dimension_numbers<[1], [0], [0], [1], [0, 0, 1, 1], [], []>} : vector<8x32xf32>, vector<32x96xf32>, vector<8x96xf32> -> vector<8x96xf32>
    %182 = vector.extract_strided_slice %180 {offsets = [0, 0], sizes = [8, 64], strides = [1, 1]} : vector<8x96xf32> to vector<8x64xf32>
    %183 = vector.extract_strided_slice %181 {offsets = [0, 0], sizes = [8, 64], strides = [1, 1]} : vector<8x96xf32> to vector<8x64xf32>
    %184 = arith.addf %182, %183 : vector<8x64xf32>
    %185 = arith.negf %184 : vector<8x64xf32>
    %186 = math.exp %185 : vector<8x64xf32>
    %cst_39 = arith.constant 1.000000e+00 : f32
    %187 = vector.broadcast %cst_39 : f32 to vector<8x64xf32>
    %188 = arith.addf %187, %186 : vector<8x64xf32>
    %189 = arith.divf %187, %188 : vector<8x64xf32>
    %190 = vector.extract_strided_slice %189 {offsets = [0, 0], sizes = [8, 32], strides = [1, 1]} : vector<8x64xf32> to vector<8x32xf32>
    %191 = vector.extract_strided_slice %189 {offsets = [0, 32], sizes = [8, 32], strides = [1, 1]} : vector<8x64xf32> to vector<8x32xf32>
    %192 = vector.extract_strided_slice %180 {offsets = [0, 64], sizes = [8, 32], strides = [1, 1]} : vector<8x96xf32> to vector<8x32xf32>
    %193 = vector.extract_strided_slice %181 {offsets = [0, 64], sizes = [8, 32], strides = [1, 1]} : vector<8x96xf32> to vector<8x32xf32>
    %194 = arith.addf %193, %10 : vector<8x32xf32>
    %195 = arith.mulf %190, %194 : vector<8x32xf32>
    %196 = arith.addf %192, %195 : vector<8x32xf32>
    %197 = math.tanh %196 : vector<8x32xf32>
    %198 = arith.subf %179, %197 : vector<8x32xf32>
    %199 = arith.mulf %191, %198 : vector<8x32xf32>
    %200 = arith.addf %197, %199 : vector<8x32xf32>
    %c72 = arith.constant 72 : index
    %c0_40 = arith.constant 0 : index
    %201 = vector.load %arg6[%c72, %c0_40] : memref<256x96xf32, #tpu.memory_space<vmem>>, vector<8x96xf32>
    %cst_41 = arith.constant dense<0.000000e+00> : vector<8x96xf32>
    %202 = tpu.matmul %200, %7, %cst_41 {dimension_numbers = #tpu.dot_dimension_numbers<[1], [0], [0], [1], [0, 0, 1, 1], [], []>} : vector<8x32xf32>, vector<32x96xf32>, vector<8x96xf32> -> vector<8x96xf32>
    %203 = vector.extract_strided_slice %201 {offsets = [0, 0], sizes = [8, 64], strides = [1, 1]} : vector<8x96xf32> to vector<8x64xf32>
    %204 = vector.extract_strided_slice %202 {offsets = [0, 0], sizes = [8, 64], strides = [1, 1]} : vector<8x96xf32> to vector<8x64xf32>
    %205 = arith.addf %203, %204 : vector<8x64xf32>
    %206 = arith.negf %205 : vector<8x64xf32>
    %207 = math.exp %206 : vector<8x64xf32>
    %cst_42 = arith.constant 1.000000e+00 : f32
    %208 = vector.broadcast %cst_42 : f32 to vector<8x64xf32>
    %209 = arith.addf %208, %207 : vector<8x64xf32>
    %210 = arith.divf %208, %209 : vector<8x64xf32>
    %211 = vector.extract_strided_slice %210 {offsets = [0, 0], sizes = [8, 32], strides = [1, 1]} : vector<8x64xf32> to vector<8x32xf32>
    %212 = vector.extract_strided_slice %210 {offsets = [0, 32], sizes = [8, 32], strides = [1, 1]} : vector<8x64xf32> to vector<8x32xf32>
    %213 = vector.extract_strided_slice %201 {offsets = [0, 64], sizes = [8, 32], strides = [1, 1]} : vector<8x96xf32> to vector<8x32xf32>
    %214 = vector.extract_strided_slice %202 {offsets = [0, 64], sizes = [8, 32], strides = [1, 1]} : vector<8x96xf32> to vector<8x32xf32>
    %215 = arith.addf %214, %10 : vector<8x32xf32>
    %216 = arith.mulf %211, %215 : vector<8x32xf32>
    %217 = arith.addf %213, %216 : vector<8x32xf32>
    %218 = math.tanh %217 : vector<8x32xf32>
    %219 = arith.subf %200, %218 : vector<8x32xf32>
    %220 = arith.mulf %212, %219 : vector<8x32xf32>
    %221 = arith.addf %218, %220 : vector<8x32xf32>
    %c80 = arith.constant 80 : index
    %c0_43 = arith.constant 0 : index
    %222 = vector.load %arg6[%c80, %c0_43] : memref<256x96xf32, #tpu.memory_space<vmem>>, vector<8x96xf32>
    %cst_44 = arith.constant dense<0.000000e+00> : vector<8x96xf32>
    %223 = tpu.matmul %221, %7, %cst_44 {dimension_numbers = #tpu.dot_dimension_numbers<[1], [0], [0], [1], [0, 0, 1, 1], [], []>} : vector<8x32xf32>, vector<32x96xf32>, vector<8x96xf32> -> vector<8x96xf32>
    %224 = vector.extract_strided_slice %222 {offsets = [0, 0], sizes = [8, 64], strides = [1, 1]} : vector<8x96xf32> to vector<8x64xf32>
    %225 = vector.extract_strided_slice %223 {offsets = [0, 0], sizes = [8, 64], strides = [1, 1]} : vector<8x96xf32> to vector<8x64xf32>
    %226 = arith.addf %224, %225 : vector<8x64xf32>
    %227 = arith.negf %226 : vector<8x64xf32>
    %228 = math.exp %227 : vector<8x64xf32>
    %cst_45 = arith.constant 1.000000e+00 : f32
    %229 = vector.broadcast %cst_45 : f32 to vector<8x64xf32>
    %230 = arith.addf %229, %228 : vector<8x64xf32>
    %231 = arith.divf %229, %230 : vector<8x64xf32>
    %232 = vector.extract_strided_slice %231 {offsets = [0, 0], sizes = [8, 32], strides = [1, 1]} : vector<8x64xf32> to vector<8x32xf32>
    %233 = vector.extract_strided_slice %231 {offsets = [0, 32], sizes = [8, 32], strides = [1, 1]} : vector<8x64xf32> to vector<8x32xf32>
    %234 = vector.extract_strided_slice %222 {offsets = [0, 64], sizes = [8, 32], strides = [1, 1]} : vector<8x96xf32> to vector<8x32xf32>
    %235 = vector.extract_strided_slice %223 {offsets = [0, 64], sizes = [8, 32], strides = [1, 1]} : vector<8x96xf32> to vector<8x32xf32>
    %236 = arith.addf %235, %10 : vector<8x32xf32>
    %237 = arith.mulf %232, %236 : vector<8x32xf32>
    %238 = arith.addf %234, %237 : vector<8x32xf32>
    %239 = math.tanh %238 : vector<8x32xf32>
    %240 = arith.subf %221, %239 : vector<8x32xf32>
    %241 = arith.mulf %233, %240 : vector<8x32xf32>
    %242 = arith.addf %239, %241 : vector<8x32xf32>
    %c88 = arith.constant 88 : index
    %c0_46 = arith.constant 0 : index
    %243 = vector.load %arg6[%c88, %c0_46] : memref<256x96xf32, #tpu.memory_space<vmem>>, vector<8x96xf32>
    %cst_47 = arith.constant dense<0.000000e+00> : vector<8x96xf32>
    %244 = tpu.matmul %242, %7, %cst_47 {dimension_numbers = #tpu.dot_dimension_numbers<[1], [0], [0], [1], [0, 0, 1, 1], [], []>} : vector<8x32xf32>, vector<32x96xf32>, vector<8x96xf32> -> vector<8x96xf32>
    %245 = vector.extract_strided_slice %243 {offsets = [0, 0], sizes = [8, 64], strides = [1, 1]} : vector<8x96xf32> to vector<8x64xf32>
    %246 = vector.extract_strided_slice %244 {offsets = [0, 0], sizes = [8, 64], strides = [1, 1]} : vector<8x96xf32> to vector<8x64xf32>
    %247 = arith.addf %245, %246 : vector<8x64xf32>
    %248 = arith.negf %247 : vector<8x64xf32>
    %249 = math.exp %248 : vector<8x64xf32>
    %cst_48 = arith.constant 1.000000e+00 : f32
    %250 = vector.broadcast %cst_48 : f32 to vector<8x64xf32>
    %251 = arith.addf %250, %249 : vector<8x64xf32>
    %252 = arith.divf %250, %251 : vector<8x64xf32>
    %253 = vector.extract_strided_slice %252 {offsets = [0, 0], sizes = [8, 32], strides = [1, 1]} : vector<8x64xf32> to vector<8x32xf32>
    %254 = vector.extract_strided_slice %252 {offsets = [0, 32], sizes = [8, 32], strides = [1, 1]} : vector<8x64xf32> to vector<8x32xf32>
    %255 = vector.extract_strided_slice %243 {offsets = [0, 64], sizes = [8, 32], strides = [1, 1]} : vector<8x96xf32> to vector<8x32xf32>
    %256 = vector.extract_strided_slice %244 {offsets = [0, 64], sizes = [8, 32], strides = [1, 1]} : vector<8x96xf32> to vector<8x32xf32>
    %257 = arith.addf %256, %10 : vector<8x32xf32>
    %258 = arith.mulf %253, %257 : vector<8x32xf32>
    %259 = arith.addf %255, %258 : vector<8x32xf32>
    %260 = math.tanh %259 : vector<8x32xf32>
    %261 = arith.subf %242, %260 : vector<8x32xf32>
    %262 = arith.mulf %254, %261 : vector<8x32xf32>
    %263 = arith.addf %260, %262 : vector<8x32xf32>
    %c96 = arith.constant 96 : index
    %c0_49 = arith.constant 0 : index
    %264 = vector.load %arg6[%c96, %c0_49] : memref<256x96xf32, #tpu.memory_space<vmem>>, vector<8x96xf32>
    %cst_50 = arith.constant dense<0.000000e+00> : vector<8x96xf32>
    %265 = tpu.matmul %263, %7, %cst_50 {dimension_numbers = #tpu.dot_dimension_numbers<[1], [0], [0], [1], [0, 0, 1, 1], [], []>} : vector<8x32xf32>, vector<32x96xf32>, vector<8x96xf32> -> vector<8x96xf32>
    %266 = vector.extract_strided_slice %264 {offsets = [0, 0], sizes = [8, 64], strides = [1, 1]} : vector<8x96xf32> to vector<8x64xf32>
    %267 = vector.extract_strided_slice %265 {offsets = [0, 0], sizes = [8, 64], strides = [1, 1]} : vector<8x96xf32> to vector<8x64xf32>
    %268 = arith.addf %266, %267 : vector<8x64xf32>
    %269 = arith.negf %268 : vector<8x64xf32>
    %270 = math.exp %269 : vector<8x64xf32>
    %cst_51 = arith.constant 1.000000e+00 : f32
    %271 = vector.broadcast %cst_51 : f32 to vector<8x64xf32>
    %272 = arith.addf %271, %270 : vector<8x64xf32>
    %273 = arith.divf %271, %272 : vector<8x64xf32>
    %274 = vector.extract_strided_slice %273 {offsets = [0, 0], sizes = [8, 32], strides = [1, 1]} : vector<8x64xf32> to vector<8x32xf32>
    %275 = vector.extract_strided_slice %273 {offsets = [0, 32], sizes = [8, 32], strides = [1, 1]} : vector<8x64xf32> to vector<8x32xf32>
    %276 = vector.extract_strided_slice %264 {offsets = [0, 64], sizes = [8, 32], strides = [1, 1]} : vector<8x96xf32> to vector<8x32xf32>
    %277 = vector.extract_strided_slice %265 {offsets = [0, 64], sizes = [8, 32], strides = [1, 1]} : vector<8x96xf32> to vector<8x32xf32>
    %278 = arith.addf %277, %10 : vector<8x32xf32>
    %279 = arith.mulf %274, %278 : vector<8x32xf32>
    %280 = arith.addf %276, %279 : vector<8x32xf32>
    %281 = math.tanh %280 : vector<8x32xf32>
    %282 = arith.subf %263, %281 : vector<8x32xf32>
    %283 = arith.mulf %275, %282 : vector<8x32xf32>
    %284 = arith.addf %281, %283 : vector<8x32xf32>
    %c104 = arith.constant 104 : index
    %c0_52 = arith.constant 0 : index
    %285 = vector.load %arg6[%c104, %c0_52] : memref<256x96xf32, #tpu.memory_space<vmem>>, vector<8x96xf32>
    %cst_53 = arith.constant dense<0.000000e+00> : vector<8x96xf32>
    %286 = tpu.matmul %284, %7, %cst_53 {dimension_numbers = #tpu.dot_dimension_numbers<[1], [0], [0], [1], [0, 0, 1, 1], [], []>} : vector<8x32xf32>, vector<32x96xf32>, vector<8x96xf32> -> vector<8x96xf32>
    %287 = vector.extract_strided_slice %285 {offsets = [0, 0], sizes = [8, 64], strides = [1, 1]} : vector<8x96xf32> to vector<8x64xf32>
    %288 = vector.extract_strided_slice %286 {offsets = [0, 0], sizes = [8, 64], strides = [1, 1]} : vector<8x96xf32> to vector<8x64xf32>
    %289 = arith.addf %287, %288 : vector<8x64xf32>
    %290 = arith.negf %289 : vector<8x64xf32>
    %291 = math.exp %290 : vector<8x64xf32>
    %cst_54 = arith.constant 1.000000e+00 : f32
    %292 = vector.broadcast %cst_54 : f32 to vector<8x64xf32>
    %293 = arith.addf %292, %291 : vector<8x64xf32>
    %294 = arith.divf %292, %293 : vector<8x64xf32>
    %295 = vector.extract_strided_slice %294 {offsets = [0, 0], sizes = [8, 32], strides = [1, 1]} : vector<8x64xf32> to vector<8x32xf32>
    %296 = vector.extract_strided_slice %294 {offsets = [0, 32], sizes = [8, 32], strides = [1, 1]} : vector<8x64xf32> to vector<8x32xf32>
    %297 = vector.extract_strided_slice %285 {offsets = [0, 64], sizes = [8, 32], strides = [1, 1]} : vector<8x96xf32> to vector<8x32xf32>
    %298 = vector.extract_strided_slice %286 {offsets = [0, 64], sizes = [8, 32], strides = [1, 1]} : vector<8x96xf32> to vector<8x32xf32>
    %299 = arith.addf %298, %10 : vector<8x32xf32>
    %300 = arith.mulf %295, %299 : vector<8x32xf32>
    %301 = arith.addf %297, %300 : vector<8x32xf32>
    %302 = math.tanh %301 : vector<8x32xf32>
    %303 = arith.subf %284, %302 : vector<8x32xf32>
    %304 = arith.mulf %296, %303 : vector<8x32xf32>
    %305 = arith.addf %302, %304 : vector<8x32xf32>
    %c112 = arith.constant 112 : index
    %c0_55 = arith.constant 0 : index
    %306 = vector.load %arg6[%c112, %c0_55] : memref<256x96xf32, #tpu.memory_space<vmem>>, vector<8x96xf32>
    %cst_56 = arith.constant dense<0.000000e+00> : vector<8x96xf32>
    %307 = tpu.matmul %305, %7, %cst_56 {dimension_numbers = #tpu.dot_dimension_numbers<[1], [0], [0], [1], [0, 0, 1, 1], [], []>} : vector<8x32xf32>, vector<32x96xf32>, vector<8x96xf32> -> vector<8x96xf32>
    %308 = vector.extract_strided_slice %306 {offsets = [0, 0], sizes = [8, 64], strides = [1, 1]} : vector<8x96xf32> to vector<8x64xf32>
    %309 = vector.extract_strided_slice %307 {offsets = [0, 0], sizes = [8, 64], strides = [1, 1]} : vector<8x96xf32> to vector<8x64xf32>
    %310 = arith.addf %308, %309 : vector<8x64xf32>
    %311 = arith.negf %310 : vector<8x64xf32>
    %312 = math.exp %311 : vector<8x64xf32>
    %cst_57 = arith.constant 1.000000e+00 : f32
    %313 = vector.broadcast %cst_57 : f32 to vector<8x64xf32>
    %314 = arith.addf %313, %312 : vector<8x64xf32>
    %315 = arith.divf %313, %314 : vector<8x64xf32>
    %316 = vector.extract_strided_slice %315 {offsets = [0, 0], sizes = [8, 32], strides = [1, 1]} : vector<8x64xf32> to vector<8x32xf32>
    %317 = vector.extract_strided_slice %315 {offsets = [0, 32], sizes = [8, 32], strides = [1, 1]} : vector<8x64xf32> to vector<8x32xf32>
    %318 = vector.extract_strided_slice %306 {offsets = [0, 64], sizes = [8, 32], strides = [1, 1]} : vector<8x96xf32> to vector<8x32xf32>
    %319 = vector.extract_strided_slice %307 {offsets = [0, 64], sizes = [8, 32], strides = [1, 1]} : vector<8x96xf32> to vector<8x32xf32>
    %320 = arith.addf %319, %10 : vector<8x32xf32>
    %321 = arith.mulf %316, %320 : vector<8x32xf32>
    %322 = arith.addf %318, %321 : vector<8x32xf32>
    %323 = math.tanh %322 : vector<8x32xf32>
    %324 = arith.subf %305, %323 : vector<8x32xf32>
    %325 = arith.mulf %317, %324 : vector<8x32xf32>
    %326 = arith.addf %323, %325 : vector<8x32xf32>
    %c120 = arith.constant 120 : index
    %c0_58 = arith.constant 0 : index
    %327 = vector.load %arg6[%c120, %c0_58] : memref<256x96xf32, #tpu.memory_space<vmem>>, vector<8x96xf32>
    %cst_59 = arith.constant dense<0.000000e+00> : vector<8x96xf32>
    %328 = tpu.matmul %326, %7, %cst_59 {dimension_numbers = #tpu.dot_dimension_numbers<[1], [0], [0], [1], [0, 0, 1, 1], [], []>} : vector<8x32xf32>, vector<32x96xf32>, vector<8x96xf32> -> vector<8x96xf32>
    %329 = vector.extract_strided_slice %327 {offsets = [0, 0], sizes = [8, 64], strides = [1, 1]} : vector<8x96xf32> to vector<8x64xf32>
    %330 = vector.extract_strided_slice %328 {offsets = [0, 0], sizes = [8, 64], strides = [1, 1]} : vector<8x96xf32> to vector<8x64xf32>
    %331 = arith.addf %329, %330 : vector<8x64xf32>
    %332 = arith.negf %331 : vector<8x64xf32>
    %333 = math.exp %332 : vector<8x64xf32>
    %cst_60 = arith.constant 1.000000e+00 : f32
    %334 = vector.broadcast %cst_60 : f32 to vector<8x64xf32>
    %335 = arith.addf %334, %333 : vector<8x64xf32>
    %336 = arith.divf %334, %335 : vector<8x64xf32>
    %337 = vector.extract_strided_slice %336 {offsets = [0, 0], sizes = [8, 32], strides = [1, 1]} : vector<8x64xf32> to vector<8x32xf32>
    %338 = vector.extract_strided_slice %336 {offsets = [0, 32], sizes = [8, 32], strides = [1, 1]} : vector<8x64xf32> to vector<8x32xf32>
    %339 = vector.extract_strided_slice %327 {offsets = [0, 64], sizes = [8, 32], strides = [1, 1]} : vector<8x96xf32> to vector<8x32xf32>
    %340 = vector.extract_strided_slice %328 {offsets = [0, 64], sizes = [8, 32], strides = [1, 1]} : vector<8x96xf32> to vector<8x32xf32>
    %341 = arith.addf %340, %10 : vector<8x32xf32>
    %342 = arith.mulf %337, %341 : vector<8x32xf32>
    %343 = arith.addf %339, %342 : vector<8x32xf32>
    %344 = math.tanh %343 : vector<8x32xf32>
    %345 = arith.subf %326, %344 : vector<8x32xf32>
    %346 = arith.mulf %338, %345 : vector<8x32xf32>
    %347 = arith.addf %344, %346 : vector<8x32xf32>
    %c128 = arith.constant 128 : index
    %c0_61 = arith.constant 0 : index
    %348 = vector.load %arg6[%c128, %c0_61] : memref<256x96xf32, #tpu.memory_space<vmem>>, vector<8x96xf32>
    %cst_62 = arith.constant dense<0.000000e+00> : vector<8x96xf32>
    %349 = tpu.matmul %347, %7, %cst_62 {dimension_numbers = #tpu.dot_dimension_numbers<[1], [0], [0], [1], [0, 0, 1, 1], [], []>} : vector<8x32xf32>, vector<32x96xf32>, vector<8x96xf32> -> vector<8x96xf32>
    %350 = vector.extract_strided_slice %348 {offsets = [0, 0], sizes = [8, 64], strides = [1, 1]} : vector<8x96xf32> to vector<8x64xf32>
    %351 = vector.extract_strided_slice %349 {offsets = [0, 0], sizes = [8, 64], strides = [1, 1]} : vector<8x96xf32> to vector<8x64xf32>
    %352 = arith.addf %350, %351 : vector<8x64xf32>
    %353 = arith.negf %352 : vector<8x64xf32>
    %354 = math.exp %353 : vector<8x64xf32>
    %cst_63 = arith.constant 1.000000e+00 : f32
    %355 = vector.broadcast %cst_63 : f32 to vector<8x64xf32>
    %356 = arith.addf %355, %354 : vector<8x64xf32>
    %357 = arith.divf %355, %356 : vector<8x64xf32>
    %358 = vector.extract_strided_slice %357 {offsets = [0, 0], sizes = [8, 32], strides = [1, 1]} : vector<8x64xf32> to vector<8x32xf32>
    %359 = vector.extract_strided_slice %357 {offsets = [0, 32], sizes = [8, 32], strides = [1, 1]} : vector<8x64xf32> to vector<8x32xf32>
    %360 = vector.extract_strided_slice %348 {offsets = [0, 64], sizes = [8, 32], strides = [1, 1]} : vector<8x96xf32> to vector<8x32xf32>
    %361 = vector.extract_strided_slice %349 {offsets = [0, 64], sizes = [8, 32], strides = [1, 1]} : vector<8x96xf32> to vector<8x32xf32>
    %362 = arith.addf %361, %10 : vector<8x32xf32>
    %363 = arith.mulf %358, %362 : vector<8x32xf32>
    %364 = arith.addf %360, %363 : vector<8x32xf32>
    %365 = math.tanh %364 : vector<8x32xf32>
    %366 = arith.subf %347, %365 : vector<8x32xf32>
    %367 = arith.mulf %359, %366 : vector<8x32xf32>
    %368 = arith.addf %365, %367 : vector<8x32xf32>
    %c136 = arith.constant 136 : index
    %c0_64 = arith.constant 0 : index
    %369 = vector.load %arg6[%c136, %c0_64] : memref<256x96xf32, #tpu.memory_space<vmem>>, vector<8x96xf32>
    %cst_65 = arith.constant dense<0.000000e+00> : vector<8x96xf32>
    %370 = tpu.matmul %368, %7, %cst_65 {dimension_numbers = #tpu.dot_dimension_numbers<[1], [0], [0], [1], [0, 0, 1, 1], [], []>} : vector<8x32xf32>, vector<32x96xf32>, vector<8x96xf32> -> vector<8x96xf32>
    %371 = vector.extract_strided_slice %369 {offsets = [0, 0], sizes = [8, 64], strides = [1, 1]} : vector<8x96xf32> to vector<8x64xf32>
    %372 = vector.extract_strided_slice %370 {offsets = [0, 0], sizes = [8, 64], strides = [1, 1]} : vector<8x96xf32> to vector<8x64xf32>
    %373 = arith.addf %371, %372 : vector<8x64xf32>
    %374 = arith.negf %373 : vector<8x64xf32>
    %375 = math.exp %374 : vector<8x64xf32>
    %cst_66 = arith.constant 1.000000e+00 : f32
    %376 = vector.broadcast %cst_66 : f32 to vector<8x64xf32>
    %377 = arith.addf %376, %375 : vector<8x64xf32>
    %378 = arith.divf %376, %377 : vector<8x64xf32>
    %379 = vector.extract_strided_slice %378 {offsets = [0, 0], sizes = [8, 32], strides = [1, 1]} : vector<8x64xf32> to vector<8x32xf32>
    %380 = vector.extract_strided_slice %378 {offsets = [0, 32], sizes = [8, 32], strides = [1, 1]} : vector<8x64xf32> to vector<8x32xf32>
    %381 = vector.extract_strided_slice %369 {offsets = [0, 64], sizes = [8, 32], strides = [1, 1]} : vector<8x96xf32> to vector<8x32xf32>
    %382 = vector.extract_strided_slice %370 {offsets = [0, 64], sizes = [8, 32], strides = [1, 1]} : vector<8x96xf32> to vector<8x32xf32>
    %383 = arith.addf %382, %10 : vector<8x32xf32>
    %384 = arith.mulf %379, %383 : vector<8x32xf32>
    %385 = arith.addf %381, %384 : vector<8x32xf32>
    %386 = math.tanh %385 : vector<8x32xf32>
    %387 = arith.subf %368, %386 : vector<8x32xf32>
    %388 = arith.mulf %380, %387 : vector<8x32xf32>
    %389 = arith.addf %386, %388 : vector<8x32xf32>
    %c144 = arith.constant 144 : index
    %c0_67 = arith.constant 0 : index
    %390 = vector.load %arg6[%c144, %c0_67] : memref<256x96xf32, #tpu.memory_space<vmem>>, vector<8x96xf32>
    %cst_68 = arith.constant dense<0.000000e+00> : vector<8x96xf32>
    %391 = tpu.matmul %389, %7, %cst_68 {dimension_numbers = #tpu.dot_dimension_numbers<[1], [0], [0], [1], [0, 0, 1, 1], [], []>} : vector<8x32xf32>, vector<32x96xf32>, vector<8x96xf32> -> vector<8x96xf32>
    %392 = vector.extract_strided_slice %390 {offsets = [0, 0], sizes = [8, 64], strides = [1, 1]} : vector<8x96xf32> to vector<8x64xf32>
    %393 = vector.extract_strided_slice %391 {offsets = [0, 0], sizes = [8, 64], strides = [1, 1]} : vector<8x96xf32> to vector<8x64xf32>
    %394 = arith.addf %392, %393 : vector<8x64xf32>
    %395 = arith.negf %394 : vector<8x64xf32>
    %396 = math.exp %395 : vector<8x64xf32>
    %cst_69 = arith.constant 1.000000e+00 : f32
    %397 = vector.broadcast %cst_69 : f32 to vector<8x64xf32>
    %398 = arith.addf %397, %396 : vector<8x64xf32>
    %399 = arith.divf %397, %398 : vector<8x64xf32>
    %400 = vector.extract_strided_slice %399 {offsets = [0, 0], sizes = [8, 32], strides = [1, 1]} : vector<8x64xf32> to vector<8x32xf32>
    %401 = vector.extract_strided_slice %399 {offsets = [0, 32], sizes = [8, 32], strides = [1, 1]} : vector<8x64xf32> to vector<8x32xf32>
    %402 = vector.extract_strided_slice %390 {offsets = [0, 64], sizes = [8, 32], strides = [1, 1]} : vector<8x96xf32> to vector<8x32xf32>
    %403 = vector.extract_strided_slice %391 {offsets = [0, 64], sizes = [8, 32], strides = [1, 1]} : vector<8x96xf32> to vector<8x32xf32>
    %404 = arith.addf %403, %10 : vector<8x32xf32>
    %405 = arith.mulf %400, %404 : vector<8x32xf32>
    %406 = arith.addf %402, %405 : vector<8x32xf32>
    %407 = math.tanh %406 : vector<8x32xf32>
    %408 = arith.subf %389, %407 : vector<8x32xf32>
    %409 = arith.mulf %401, %408 : vector<8x32xf32>
    %410 = arith.addf %407, %409 : vector<8x32xf32>
    %c152 = arith.constant 152 : index
    %c0_70 = arith.constant 0 : index
    %411 = vector.load %arg6[%c152, %c0_70] : memref<256x96xf32, #tpu.memory_space<vmem>>, vector<8x96xf32>
    %cst_71 = arith.constant dense<0.000000e+00> : vector<8x96xf32>
    %412 = tpu.matmul %410, %7, %cst_71 {dimension_numbers = #tpu.dot_dimension_numbers<[1], [0], [0], [1], [0, 0, 1, 1], [], []>} : vector<8x32xf32>, vector<32x96xf32>, vector<8x96xf32> -> vector<8x96xf32>
    %413 = vector.extract_strided_slice %411 {offsets = [0, 0], sizes = [8, 64], strides = [1, 1]} : vector<8x96xf32> to vector<8x64xf32>
    %414 = vector.extract_strided_slice %412 {offsets = [0, 0], sizes = [8, 64], strides = [1, 1]} : vector<8x96xf32> to vector<8x64xf32>
    %415 = arith.addf %413, %414 : vector<8x64xf32>
    %416 = arith.negf %415 : vector<8x64xf32>
    %417 = math.exp %416 : vector<8x64xf32>
    %cst_72 = arith.constant 1.000000e+00 : f32
    %418 = vector.broadcast %cst_72 : f32 to vector<8x64xf32>
    %419 = arith.addf %418, %417 : vector<8x64xf32>
    %420 = arith.divf %418, %419 : vector<8x64xf32>
    %421 = vector.extract_strided_slice %420 {offsets = [0, 0], sizes = [8, 32], strides = [1, 1]} : vector<8x64xf32> to vector<8x32xf32>
    %422 = vector.extract_strided_slice %420 {offsets = [0, 32], sizes = [8, 32], strides = [1, 1]} : vector<8x64xf32> to vector<8x32xf32>
    %423 = vector.extract_strided_slice %411 {offsets = [0, 64], sizes = [8, 32], strides = [1, 1]} : vector<8x96xf32> to vector<8x32xf32>
    %424 = vector.extract_strided_slice %412 {offsets = [0, 64], sizes = [8, 32], strides = [1, 1]} : vector<8x96xf32> to vector<8x32xf32>
    %425 = arith.addf %424, %10 : vector<8x32xf32>
    %426 = arith.mulf %421, %425 : vector<8x32xf32>
    %427 = arith.addf %423, %426 : vector<8x32xf32>
    %428 = math.tanh %427 : vector<8x32xf32>
    %429 = arith.subf %410, %428 : vector<8x32xf32>
    %430 = arith.mulf %422, %429 : vector<8x32xf32>
    %431 = arith.addf %428, %430 : vector<8x32xf32>
    %c160 = arith.constant 160 : index
    %c0_73 = arith.constant 0 : index
    %432 = vector.load %arg6[%c160, %c0_73] : memref<256x96xf32, #tpu.memory_space<vmem>>, vector<8x96xf32>
    %cst_74 = arith.constant dense<0.000000e+00> : vector<8x96xf32>
    %433 = tpu.matmul %431, %7, %cst_74 {dimension_numbers = #tpu.dot_dimension_numbers<[1], [0], [0], [1], [0, 0, 1, 1], [], []>} : vector<8x32xf32>, vector<32x96xf32>, vector<8x96xf32> -> vector<8x96xf32>
    %434 = vector.extract_strided_slice %432 {offsets = [0, 0], sizes = [8, 64], strides = [1, 1]} : vector<8x96xf32> to vector<8x64xf32>
    %435 = vector.extract_strided_slice %433 {offsets = [0, 0], sizes = [8, 64], strides = [1, 1]} : vector<8x96xf32> to vector<8x64xf32>
    %436 = arith.addf %434, %435 : vector<8x64xf32>
    %437 = arith.negf %436 : vector<8x64xf32>
    %438 = math.exp %437 : vector<8x64xf32>
    %cst_75 = arith.constant 1.000000e+00 : f32
    %439 = vector.broadcast %cst_75 : f32 to vector<8x64xf32>
    %440 = arith.addf %439, %438 : vector<8x64xf32>
    %441 = arith.divf %439, %440 : vector<8x64xf32>
    %442 = vector.extract_strided_slice %441 {offsets = [0, 0], sizes = [8, 32], strides = [1, 1]} : vector<8x64xf32> to vector<8x32xf32>
    %443 = vector.extract_strided_slice %441 {offsets = [0, 32], sizes = [8, 32], strides = [1, 1]} : vector<8x64xf32> to vector<8x32xf32>
    %444 = vector.extract_strided_slice %432 {offsets = [0, 64], sizes = [8, 32], strides = [1, 1]} : vector<8x96xf32> to vector<8x32xf32>
    %445 = vector.extract_strided_slice %433 {offsets = [0, 64], sizes = [8, 32], strides = [1, 1]} : vector<8x96xf32> to vector<8x32xf32>
    %446 = arith.addf %445, %10 : vector<8x32xf32>
    %447 = arith.mulf %442, %446 : vector<8x32xf32>
    %448 = arith.addf %444, %447 : vector<8x32xf32>
    %449 = math.tanh %448 : vector<8x32xf32>
    %450 = arith.subf %431, %449 : vector<8x32xf32>
    %451 = arith.mulf %443, %450 : vector<8x32xf32>
    %452 = arith.addf %449, %451 : vector<8x32xf32>
    %c168 = arith.constant 168 : index
    %c0_76 = arith.constant 0 : index
    %453 = vector.load %arg6[%c168, %c0_76] : memref<256x96xf32, #tpu.memory_space<vmem>>, vector<8x96xf32>
    %cst_77 = arith.constant dense<0.000000e+00> : vector<8x96xf32>
    %454 = tpu.matmul %452, %7, %cst_77 {dimension_numbers = #tpu.dot_dimension_numbers<[1], [0], [0], [1], [0, 0, 1, 1], [], []>} : vector<8x32xf32>, vector<32x96xf32>, vector<8x96xf32> -> vector<8x96xf32>
    %455 = vector.extract_strided_slice %453 {offsets = [0, 0], sizes = [8, 64], strides = [1, 1]} : vector<8x96xf32> to vector<8x64xf32>
    %456 = vector.extract_strided_slice %454 {offsets = [0, 0], sizes = [8, 64], strides = [1, 1]} : vector<8x96xf32> to vector<8x64xf32>
    %457 = arith.addf %455, %456 : vector<8x64xf32>
    %458 = arith.negf %457 : vector<8x64xf32>
    %459 = math.exp %458 : vector<8x64xf32>
    %cst_78 = arith.constant 1.000000e+00 : f32
    %460 = vector.broadcast %cst_78 : f32 to vector<8x64xf32>
    %461 = arith.addf %460, %459 : vector<8x64xf32>
    %462 = arith.divf %460, %461 : vector<8x64xf32>
    %463 = vector.extract_strided_slice %462 {offsets = [0, 0], sizes = [8, 32], strides = [1, 1]} : vector<8x64xf32> to vector<8x32xf32>
    %464 = vector.extract_strided_slice %462 {offsets = [0, 32], sizes = [8, 32], strides = [1, 1]} : vector<8x64xf32> to vector<8x32xf32>
    %465 = vector.extract_strided_slice %453 {offsets = [0, 64], sizes = [8, 32], strides = [1, 1]} : vector<8x96xf32> to vector<8x32xf32>
    %466 = vector.extract_strided_slice %454 {offsets = [0, 64], sizes = [8, 32], strides = [1, 1]} : vector<8x96xf32> to vector<8x32xf32>
    %467 = arith.addf %466, %10 : vector<8x32xf32>
    %468 = arith.mulf %463, %467 : vector<8x32xf32>
    %469 = arith.addf %465, %468 : vector<8x32xf32>
    %470 = math.tanh %469 : vector<8x32xf32>
    %471 = arith.subf %452, %470 : vector<8x32xf32>
    %472 = arith.mulf %464, %471 : vector<8x32xf32>
    %473 = arith.addf %470, %472 : vector<8x32xf32>
    %c176 = arith.constant 176 : index
    %c0_79 = arith.constant 0 : index
    %474 = vector.load %arg6[%c176, %c0_79] : memref<256x96xf32, #tpu.memory_space<vmem>>, vector<8x96xf32>
    %cst_80 = arith.constant dense<0.000000e+00> : vector<8x96xf32>
    %475 = tpu.matmul %473, %7, %cst_80 {dimension_numbers = #tpu.dot_dimension_numbers<[1], [0], [0], [1], [0, 0, 1, 1], [], []>} : vector<8x32xf32>, vector<32x96xf32>, vector<8x96xf32> -> vector<8x96xf32>
    %476 = vector.extract_strided_slice %474 {offsets = [0, 0], sizes = [8, 64], strides = [1, 1]} : vector<8x96xf32> to vector<8x64xf32>
    %477 = vector.extract_strided_slice %475 {offsets = [0, 0], sizes = [8, 64], strides = [1, 1]} : vector<8x96xf32> to vector<8x64xf32>
    %478 = arith.addf %476, %477 : vector<8x64xf32>
    %479 = arith.negf %478 : vector<8x64xf32>
    %480 = math.exp %479 : vector<8x64xf32>
    %cst_81 = arith.constant 1.000000e+00 : f32
    %481 = vector.broadcast %cst_81 : f32 to vector<8x64xf32>
    %482 = arith.addf %481, %480 : vector<8x64xf32>
    %483 = arith.divf %481, %482 : vector<8x64xf32>
    %484 = vector.extract_strided_slice %483 {offsets = [0, 0], sizes = [8, 32], strides = [1, 1]} : vector<8x64xf32> to vector<8x32xf32>
    %485 = vector.extract_strided_slice %483 {offsets = [0, 32], sizes = [8, 32], strides = [1, 1]} : vector<8x64xf32> to vector<8x32xf32>
    %486 = vector.extract_strided_slice %474 {offsets = [0, 64], sizes = [8, 32], strides = [1, 1]} : vector<8x96xf32> to vector<8x32xf32>
    %487 = vector.extract_strided_slice %475 {offsets = [0, 64], sizes = [8, 32], strides = [1, 1]} : vector<8x96xf32> to vector<8x32xf32>
    %488 = arith.addf %487, %10 : vector<8x32xf32>
    %489 = arith.mulf %484, %488 : vector<8x32xf32>
    %490 = arith.addf %486, %489 : vector<8x32xf32>
    %491 = math.tanh %490 : vector<8x32xf32>
    %492 = arith.subf %473, %491 : vector<8x32xf32>
    %493 = arith.mulf %485, %492 : vector<8x32xf32>
    %494 = arith.addf %491, %493 : vector<8x32xf32>
    %c184 = arith.constant 184 : index
    %c0_82 = arith.constant 0 : index
    %495 = vector.load %arg6[%c184, %c0_82] : memref<256x96xf32, #tpu.memory_space<vmem>>, vector<8x96xf32>
    %cst_83 = arith.constant dense<0.000000e+00> : vector<8x96xf32>
    %496 = tpu.matmul %494, %7, %cst_83 {dimension_numbers = #tpu.dot_dimension_numbers<[1], [0], [0], [1], [0, 0, 1, 1], [], []>} : vector<8x32xf32>, vector<32x96xf32>, vector<8x96xf32> -> vector<8x96xf32>
    %497 = vector.extract_strided_slice %495 {offsets = [0, 0], sizes = [8, 64], strides = [1, 1]} : vector<8x96xf32> to vector<8x64xf32>
    %498 = vector.extract_strided_slice %496 {offsets = [0, 0], sizes = [8, 64], strides = [1, 1]} : vector<8x96xf32> to vector<8x64xf32>
    %499 = arith.addf %497, %498 : vector<8x64xf32>
    %500 = arith.negf %499 : vector<8x64xf32>
    %501 = math.exp %500 : vector<8x64xf32>
    %cst_84 = arith.constant 1.000000e+00 : f32
    %502 = vector.broadcast %cst_84 : f32 to vector<8x64xf32>
    %503 = arith.addf %502, %501 : vector<8x64xf32>
    %504 = arith.divf %502, %503 : vector<8x64xf32>
    %505 = vector.extract_strided_slice %504 {offsets = [0, 0], sizes = [8, 32], strides = [1, 1]} : vector<8x64xf32> to vector<8x32xf32>
    %506 = vector.extract_strided_slice %504 {offsets = [0, 32], sizes = [8, 32], strides = [1, 1]} : vector<8x64xf32> to vector<8x32xf32>
    %507 = vector.extract_strided_slice %495 {offsets = [0, 64], sizes = [8, 32], strides = [1, 1]} : vector<8x96xf32> to vector<8x32xf32>
    %508 = vector.extract_strided_slice %496 {offsets = [0, 64], sizes = [8, 32], strides = [1, 1]} : vector<8x96xf32> to vector<8x32xf32>
    %509 = arith.addf %508, %10 : vector<8x32xf32>
    %510 = arith.mulf %505, %509 : vector<8x32xf32>
    %511 = arith.addf %507, %510 : vector<8x32xf32>
    %512 = math.tanh %511 : vector<8x32xf32>
    %513 = arith.subf %494, %512 : vector<8x32xf32>
    %514 = arith.mulf %506, %513 : vector<8x32xf32>
    %515 = arith.addf %512, %514 : vector<8x32xf32>
    %c192 = arith.constant 192 : index
    %c0_85 = arith.constant 0 : index
    %516 = vector.load %arg6[%c192, %c0_85] : memref<256x96xf32, #tpu.memory_space<vmem>>, vector<8x96xf32>
    %cst_86 = arith.constant dense<0.000000e+00> : vector<8x96xf32>
    %517 = tpu.matmul %515, %7, %cst_86 {dimension_numbers = #tpu.dot_dimension_numbers<[1], [0], [0], [1], [0, 0, 1, 1], [], []>} : vector<8x32xf32>, vector<32x96xf32>, vector<8x96xf32> -> vector<8x96xf32>
    %518 = vector.extract_strided_slice %516 {offsets = [0, 0], sizes = [8, 64], strides = [1, 1]} : vector<8x96xf32> to vector<8x64xf32>
    %519 = vector.extract_strided_slice %517 {offsets = [0, 0], sizes = [8, 64], strides = [1, 1]} : vector<8x96xf32> to vector<8x64xf32>
    %520 = arith.addf %518, %519 : vector<8x64xf32>
    %521 = arith.negf %520 : vector<8x64xf32>
    %522 = math.exp %521 : vector<8x64xf32>
    %cst_87 = arith.constant 1.000000e+00 : f32
    %523 = vector.broadcast %cst_87 : f32 to vector<8x64xf32>
    %524 = arith.addf %523, %522 : vector<8x64xf32>
    %525 = arith.divf %523, %524 : vector<8x64xf32>
    %526 = vector.extract_strided_slice %525 {offsets = [0, 0], sizes = [8, 32], strides = [1, 1]} : vector<8x64xf32> to vector<8x32xf32>
    %527 = vector.extract_strided_slice %525 {offsets = [0, 32], sizes = [8, 32], strides = [1, 1]} : vector<8x64xf32> to vector<8x32xf32>
    %528 = vector.extract_strided_slice %516 {offsets = [0, 64], sizes = [8, 32], strides = [1, 1]} : vector<8x96xf32> to vector<8x32xf32>
    %529 = vector.extract_strided_slice %517 {offsets = [0, 64], sizes = [8, 32], strides = [1, 1]} : vector<8x96xf32> to vector<8x32xf32>
    %530 = arith.addf %529, %10 : vector<8x32xf32>
    %531 = arith.mulf %526, %530 : vector<8x32xf32>
    %532 = arith.addf %528, %531 : vector<8x32xf32>
    %533 = math.tanh %532 : vector<8x32xf32>
    %534 = arith.subf %515, %533 : vector<8x32xf32>
    %535 = arith.mulf %527, %534 : vector<8x32xf32>
    %536 = arith.addf %533, %535 : vector<8x32xf32>
    %c200 = arith.constant 200 : index
    %c0_88 = arith.constant 0 : index
    %537 = vector.load %arg6[%c200, %c0_88] : memref<256x96xf32, #tpu.memory_space<vmem>>, vector<8x96xf32>
    %cst_89 = arith.constant dense<0.000000e+00> : vector<8x96xf32>
    %538 = tpu.matmul %536, %7, %cst_89 {dimension_numbers = #tpu.dot_dimension_numbers<[1], [0], [0], [1], [0, 0, 1, 1], [], []>} : vector<8x32xf32>, vector<32x96xf32>, vector<8x96xf32> -> vector<8x96xf32>
    %539 = vector.extract_strided_slice %537 {offsets = [0, 0], sizes = [8, 64], strides = [1, 1]} : vector<8x96xf32> to vector<8x64xf32>
    %540 = vector.extract_strided_slice %538 {offsets = [0, 0], sizes = [8, 64], strides = [1, 1]} : vector<8x96xf32> to vector<8x64xf32>
    %541 = arith.addf %539, %540 : vector<8x64xf32>
    %542 = arith.negf %541 : vector<8x64xf32>
    %543 = math.exp %542 : vector<8x64xf32>
    %cst_90 = arith.constant 1.000000e+00 : f32
    %544 = vector.broadcast %cst_90 : f32 to vector<8x64xf32>
    %545 = arith.addf %544, %543 : vector<8x64xf32>
    %546 = arith.divf %544, %545 : vector<8x64xf32>
    %547 = vector.extract_strided_slice %546 {offsets = [0, 0], sizes = [8, 32], strides = [1, 1]} : vector<8x64xf32> to vector<8x32xf32>
    %548 = vector.extract_strided_slice %546 {offsets = [0, 32], sizes = [8, 32], strides = [1, 1]} : vector<8x64xf32> to vector<8x32xf32>
    %549 = vector.extract_strided_slice %537 {offsets = [0, 64], sizes = [8, 32], strides = [1, 1]} : vector<8x96xf32> to vector<8x32xf32>
    %550 = vector.extract_strided_slice %538 {offsets = [0, 64], sizes = [8, 32], strides = [1, 1]} : vector<8x96xf32> to vector<8x32xf32>
    %551 = arith.addf %550, %10 : vector<8x32xf32>
    %552 = arith.mulf %547, %551 : vector<8x32xf32>
    %553 = arith.addf %549, %552 : vector<8x32xf32>
    %554 = math.tanh %553 : vector<8x32xf32>
    %555 = arith.subf %536, %554 : vector<8x32xf32>
    %556 = arith.mulf %548, %555 : vector<8x32xf32>
    %557 = arith.addf %554, %556 : vector<8x32xf32>
    %c208 = arith.constant 208 : index
    %c0_91 = arith.constant 0 : index
    %558 = vector.load %arg6[%c208, %c0_91] : memref<256x96xf32, #tpu.memory_space<vmem>>, vector<8x96xf32>
    %cst_92 = arith.constant dense<0.000000e+00> : vector<8x96xf32>
    %559 = tpu.matmul %557, %7, %cst_92 {dimension_numbers = #tpu.dot_dimension_numbers<[1], [0], [0], [1], [0, 0, 1, 1], [], []>} : vector<8x32xf32>, vector<32x96xf32>, vector<8x96xf32> -> vector<8x96xf32>
    %560 = vector.extract_strided_slice %558 {offsets = [0, 0], sizes = [8, 64], strides = [1, 1]} : vector<8x96xf32> to vector<8x64xf32>
    %561 = vector.extract_strided_slice %559 {offsets = [0, 0], sizes = [8, 64], strides = [1, 1]} : vector<8x96xf32> to vector<8x64xf32>
    %562 = arith.addf %560, %561 : vector<8x64xf32>
    %563 = arith.negf %562 : vector<8x64xf32>
    %564 = math.exp %563 : vector<8x64xf32>
    %cst_93 = arith.constant 1.000000e+00 : f32
    %565 = vector.broadcast %cst_93 : f32 to vector<8x64xf32>
    %566 = arith.addf %565, %564 : vector<8x64xf32>
    %567 = arith.divf %565, %566 : vector<8x64xf32>
    %568 = vector.extract_strided_slice %567 {offsets = [0, 0], sizes = [8, 32], strides = [1, 1]} : vector<8x64xf32> to vector<8x32xf32>
    %569 = vector.extract_strided_slice %567 {offsets = [0, 32], sizes = [8, 32], strides = [1, 1]} : vector<8x64xf32> to vector<8x32xf32>
    %570 = vector.extract_strided_slice %558 {offsets = [0, 64], sizes = [8, 32], strides = [1, 1]} : vector<8x96xf32> to vector<8x32xf32>
    %571 = vector.extract_strided_slice %559 {offsets = [0, 64], sizes = [8, 32], strides = [1, 1]} : vector<8x96xf32> to vector<8x32xf32>
    %572 = arith.addf %571, %10 : vector<8x32xf32>
    %573 = arith.mulf %568, %572 : vector<8x32xf32>
    %574 = arith.addf %570, %573 : vector<8x32xf32>
    %575 = math.tanh %574 : vector<8x32xf32>
    %576 = arith.subf %557, %575 : vector<8x32xf32>
    %577 = arith.mulf %569, %576 : vector<8x32xf32>
    %578 = arith.addf %575, %577 : vector<8x32xf32>
    %c216 = arith.constant 216 : index
    %c0_94 = arith.constant 0 : index
    %579 = vector.load %arg6[%c216, %c0_94] : memref<256x96xf32, #tpu.memory_space<vmem>>, vector<8x96xf32>
    %cst_95 = arith.constant dense<0.000000e+00> : vector<8x96xf32>
    %580 = tpu.matmul %578, %7, %cst_95 {dimension_numbers = #tpu.dot_dimension_numbers<[1], [0], [0], [1], [0, 0, 1, 1], [], []>} : vector<8x32xf32>, vector<32x96xf32>, vector<8x96xf32> -> vector<8x96xf32>
    %581 = vector.extract_strided_slice %579 {offsets = [0, 0], sizes = [8, 64], strides = [1, 1]} : vector<8x96xf32> to vector<8x64xf32>
    %582 = vector.extract_strided_slice %580 {offsets = [0, 0], sizes = [8, 64], strides = [1, 1]} : vector<8x96xf32> to vector<8x64xf32>
    %583 = arith.addf %581, %582 : vector<8x64xf32>
    %584 = arith.negf %583 : vector<8x64xf32>
    %585 = math.exp %584 : vector<8x64xf32>
    %cst_96 = arith.constant 1.000000e+00 : f32
    %586 = vector.broadcast %cst_96 : f32 to vector<8x64xf32>
    %587 = arith.addf %586, %585 : vector<8x64xf32>
    %588 = arith.divf %586, %587 : vector<8x64xf32>
    %589 = vector.extract_strided_slice %588 {offsets = [0, 0], sizes = [8, 32], strides = [1, 1]} : vector<8x64xf32> to vector<8x32xf32>
    %590 = vector.extract_strided_slice %588 {offsets = [0, 32], sizes = [8, 32], strides = [1, 1]} : vector<8x64xf32> to vector<8x32xf32>
    %591 = vector.extract_strided_slice %579 {offsets = [0, 64], sizes = [8, 32], strides = [1, 1]} : vector<8x96xf32> to vector<8x32xf32>
    %592 = vector.extract_strided_slice %580 {offsets = [0, 64], sizes = [8, 32], strides = [1, 1]} : vector<8x96xf32> to vector<8x32xf32>
    %593 = arith.addf %592, %10 : vector<8x32xf32>
    %594 = arith.mulf %589, %593 : vector<8x32xf32>
    %595 = arith.addf %591, %594 : vector<8x32xf32>
    %596 = math.tanh %595 : vector<8x32xf32>
    %597 = arith.subf %578, %596 : vector<8x32xf32>
    %598 = arith.mulf %590, %597 : vector<8x32xf32>
    %599 = arith.addf %596, %598 : vector<8x32xf32>
    %c224 = arith.constant 224 : index
    %c0_97 = arith.constant 0 : index
    %600 = vector.load %arg6[%c224, %c0_97] : memref<256x96xf32, #tpu.memory_space<vmem>>, vector<8x96xf32>
    %cst_98 = arith.constant dense<0.000000e+00> : vector<8x96xf32>
    %601 = tpu.matmul %599, %7, %cst_98 {dimension_numbers = #tpu.dot_dimension_numbers<[1], [0], [0], [1], [0, 0, 1, 1], [], []>} : vector<8x32xf32>, vector<32x96xf32>, vector<8x96xf32> -> vector<8x96xf32>
    %602 = vector.extract_strided_slice %600 {offsets = [0, 0], sizes = [8, 64], strides = [1, 1]} : vector<8x96xf32> to vector<8x64xf32>
    %603 = vector.extract_strided_slice %601 {offsets = [0, 0], sizes = [8, 64], strides = [1, 1]} : vector<8x96xf32> to vector<8x64xf32>
    %604 = arith.addf %602, %603 : vector<8x64xf32>
    %605 = arith.negf %604 : vector<8x64xf32>
    %606 = math.exp %605 : vector<8x64xf32>
    %cst_99 = arith.constant 1.000000e+00 : f32
    %607 = vector.broadcast %cst_99 : f32 to vector<8x64xf32>
    %608 = arith.addf %607, %606 : vector<8x64xf32>
    %609 = arith.divf %607, %608 : vector<8x64xf32>
    %610 = vector.extract_strided_slice %609 {offsets = [0, 0], sizes = [8, 32], strides = [1, 1]} : vector<8x64xf32> to vector<8x32xf32>
    %611 = vector.extract_strided_slice %609 {offsets = [0, 32], sizes = [8, 32], strides = [1, 1]} : vector<8x64xf32> to vector<8x32xf32>
    %612 = vector.extract_strided_slice %600 {offsets = [0, 64], sizes = [8, 32], strides = [1, 1]} : vector<8x96xf32> to vector<8x32xf32>
    %613 = vector.extract_strided_slice %601 {offsets = [0, 64], sizes = [8, 32], strides = [1, 1]} : vector<8x96xf32> to vector<8x32xf32>
    %614 = arith.addf %613, %10 : vector<8x32xf32>
    %615 = arith.mulf %610, %614 : vector<8x32xf32>
    %616 = arith.addf %612, %615 : vector<8x32xf32>
    %617 = math.tanh %616 : vector<8x32xf32>
    %618 = arith.subf %599, %617 : vector<8x32xf32>
    %619 = arith.mulf %611, %618 : vector<8x32xf32>
    %620 = arith.addf %617, %619 : vector<8x32xf32>
    %c232 = arith.constant 232 : index
    %c0_100 = arith.constant 0 : index
    %621 = vector.load %arg6[%c232, %c0_100] : memref<256x96xf32, #tpu.memory_space<vmem>>, vector<8x96xf32>
    %cst_101 = arith.constant dense<0.000000e+00> : vector<8x96xf32>
    %622 = tpu.matmul %620, %7, %cst_101 {dimension_numbers = #tpu.dot_dimension_numbers<[1], [0], [0], [1], [0, 0, 1, 1], [], []>} : vector<8x32xf32>, vector<32x96xf32>, vector<8x96xf32> -> vector<8x96xf32>
    %623 = vector.extract_strided_slice %621 {offsets = [0, 0], sizes = [8, 64], strides = [1, 1]} : vector<8x96xf32> to vector<8x64xf32>
    %624 = vector.extract_strided_slice %622 {offsets = [0, 0], sizes = [8, 64], strides = [1, 1]} : vector<8x96xf32> to vector<8x64xf32>
    %625 = arith.addf %623, %624 : vector<8x64xf32>
    %626 = arith.negf %625 : vector<8x64xf32>
    %627 = math.exp %626 : vector<8x64xf32>
    %cst_102 = arith.constant 1.000000e+00 : f32
    %628 = vector.broadcast %cst_102 : f32 to vector<8x64xf32>
    %629 = arith.addf %628, %627 : vector<8x64xf32>
    %630 = arith.divf %628, %629 : vector<8x64xf32>
    %631 = vector.extract_strided_slice %630 {offsets = [0, 0], sizes = [8, 32], strides = [1, 1]} : vector<8x64xf32> to vector<8x32xf32>
    %632 = vector.extract_strided_slice %630 {offsets = [0, 32], sizes = [8, 32], strides = [1, 1]} : vector<8x64xf32> to vector<8x32xf32>
    %633 = vector.extract_strided_slice %621 {offsets = [0, 64], sizes = [8, 32], strides = [1, 1]} : vector<8x96xf32> to vector<8x32xf32>
    %634 = vector.extract_strided_slice %622 {offsets = [0, 64], sizes = [8, 32], strides = [1, 1]} : vector<8x96xf32> to vector<8x32xf32>
    %635 = arith.addf %634, %10 : vector<8x32xf32>
    %636 = arith.mulf %631, %635 : vector<8x32xf32>
    %637 = arith.addf %633, %636 : vector<8x32xf32>
    %638 = math.tanh %637 : vector<8x32xf32>
    %639 = arith.subf %620, %638 : vector<8x32xf32>
    %640 = arith.mulf %632, %639 : vector<8x32xf32>
    %641 = arith.addf %638, %640 : vector<8x32xf32>
    %c240 = arith.constant 240 : index
    %c0_103 = arith.constant 0 : index
    %642 = vector.load %arg6[%c240, %c0_103] : memref<256x96xf32, #tpu.memory_space<vmem>>, vector<8x96xf32>
    %cst_104 = arith.constant dense<0.000000e+00> : vector<8x96xf32>
    %643 = tpu.matmul %641, %7, %cst_104 {dimension_numbers = #tpu.dot_dimension_numbers<[1], [0], [0], [1], [0, 0, 1, 1], [], []>} : vector<8x32xf32>, vector<32x96xf32>, vector<8x96xf32> -> vector<8x96xf32>
    %644 = vector.extract_strided_slice %642 {offsets = [0, 0], sizes = [8, 64], strides = [1, 1]} : vector<8x96xf32> to vector<8x64xf32>
    %645 = vector.extract_strided_slice %643 {offsets = [0, 0], sizes = [8, 64], strides = [1, 1]} : vector<8x96xf32> to vector<8x64xf32>
    %646 = arith.addf %644, %645 : vector<8x64xf32>
    %647 = arith.negf %646 : vector<8x64xf32>
    %648 = math.exp %647 : vector<8x64xf32>
    %cst_105 = arith.constant 1.000000e+00 : f32
    %649 = vector.broadcast %cst_105 : f32 to vector<8x64xf32>
    %650 = arith.addf %649, %648 : vector<8x64xf32>
    %651 = arith.divf %649, %650 : vector<8x64xf32>
    %652 = vector.extract_strided_slice %651 {offsets = [0, 0], sizes = [8, 32], strides = [1, 1]} : vector<8x64xf32> to vector<8x32xf32>
    %653 = vector.extract_strided_slice %651 {offsets = [0, 32], sizes = [8, 32], strides = [1, 1]} : vector<8x64xf32> to vector<8x32xf32>
    %654 = vector.extract_strided_slice %642 {offsets = [0, 64], sizes = [8, 32], strides = [1, 1]} : vector<8x96xf32> to vector<8x32xf32>
    %655 = vector.extract_strided_slice %643 {offsets = [0, 64], sizes = [8, 32], strides = [1, 1]} : vector<8x96xf32> to vector<8x32xf32>
    %656 = arith.addf %655, %10 : vector<8x32xf32>
    %657 = arith.mulf %652, %656 : vector<8x32xf32>
    %658 = arith.addf %654, %657 : vector<8x32xf32>
    %659 = math.tanh %658 : vector<8x32xf32>
    %660 = arith.subf %641, %659 : vector<8x32xf32>
    %661 = arith.mulf %653, %660 : vector<8x32xf32>
    %662 = arith.addf %659, %661 : vector<8x32xf32>
    %c248 = arith.constant 248 : index
    %c0_106 = arith.constant 0 : index
    %663 = vector.load %arg6[%c248, %c0_106] : memref<256x96xf32, #tpu.memory_space<vmem>>, vector<8x96xf32>
    %cst_107 = arith.constant dense<0.000000e+00> : vector<8x96xf32>
    %664 = tpu.matmul %662, %7, %cst_107 {dimension_numbers = #tpu.dot_dimension_numbers<[1], [0], [0], [1], [0, 0, 1, 1], [], []>} : vector<8x32xf32>, vector<32x96xf32>, vector<8x96xf32> -> vector<8x96xf32>
    %665 = vector.extract_strided_slice %663 {offsets = [0, 0], sizes = [8, 64], strides = [1, 1]} : vector<8x96xf32> to vector<8x64xf32>
    %666 = vector.extract_strided_slice %664 {offsets = [0, 0], sizes = [8, 64], strides = [1, 1]} : vector<8x96xf32> to vector<8x64xf32>
    %667 = arith.addf %665, %666 : vector<8x64xf32>
    %668 = arith.negf %667 : vector<8x64xf32>
    %669 = math.exp %668 : vector<8x64xf32>
    %cst_108 = arith.constant 1.000000e+00 : f32
    %670 = vector.broadcast %cst_108 : f32 to vector<8x64xf32>
    %671 = arith.addf %670, %669 : vector<8x64xf32>
    %672 = arith.divf %670, %671 : vector<8x64xf32>
    %673 = vector.extract_strided_slice %672 {offsets = [0, 0], sizes = [8, 32], strides = [1, 1]} : vector<8x64xf32> to vector<8x32xf32>
    %674 = vector.extract_strided_slice %672 {offsets = [0, 32], sizes = [8, 32], strides = [1, 1]} : vector<8x64xf32> to vector<8x32xf32>
    %675 = vector.extract_strided_slice %663 {offsets = [0, 64], sizes = [8, 32], strides = [1, 1]} : vector<8x96xf32> to vector<8x32xf32>
    %676 = vector.extract_strided_slice %664 {offsets = [0, 64], sizes = [8, 32], strides = [1, 1]} : vector<8x96xf32> to vector<8x32xf32>
    %677 = arith.addf %676, %10 : vector<8x32xf32>
    %678 = arith.mulf %673, %677 : vector<8x32xf32>
    %679 = arith.addf %675, %678 : vector<8x32xf32>
    %680 = math.tanh %679 : vector<8x32xf32>
    %681 = arith.subf %662, %680 : vector<8x32xf32>
    %682 = arith.mulf %674, %681 : vector<8x32xf32>
    %683 = arith.addf %680, %682 : vector<8x32xf32>
    %684 = vector.extract_strided_slice %683 {offsets = [0, 0], sizes = [2, 32], strides = [1, 1]} : vector<8x32xf32> to vector<2x32xf32>
    %c0_109 = arith.constant 0 : index
    %c0_110 = arith.constant 0 : index
    %685 = vector.load %arg5[%c0_109, %c0_110] : memref<2x32xf32, #tpu.memory_space<vmem>>, vector<2x32xf32>
    tpu.vector_store %arg5[%c0_109, %c0_110], %684 {strides = array<i32>} : memref<2x32xf32, #tpu.memory_space<vmem>>, vector<2x32xf32>,
    return
  }
}

</mosaic_0001>

<bundles_post_ra>
// kernel: pretrained_rnn_forward.1
= control target key start
LH: loop header
LB: loop body
LE: loop exit
PB: predicated region body
PF: predicated region fallthrough
CT: control target
= control target key end

     0   :  { %vm158_vm0 = vcmask 1044480   ;;  %vm61_vm1 = vcmask 39936   ;;  %v4952_v5 = vmov 0.0|0.0   ;;  %vm4953_vm2 = vmmov 0   ;;  %s5643_s0 = inlined_call_operand.vmem [shape: f32[256,5], index: 0, kind: input, shape index: {}]   ;;  %s5644_s1 = inlined_call_operand.vmem [shape: f32[5,96], index: 1, kind: input, shape index: {}]   ;;  %s5645_s2 = inlined_call_operand.vmem [shape: f32[1,96], index: 2, kind: input, shape index: {}]   ;;  %s5646_s3 = inlined_call_operand.vmem [shape: f32[32,96], index: 3, kind: input, shape index: {}]   ;;  %s5647_s4 = inlined_call_operand.vmem [shape: f32[1,32], index: 4, kind: input, shape index: {}]   ;;  %s5648_s5 = inlined_call_operand.hbm [shape: f32[2,32], index: 5, kind: output, shape index: {}]  }
   0x1   :  { %v53_v0 = vld [vmem:[%s5644_s1] sm:$0x1f]  ;;  %v22_v2 = vld [vmem:[%s5643_s0 + $0x8] sm:$0xff]  ;;  %4537 = vmatprep.subr.bf16.mxu1 %v4952_v5  ;;  %v422_v7 = vld [vmem:[%s5646_s3 + $0x10] sm:$0xff]  ;;  %v4954_v10 = vmov 0.0  }
   0x2   :  { %v21_v1 = vld [vmem:[%s5643_s0] sm:$0xff]  ;;  %4135 = vmatprep.subr.msk.mxu0 %vm158_vm0, %v53_v0  ;;  %v421_v4 = vld [vmem:[%s5646_s3 + $0x8] sm:$0xff]  ;;  %v423_v8 = vld [vmem:[%s5646_s3 + $0x18] sm:$0xff]  ;;  %4193 = vmatprep.mubr.msk.f32.mxu1 %vm4953_vm2, %v4954_v10 }
   0x3   :  { %4137 = vmatprep.mubr.msk.f32.mxu0 %vm61_vm1, %v21_v1  ;;  %v420_v3 = vld [vmem:[%s5646_s3] sm:$0xff]  ;;  %4136 = vmatpush3.msk.msra.mxu0 %vm158_vm0, %v53_v0 }
   0x4   :  { %v5006_v6 = vpack.c.bf16 %v421_v4, %v420_v3  ;;  %v3878_v9 = vld [vmem:[%s5647_s4] ss:$0 sm:$0xff]  ;;  %4138 = vmatmul.mubr.msk.f32.vlgmr.msra.gmra.mrb[0].mxu0 %vm61_vm1, %v22_v2 }
   0x5   :  { %10 = vsyncpa [#allocation4], 0  ;;  %v5021_v11 = vpack.c.bf16 %v423_v8, %v422_v7  ;;  %s4955_s8 = smov 64   ;;  %4585 = vmatprep.subr.bf16.mxu0 %v4952_v5  ;;  %v5042_v12 = vld [vmem:[%s5645_s2] ss:$0 sm:$0xff]  ;;  %vm387_vm3 = vcmask 785408  }
   0x6   :  { %4539 = vmatpush3.bf16.msra.mxu1 %v5006_v6  ;;  %512 = vrot.lane.b32.xlu0 %v3878_v9, %s4955_s8  ;;  %s4956_s2 = smov 96   ;;  %s4957_s9 = smov 32   ;;  %vm431_vm4 = vcmask 261120   ;;  %v23_v53 = vld [vmem:[%s5643_s0 + $0x10] sm:$0xff]  ;;  %v24_v54 = vld [vmem:[%s5643_s0 + $0x18] sm:$0xff]  ;;  %vm3828_vm5 = vcmask 254976  }
   0x7   :  { %4540 = vmatprep.subr.bf16.mxu1 %v4952_v5  ;;  %4587 = vmatpush3.bf16.msra.mxu0 %v5006_v6 }
   0x8   :  { %4588 = vmatprep.subr.bf16.mxu0 %v4952_v5  ;;  %4140 = vmatprep.mubr.msk.f32.mxu0 %vm61_vm1, %v23_v53 }
   0x9   :  { %4141 = vmatmul.mubr.msk.f32.gmra.mrb[2].mxu0 %vm61_vm1, %v24_v54 }
   0xa   :  { %4542 = vmatpush3.bf16.msra.mxu1 %v5021_v11 }
   0xb   :  { %4543 = vmatprep.subr.bf16.mxu1 %v4952_v5  ;;  %4590 = vmatpush3.bf16.msra.mxu0 %v5021_v11 }
   0xc   :  { %4597 = vmatprep.subr.bf16.mxu0 %v4952_v5 }
   0xd   :  { %4194 = vmatmul.mubr.f32.vlgmr.msra.gmra.mrb[0].mxu1 %v4954_v10 }
   0xe   :  { %4545 = vmatpush3.bf16.msra.mxu1 %v5006_v6  ;;  %4204 = vmatprep.mubr.msk.f32.mxu1 %vm4953_vm2, %v4954_v10 }
   0xf   :  { %4546 = vmatprep.subr.bf16.mxu1 %v4952_v5 }
  0x12   :  { %4548 = vmatpush3.bf16.msra.mxu1 %v5021_v11 }
  0x13   :  { %4549 = vmatprep.subr.bf16.mxu1 %v4952_v5 }
  0x78   :  { %v5048_v17 = vpop.permute.xlu0 %512 }
  0xd7   :  { %v4139_v13 = vpop.f32.mrb[0].mxu0 }
  0xd8   :  { %v234_v14 = vadd.f32 %v4139_v13, %v5042_v12  ;;  %v228_v15 = vpop.f32.mrb[1].mxu0 }
  0xd9   :  { %v229_v16 = vadd.f32 %v5042_v12, %v228_v15 }
  0xda   :  { %389 = vst.msk [vmem:[#allocation2 + $0x8] sm:$0xff] %vm387_vm3, %v234_v14 }
  0xdb   :  { %388 = vst.msk [vmem:[#allocation2] sm:$0xff] %vm387_vm3, %v229_v16 }
  0xdc   :  { %v4142_v59 = vpop.f32.mrb[2].mxu0 }
  0xdd   :  { %v244_v60 = vadd.f32 %v4142_v59, %v5042_v12  ;;  %v238_v61 = vpop.f32.mrb[3].mxu0 }
  0xde   :  { %v239_v62 = vadd.f32 %v5042_v12, %v238_v61 }
  0xdf   :  { %391 = vst.msk [vmem:[#allocation2 + $0x18] sm:$0xff] %vm387_vm3, %v244_v60 }
  0xe0   :  { %v501_v18 = vpop.f32.mrb[0].mxu1  ;;  %390 = vst.msk [vmem:[#allocation2 + $0x10] sm:$0xff] %vm387_vm3, %v239_v62 }
  0xe1   :  { %v515_v19 = vadd.f32 %v5048_v17, %v501_v18  ;;  %v4195_v20 = vpop.f32.mrb[1].mxu1  ;;  %v538_v41 = vld [vmem:[#allocation2 + $0x8] sm:$0xff] }
  0xe2   :  { %v430_v21 = vld [vmem:[#allocation2] sm:$0xff] }
  0xe3   :  { %517 = vrot.lane.b32.xlu0 %v515_v19, %s4955_s8  ;;  %v505_v22 = vadd.f32 %v501_v18, %v430_v21 }
  0xe5   :  { %v3879_v23 = vmul.f32 -1.442695, %v505_v22 }
  0xe7   :  { %4736 = vpow2.f32 %v3879_v23  ;;  %v644_v3 = vld [vmem:[#allocation2 + $0x10] sm:$0xff] }
  0xf1   :  { %v4737_v24 = vpop.eup %4736 }
  0xf2   :  { %v509_v25 = vadd.f32 1.0, %v4737_v24 }
  0xf4   :  { %4738 = vrcp.f32 %v509_v25 }
  0xfe   :  { %v4739_v26 = vpop.eup %4738 }
 0x155   :  { %v518_v27 = vpop.permute.xlu0 %517 }
 0x156   :  { %v520_v28 = vmul.f32 %v4739_v26, %v518_v27 }
 0x158   :  { %522 = vrot.lane.b32.xlu1 %v520_v28, %s4955_s8 }
 0x1ca   :  { %v523_v29 = vpop.permute.xlu1 %522 }
 0x1cb   :  { %v525_v30 = vadd.f32 %v523_v29, %v430_v21  ;;  %v750_v29 = vld [vmem:[#allocation2 + $0x18] sm:$0xff] }
 0x1cd   :  { %4740 = vtanh.f32 %v525_v30 }
 0x1d7   :  { %v4741_v31 = vpop.eup %4740 }
 0x1d8   :  { %v527_v32 = vsub.f32 0.0, %v4741_v31 }
 0x1da   :  { %529 = vrot.lane.b32.xlu1 %v527_v32, %s4956_s2 }
 0x24c   :  { %v530_v33 = vpop.permute.xlu1 %529 }
 0x24d   :  { %v532_v34 = vmul.f32 %v4739_v26, %v530_v33 }
 0x24f   :  { %534 = vrot.lane.b32.xlu0 %v532_v34, %s4957_s9 }
 0x2c1   :  { %v535_v35 = vpop.permute.xlu0 %534 }
 0x2c2   :  { %v537_v36 = vadd.f32 %v4741_v31, %v535_v35 }
 0x2c4   :  { %540 = vrot.lane.b32.xlu1 %v537_v36, %s4955_s8 }
 0x336   :  { %v541_v37 = vpop.permute.xlu1 %540 }
 0x337   :  { %4205 = vmatmul.mubr.msk.f32.vlgmr.msra.gmra.mrb[2].mxu1 %vm431_vm4, %v541_v37 }
 0x338   :  { %4551 = vmatpush3.bf16.msra.mxu1 %v5006_v6  ;;  %4215 = vmatprep.mubr.msk.f32.mxu1 %vm4953_vm2, %v4954_v10 }
 0x339   :  { %4552 = vmatprep.subr.bf16.mxu1 %v4952_v5 }
 0x33c   :  { %4554 = vmatpush3.bf16.msra.mxu1 %v5021_v11 }
 0x33d   :  { %4555 = vmatprep.subr.bf16.mxu1 %v4952_v5 }
 0x40a   :  { %v610_v38 = vpop.f32.mrb[2].mxu1 }
 0x40b   :  { %v621_v39 = vadd.f32 %v610_v38, %v5048_v17  ;;  %v4206_v40 = vpop.f32.mrb[3].mxu1  ;;  %v614_v42 = vadd.f32 %v610_v38, %v538_v41 }
 0x40d   :  { %623 = vrot.lane.b32.xlu0 %v621_v39, %s4955_s8  ;;  %v3881_v43 = vmul.f32 -1.442695, %v614_v42  ;;  %v26_v42 = vld [vmem:[%s5643_s0 + $0x28] sm:$0xff] }
 0x40f   :  { %4742 = vpow2.f32 %v3881_v43 }
 0x419   :  { %v4743_v44 = vpop.eup %4742 }
 0x41a   :  { %v618_v45 = vadd.f32 1.0, %v4743_v44 }
 0x41c   :  { %4744 = vrcp.f32 %v618_v45 }
 0x426   :  { %v4745_v46 = vpop.eup %4744 }
 0x47f   :  { %v624_v47 = vpop.permute.xlu0 %623 }
 0x480   :  { %v626_v48 = vmul.f32 %v4745_v46, %v624_v47 }
 0x482   :  { %628 = vrot.lane.b32.xlu1 %v626_v48, %s4955_s8 }
 0x4f4   :  { %v629_v49 = vpop.permute.xlu1 %628 }
 0x4f5   :  { %v631_v50 = vadd.f32 %v629_v49, %v538_v41  ;;  %v25_v41 = vld [vmem:[%s5643_s0 + $0x20] sm:$0xff] }
 0x4f6   :  { %4143 = vmatprep.mubr.msk.f32.mxu0 %vm61_vm1, %v25_v41 }
 0x4f7   :  { %4746 = vtanh.f32 %v631_v50  ;;  %4144 = vmatmul.mubr.msk.f32.gmra.mrb[4].mxu0 %vm61_vm1, %v26_v42 }
 0x501   :  { %v4747_v51 = vpop.eup %4746 }
 0x502   :  { %v633_v52 = vsub.f32 %v537_v36, %v4747_v51 }
 0x504   :  { %635 = vrot.lane.b32.xlu0 %v633_v52, %s4956_s2 }
 0x576   :  { %v636_v55 = vpop.permute.xlu0 %635 }
 0x577   :  { %v638_v56 = vmul.f32 %v4745_v46, %v636_v55 }
 0x579   :  { %640 = vrot.lane.b32.xlu1 %v638_v56, %s4957_s9 }
 0x5ca   :  { %v4145_v47 = vpop.f32.mrb[4].mxu0 }
 0x5cb   :  { %v254_v48 = vadd.f32 %v4145_v47, %v5042_v12  ;;  %v248_v49 = vpop.f32.mrb[5].mxu0 }
 0x5cc   :  { %v249_v50 = vadd.f32 %v5042_v12, %v248_v49 }
 0x5cd   :  { %393 = vst.msk [vmem:[#allocation2 + $0x28] sm:$0xff] %vm387_vm3, %v254_v48 }
 0x5ce   :  { %392 = vst.msk [vmem:[#allocation2 + $0x20] sm:$0xff] %vm387_vm3, %v249_v50 }
 0x5d5   :  { %v856_v55 = vld [vmem:[#allocation2 + $0x20] sm:$0xff] }
 0x5eb   :  { %v641_v57 = vpop.permute.xlu1 %640 }
 0x5ec   :  { %v643_v58 = vadd.f32 %v4747_v51, %v641_v57 }
 0x5ee   :  { %646 = vrot.lane.b32.xlu0 %v643_v58, %s4955_s8 }
 0x660   :  { %v647_v63 = vpop.permute.xlu0 %646 }
 0x661   :  { %4216 = vmatmul.mubr.msk.f32.vlgmr.msra.gmra.mrb[4].mxu1 %vm431_vm4, %v647_v63 }
 0x662   :  { %4557 = vmatpush3.bf16.msra.mxu1 %v5006_v6  ;;  %4226 = vmatprep.mubr.msk.f32.mxu1 %vm4953_vm2, %v4954_v10 }
 0x663   :  { %4558 = vmatprep.subr.bf16.mxu1 %v4952_v5 }
 0x666   :  { %4560 = vmatpush3.bf16.msra.mxu1 %v5021_v11 }
 0x667   :  { %4561 = vmatprep.subr.bf16.mxu1 %v4952_v5 }
 0x734   :  { %v716_v0 = vpop.f32.mrb[4].mxu1 }
 0x735   :  { %v727_v1 = vadd.f32 %v716_v0, %v5048_v17  ;;  %v4217_v2 = vpop.f32.mrb[5].mxu1  ;;  %v720_v4 = vadd.f32 %v716_v0, %v644_v3 }
 0x737   :  { %729 = vrot.lane.b32.xlu1 %v727_v1, %s4955_s8  ;;  %v3883_v7 = vmul.f32 -1.442695, %v720_v4 }
 0x739   :  { %4748 = vpow2.f32 %v3883_v7 }
 0x743   :  { %v4749_v8 = vpop.eup %4748 }
 0x744   :  { %v724_v9 = vadd.f32 1.0, %v4749_v8 }
 0x746   :  { %4750 = vrcp.f32 %v724_v9 }
 0x750   :  { %v4751_v13 = vpop.eup %4750 }
 0x7a9   :  { %v730_v14 = vpop.permute.xlu1 %729 }
 0x7aa   :  { %v732_v15 = vmul.f32 %v4751_v13, %v730_v14 }
 0x7ac   :  { %734 = vrot.lane.b32.xlu0 %v732_v15, %s4955_s8 }
 0x81e   :  { %v735_v16 = vpop.permute.xlu0 %734 }
 0x81f   :  { %v737_v18 = vadd.f32 %v735_v16, %v644_v3  ;;  %v962_v16 = vld [vmem:[#allocation2 + $0x28] sm:$0xff] }
 0x821   :  { %4752 = vtanh.f32 %v737_v18 }
 0x82b   :  { %v4753_v19 = vpop.eup %4752 }
 0x82c   :  { %v739_v20 = vsub.f32 %v643_v58, %v4753_v19 }
 0x82e   :  { %741 = vrot.lane.b32.xlu1 %v739_v20, %s4956_s2 }
 0x8a0   :  { %v742_v21 = vpop.permute.xlu1 %741 }
 0x8a1   :  { %v744_v22 = vmul.f32 %v4751_v13, %v742_v21 }
 0x8a3   :  { %746 = vrot.lane.b32.xlu0 %v744_v22, %s4957_s9 }
 0x915   :  { %v747_v23 = vpop.permute.xlu0 %746 }
 0x916   :  { %v749_v24 = vadd.f32 %v4753_v19, %v747_v23 }
 0x918   :  { %752 = vrot.lane.b32.xlu1 %v749_v24, %s4955_s8 }
 0x98a   :  { %v753_v25 = vpop.permute.xlu1 %752 }
 0x98b   :  { %4227 = vmatmul.mubr.msk.f32.vlgmr.msra.gmra.mrb[6].mxu1 %vm431_vm4, %v753_v25 }
 0x98c   :  { %4563 = vmatpush3.bf16.msra.mxu1 %v5006_v6  ;;  %4237 = vmatprep.mubr.msk.f32.mxu1 %vm4953_vm2, %v4954_v10 }
 0x98d   :  { %4564 = vmatprep.subr.bf16.mxu1 %v4952_v5 }
 0x990   :  { %4566 = vmatpush3.bf16.msra.mxu1 %v5021_v11 }
 0x991   :  { %4567 = vmatprep.subr.bf16.mxu1 %v4952_v5 }
 0xa5e   :  { %v822_v26 = vpop.f32.mrb[6].mxu1 }
 0xa5f   :  { %v833_v27 = vadd.f32 %v822_v26, %v5048_v17  ;;  %v4228_v28 = vpop.f32.mrb[7].mxu1  ;;  %v826_v30 = vadd.f32 %v822_v26, %v750_v29 }
 0xa61   :  { %835 = vrot.lane.b32.xlu0 %v833_v27, %s4955_s8  ;;  %v3885_v31 = vmul.f32 -1.442695, %v826_v30  ;;  %v28_v30 = vld [vmem:[%s5643_s0 + $0x38] sm:$0xff] }
 0xa63   :  { %4754 = vpow2.f32 %v3885_v31 }
 0xa6d   :  { %v4755_v32 = vpop.eup %4754 }
 0xa6e   :  { %v830_v33 = vadd.f32 1.0, %v4755_v32 }
 0xa70   :  { %4756 = vrcp.f32 %v830_v33 }
 0xa7a   :  { %v4757_v34 = vpop.eup %4756 }
 0xad3   :  { %v836_v35 = vpop.permute.xlu0 %835 }
 0xad4   :  { %v838_v36 = vmul.f32 %v4757_v34, %v836_v35 }
 0xad6   :  { %840 = vrot.lane.b32.xlu1 %v838_v36, %s4955_s8 }
 0xb48   :  { %v841_v37 = vpop.permute.xlu1 %840 }
 0xb49   :  { %v843_v38 = vadd.f32 %v841_v37, %v750_v29  ;;  %v27_v29 = vld [vmem:[%s5643_s0 + $0x30] sm:$0xff] }
 0xb4a   :  { %4146 = vmatprep.mubr.msk.f32.mxu0 %vm61_vm1, %v27_v29  ;;  %v39_v29 = vld [vmem:[%s5643_s0 + $0x90] sm:$0xff] }
 0xb4b   :  { %4758 = vtanh.f32 %v843_v38  ;;  %4147 = vmatmul.mubr.msk.f32.gmra.mrb[6].mxu0 %vm61_vm1, %v28_v30  ;;  %v40_v30 = vld [vmem:[%s5643_s0 + $0x98] sm:$0xff] }
 0xb55   :  { %v4759_v39 = vpop.eup %4758 }
 0xb56   :  { %v845_v40 = vsub.f32 %v749_v24, %v4759_v39 }
 0xb58   :  { %847 = vrot.lane.b32.xlu0 %v845_v40, %s4956_s2 }
 0xbca   :  { %v848_v43 = vpop.permute.xlu0 %847 }
 0xbcb   :  { %v850_v44 = vmul.f32 %v4757_v34, %v848_v43 }
 0xbcd   :  { %852 = vrot.lane.b32.xlu1 %v850_v44, %s4957_s9 }
 0xc1e   :  { %v4148_v35 = vpop.f32.mrb[6].mxu0 }
 0xc1f   :  { %v264_v36 = vadd.f32 %v4148_v35, %v5042_v12  ;;  %v258_v37 = vpop.f32.mrb[7].mxu0  ;;  %v45_v35 = vld [vmem:[%s5643_s0 + $0xc0] sm:$0xff] }
 0xc20   :  { %v259_v38 = vadd.f32 %v5042_v12, %v258_v37  ;;  %v47_v37 = vld [vmem:[%s5643_s0 + $0xd0] sm:$0xff] }
 0xc21   :  { %395 = vst.msk [vmem:[#allocation2 + $0x38] sm:$0xff] %vm387_vm3, %v264_v36  ;;  %v46_v36 = vld [vmem:[%s5643_s0 + $0xc8] sm:$0xff] }
 0xc22   :  { %394 = vst.msk [vmem:[#allocation2 + $0x30] sm:$0xff] %vm387_vm3, %v259_v38  ;;  %v48_v38 = vld [vmem:[%s5643_s0 + $0xd8] sm:$0xff] }
 0xc29   :  { %v1068_v43 = vld [vmem:[#allocation2 + $0x30] sm:$0xff] }
 0xc3f   :  { %v853_v45 = vpop.permute.xlu1 %852 }
 0xc40   :  { %v855_v46 = vadd.f32 %v4759_v39, %v853_v45 }
 0xc42   :  { %858 = vrot.lane.b32.xlu0 %v855_v46, %s4955_s8 }
 0xcb4   :  { %v859_v51 = vpop.permute.xlu0 %858 }
 0xcb5   :  { %4238 = vmatmul.mubr.msk.f32.vlgmr.msra.gmra.mrb[8].mxu1 %vm431_vm4, %v859_v51 }
 0xcb6   :  { %4569 = vmatpush3.bf16.msra.mxu1 %v5006_v6  ;;  %4248 = vmatprep.mubr.msk.f32.mxu1 %vm4953_vm2, %v4954_v10 }
 0xcb7   :  { %4570 = vmatprep.subr.bf16.mxu1 %v4952_v5 }
 0xcba   :  { %4572 = vmatpush3.bf16.msra.mxu1 %v5021_v11 }
 0xcbb   :  { %4573 = vmatprep.subr.bf16.mxu1 %v4952_v5 }
 0xd88   :  { %v928_v52 = vpop.f32.mrb[8].mxu1 }
 0xd89   :  { %v939_v53 = vadd.f32 %v928_v52, %v5048_v17  ;;  %v4239_v54 = vpop.f32.mrb[9].mxu1  ;;  %v932_v56 = vadd.f32 %v928_v52, %v856_v55 }
 0xd8b   :  { %941 = vrot.lane.b32.xlu1 %v939_v53, %s4955_s8  ;;  %v3887_v57 = vmul.f32 -1.442695, %v932_v56 }
 0xd8d   :  { %4760 = vpow2.f32 %v3887_v57 }
 0xd97   :  { %v4761_v58 = vpop.eup %4760 }
 0xd98   :  { %v936_v59 = vadd.f32 1.0, %v4761_v58 }
 0xd9a   :  { %4762 = vrcp.f32 %v936_v59 }
 0xda4   :  { %v4763_v60 = vpop.eup %4762 }
 0xdfd   :  { %v942_v61 = vpop.permute.xlu1 %941 }
 0xdfe   :  { %v944_v62 = vmul.f32 %v4763_v60, %v942_v61 }
 0xe00   :  { %946 = vrot.lane.b32.xlu0 %v944_v62, %s4955_s8 }
 0xe72   :  { %v947_v63 = vpop.permute.xlu0 %946 }
 0xe73   :  { %v949_v0 = vadd.f32 %v947_v63, %v856_v55  ;;  %v1174_v63 = vld [vmem:[#allocation2 + $0x38] sm:$0xff] }
 0xe75   :  { %4764 = vtanh.f32 %v949_v0 }
 0xe7f   :  { %v4765_v1 = vpop.eup %4764 }
 0xe80   :  { %v951_v2 = vsub.f32 %v855_v46, %v4765_v1 }
 0xe82   :  { %953 = vrot.lane.b32.xlu1 %v951_v2, %s4956_s2 }
 0xef4   :  { %v954_v3 = vpop.permute.xlu1 %953 }
 0xef5   :  { %v956_v4 = vmul.f32 %v4763_v60, %v954_v3 }
 0xef7   :  { %958 = vrot.lane.b32.xlu0 %v956_v4, %s4957_s9 }
 0xf69   :  { %v959_v7 = vpop.permute.xlu0 %958 }
 0xf6a   :  { %v961_v8 = vadd.f32 %v4765_v1, %v959_v7 }
 0xf6c   :  { %964 = vrot.lane.b32.xlu1 %v961_v8, %s4955_s8 }
 0xfde   :  { %v965_v9 = vpop.permute.xlu1 %964 }
 0xfdf   :  { %4249 = vmatmul.mubr.msk.f32.vlgmr.msra.gmra.mrb[10].mxu1 %vm431_vm4, %v965_v9 }
 0xfe0   :  { %4575 = vmatpush3.bf16.msra.mxu1 %v5006_v6  ;;  %4259 = vmatprep.mubr.msk.f32.mxu1 %vm4953_vm2, %v4954_v10 }
 0xfe1   :  { %4576 = vmatprep.subr.bf16.mxu1 %v4952_v5 }
 0xfe4   :  { %4578 = vmatpush3.bf16.msra.mxu1 %v5021_v11 }
 0xfe5   :  { %4579 = vmatprep.subr.bf16.mxu1 %v4952_v5 }
0x10b2   :  { %v1034_v13 = vpop.f32.mrb[10].mxu1 }
0x10b3   :  { %v1045_v14 = vadd.f32 %v1034_v13, %v5048_v17  ;;  %v4250_v15 = vpop.f32.mrb[11].mxu1  ;;  %v1038_v18 = vadd.f32 %v1034_v13, %v962_v16 }
0x10b5   :  { %1047 = vrot.lane.b32.xlu0 %v1045_v14, %s4955_s8  ;;  %v3889_v19 = vmul.f32 -1.442695, %v1038_v18  ;;  %v30_v18 = vld [vmem:[%s5643_s0 + $0x48] sm:$0xff] }
0x10b7   :  { %4766 = vpow2.f32 %v3889_v19  ;;  %v31_v19 = vld [vmem:[%s5643_s0 + $0x50] sm:$0xff] }
0x10c1   :  { %v4767_v20 = vpop.eup %4766 }
0x10c2   :  { %v1042_v21 = vadd.f32 1.0, %v4767_v20  ;;  %v32_v20 = vld [vmem:[%s5643_s0 + $0x58] sm:$0xff] }
0x10c4   :  { %4768 = vrcp.f32 %v1042_v21  ;;  %v33_v21 = vld [vmem:[%s5643_s0 + $0x60] sm:$0xff] }
0x10ce   :  { %v4769_v22 = vpop.eup %4768 }
0x1127   :  { %v1048_v23 = vpop.permute.xlu0 %1047 }
0x1128   :  { %v1050_v24 = vmul.f32 %v4769_v22, %v1048_v23 }
0x112a   :  { %1052 = vrot.lane.b32.xlu1 %v1050_v24, %s4955_s8  ;;  %v35_v24 = vld [vmem:[%s5643_s0 + $0x70] sm:$0xff] }
0x119c   :  { %v1053_v25 = vpop.permute.xlu1 %1052 }
0x119d   :  { %v1055_v26 = vadd.f32 %v1053_v25, %v962_v16  ;;  %v29_v16 = vld [vmem:[%s5643_s0 + $0x40] sm:$0xff] }
0x119e   :  { %4149 = vmatprep.mubr.msk.f32.mxu0 %vm61_vm1, %v29_v16 }
0x119f   :  { %4770 = vtanh.f32 %v1055_v26  ;;  %4150 = vmatmul.mubr.msk.f32.gmra.mrb[8].mxu0 %vm61_vm1, %v30_v18  ;;  %v36_v26 = vld [vmem:[%s5643_s0 + $0x78] sm:$0xff] }
0x11a0   :  { %4152 = vmatprep.mubr.msk.f32.mxu0 %vm61_vm1, %v31_v19 }
0x11a3   :  { %4153 = vmatmul.mubr.msk.f32.gmra.mrb[10].mxu0 %vm61_vm1, %v32_v20 }
0x11a4   :  { %4155 = vmatprep.mubr.msk.f32.mxu0 %vm61_vm1, %v33_v21 }
0x11a9   :  { %v4771_v27 = vpop.eup %4770 }
0x11aa   :  { %v1057_v28 = vsub.f32 %v961_v8, %v4771_v27 }
0x11ac   :  { %1059 = vrot.lane.b32.xlu0 %v1057_v28, %s4956_s2  ;;  %v38_v28 = vld [vmem:[%s5643_s0 + $0x88] sm:$0xff] }
0x121e   :  { %v1060_v31 = vpop.permute.xlu0 %1059 }
0x121f   :  { %v1062_v32 = vmul.f32 %v4769_v22, %v1060_v31  ;;  %v34_v22 = vld [vmem:[%s5643_s0 + $0x68] sm:$0xff]  ;;  %v41_v31 = vld [vmem:[%s5643_s0 + $0xa0] sm:$0xff] }
0x1220   :  { %4156 = vmatmul.mubr.msk.f32.gmra.mrb[12].mxu0 %vm61_vm1, %v34_v22 }
0x1221   :  { %1064 = vrot.lane.b32.xlu1 %v1062_v32, %s4957_s9  ;;  %4158 = vmatprep.mubr.msk.f32.mxu0 %vm61_vm1, %v35_v24  ;;  %v42_v32 = vld [vmem:[%s5643_s0 + $0xa8] sm:$0xff] }
0x1224   :  { %4159 = vmatmul.mubr.msk.f32.gmra.mrb[14].mxu0 %vm61_vm1, %v36_v26 }
0x1293   :  { %v1065_v33 = vpop.permute.xlu1 %1064 }
0x1294   :  { %v1067_v34 = vadd.f32 %v4771_v27, %v1065_v33  ;;  %v37_v27 = vld [vmem:[%s5643_s0 + $0x80] sm:$0xff]  ;;  %v43_v33 = vld [vmem:[%s5643_s0 + $0xb0] sm:$0xff] }
0x1295   :  { %4161 = vmatprep.mubr.msk.f32.mxu0 %vm61_vm1, %v37_v27 }
0x1296   :  { %1070 = vrot.lane.b32.xlu0 %v1067_v34, %s4955_s8  ;;  %4162 = vmatmul.mubr.msk.f32.gmra.mrb[16].mxu0 %vm61_vm1, %v38_v28 }
0x1297   :  { %4164 = vmatprep.mubr.msk.f32.mxu0 %vm61_vm1, %v39_v29 }
0x129a   :  { %4165 = vmatmul.mubr.msk.f32.gmra.mrb[18].mxu0 %vm61_vm1, %v40_v30 }
0x129b   :  { %4167 = vmatprep.mubr.msk.f32.mxu0 %vm61_vm1, %v41_v31 }
0x129e   :  { %4168 = vmatmul.mubr.msk.f32.gmra.mrb[20].mxu0 %vm61_vm1, %v42_v32 }
0x129f   :  { %4170 = vmatprep.mubr.msk.f32.mxu0 %vm61_vm1, %v43_v33 }
0x1308   :  { %v1071_v39 = vpop.permute.xlu0 %1070 }
0x1309   :  { %4260 = vmatmul.mubr.msk.f32.vlgmr.msra.gmra.mrb[12].mxu1 %vm431_vm4, %v1071_v39  ;;  %v49_v39 = vld [vmem:[%s5643_s0 + $0xe0] sm:$0xff] }
0x130a   :  { %4581 = vmatpush3.bf16.msra.mxu1 %v5006_v6  ;;  %4270 = vmatprep.mubr.msk.f32.mxu1 %vm4953_vm2, %v4954_v10 }
0x130b   :  { %4582 = vmatprep.subr.bf16.mxu1 %v4952_v5 }
0x130e   :  { %4584 = vmatpush3.bf16.msra.mxu1 %v5021_v11 }
0x130f   :  { %4591 = vmatprep.subr.bf16.mxu1 %v4952_v5 }
0x13dc   :  { %v1140_v40 = vpop.f32.mrb[12].mxu1 }
0x13dd   :  { %v1151_v41 = vadd.f32 %v1140_v40, %v5048_v17  ;;  %v4261_v42 = vpop.f32.mrb[13].mxu1  ;;  %v1144_v44 = vadd.f32 %v1140_v40, %v1068_v43  ;;  %v50_v40 = vld [vmem:[%s5643_s0 + $0xe8] sm:$0xff] }
0x13de   :  { %v52_v42 = vld [vmem:[%s5643_s0 + $0xf8] sm:$0xff] }
0x13df   :  { %1153 = vrot.lane.b32.xlu1 %v1151_v41, %s4955_s8  ;;  %v3891_v45 = vmul.f32 -1.442695, %v1144_v44  ;;  %v51_v41 = vld [vmem:[%s5643_s0 + $0xf0] sm:$0xff] }
0x13e1   :  { %4772 = vpow2.f32 %v3891_v45  ;;  %v4151_v45 = vpop.f32.mrb[8].mxu0 }
0x13eb   :  { %v4773_v46 = vpop.eup %4772 }
0x13ec   :  { %v1148_v47 = vadd.f32 1.0, %v4773_v46  ;;  %v274_v46 = vadd.f32 %v4151_v45, %v5042_v12 }
0x13ee   :  { %4774 = vrcp.f32 %v1148_v47  ;;  %v268_v47 = vpop.f32.mrb[9].mxu0  ;;  %397 = vst.msk [vmem:[#allocation2 + $0x48] sm:$0xff] %vm387_vm3, %v274_v46 }
0x13f8   :  { %v4775_v48 = vpop.eup %4774 }
0x1451   :  { %v1154_v49 = vpop.permute.xlu1 %1153 }
0x1452   :  { %v1156_v50 = vmul.f32 %v4775_v48, %v1154_v49  ;;  %v4154_v49 = vpop.f32.mrb[10].mxu0 }
0x1454   :  { %1158 = vrot.lane.b32.xlu0 %v1156_v50, %s4955_s8  ;;  %v284_v50 = vadd.f32 %v4154_v49, %v5042_v12 }
0x1456   :  { %399 = vst.msk [vmem:[#allocation2 + $0x58] sm:$0xff] %vm387_vm3, %v284_v50 }
0x14c6   :  { %v1159_v51 = vpop.permute.xlu0 %1158 }
0x14c7   :  { %v1161_v52 = vadd.f32 %v1159_v51, %v1068_v43  ;;  %v278_v51 = vpop.f32.mrb[11].mxu0 }
0x14c9   :  { %4776 = vtanh.f32 %v1161_v52  ;;  %v279_v52 = vadd.f32 %v5042_v12, %v278_v51 }
0x14cb   :  { %398 = vst.msk [vmem:[#allocation2 + $0x50] sm:$0xff] %vm387_vm3, %v279_v52 }
0x14d3   :  { %v4777_v53 = vpop.eup %4776 }
0x14d4   :  { %v1163_v54 = vsub.f32 %v1067_v34, %v4777_v53  ;;  %v44_v34 = vld [vmem:[%s5643_s0 + $0xb8] sm:$0xff]  ;;  %s4958_s0 = smov [#allocation3]  }
0x14d5   :  { %4171 = vmatmul.mubr.msk.f32.gmra.mrb[22].mxu0 %vm61_vm1, %v44_v34  ;;  %s3836_s18 = sshll.u32 %s4958_s0, 4  ;;  %s3837_s18 = int_to_ptr.vmem [resolvable:$true] %s3836_s18 }
0x14d6   :  { %1165 = vrot.lane.b32.xlu1 %v1163_v54, %s4956_s2  ;;  %4173 = vmatprep.mubr.msk.f32.mxu0 %vm61_vm1, %v45_v35  ;;  %s4928_s19 = scalar_lea.vmem %s3837_s18, 32  ;;  %p4933_p1 = scmp.lt.s32.totalorder %s3837_s18, %s3837_s18 }
0x14d7   :  { %p4929_p0 = scmp.ne.s32.totalorder %s3837_s18, %s4928_s19  ;;  %p4934_p2 = scmp.lt.s32.totalorder %s4928_s19, %s4928_s19 }
0x14d9   :  { %4174 = vmatmul.mubr.msk.f32.gmra.mrb[24].mxu0 %vm61_vm1, %v46_v36  ;;  %p4935_p3 = por %p4934_p2, %p4933_p1 }
0x14da   :  { %4176 = vmatprep.mubr.msk.f32.mxu0 %vm61_vm1, %v47_v37 }
0x14db   :  { %p4936_p4 = pnand %p4935_p3, %p4929_p0 }
0x14dd   :  { %4177 = vmatmul.mubr.msk.f32.gmra.mrb[26].mxu0 %vm61_vm1, %v48_v38 }
0x14de   :  { %4179 = vmatprep.mubr.msk.f32.mxu0 %vm61_vm1, %v49_v39 }
0x14e1   :  { %4180 = vmatmul.mubr.msk.f32.gmra.mrb[28].mxu0 %vm61_vm1, %v50_v40 }
0x14e2   :  { %4182 = vmatprep.mubr.msk.f32.mxu0 %vm61_vm1, %v51_v41 }
0x14e5   :  { %4183 = vmatmul.mubr.msk.f32.gmra.mrb[30].mxu0 %vm61_vm1, %v52_v42 }
0x14e6   :  { %4281 = vmatprep.mubr.msk.f32.mxu0 %vm4953_vm2, %v4954_v10 }
0x1548   :  { %v1166_v55 = vpop.permute.xlu1 %1165 }
0x1549   :  { %v1168_v56 = vmul.f32 %v4775_v48, %v1166_v55  ;;  %v269_v48 = vadd.f32 %v5042_v12, %v268_v47 }
0x154b   :  { %1170 = vrot.lane.b32.xlu0 %v1168_v56, %s4957_s9  ;;  %396 = vst.msk [vmem:[#allocation2 + $0x40] sm:$0xff] %vm387_vm3, %v269_v48 }
0x1552   :  { %v1280_v39 = vld [vmem:[#allocation2 + $0x40] sm:$0xff] }
0x15bd   :  { %v1171_v57 = vpop.permute.xlu0 %1170 }
0x15be   :  { %v1173_v58 = vadd.f32 %v4777_v53, %v1171_v57  ;;  %v4157_v53 = vpop.f32.mrb[12].mxu0 }
0x15bf   :  { %v294_v54 = vadd.f32 %v4157_v53, %v5042_v12  ;;  %v288_v55 = vpop.f32.mrb[13].mxu0 }
0x15c0   :  { %1176 = vrot.lane.b32.xlu1 %v1173_v58, %s4955_s8  ;;  %v289_v56 = vadd.f32 %v5042_v12, %v288_v55  ;;  %v4160_v57 = vpop.f32.mrb[14].mxu0 }
0x15c1   :  { %401 = vst.msk [vmem:[#allocation2 + $0x68] sm:$0xff] %vm387_vm3, %v294_v54 }
0x15c2   :  { %400 = vst.msk [vmem:[#allocation2 + $0x60] sm:$0xff] %vm387_vm3, %v289_v56 }
0x1632   :  { %v1177_v59 = vpop.permute.xlu1 %1176 }
0x1633   :  { %4271 = vmatmul.mubr.msk.f32.vlgmr.msra.gmra.mrb[14].mxu1 %vm431_vm4, %v1177_v59  ;;  %v298_v59 = vpop.f32.mrb[15].mxu0 }
0x1634   :  { %4593 = vmatpush3.bf16.msra.mxu1 %v5006_v6  ;;  %4292 = vmatprep.mubr.msk.f32.mxu1 %vm4953_vm2, %v4954_v10 }
0x1635   :  { %4594 = vmatprep.subr.bf16.mxu1 %v4952_v5 }
0x1638   :  { %4596 = vmatpush3.bf16.msra.mxu1 %v5021_v11 }
0x1639   :  { %4603 = vmatprep.subr.bf16.mxu1 %v4952_v5 }
0x1706   :  { %v1246_v60 = vpop.f32.mrb[14].mxu1 }
0x1707   :  { %v1257_v61 = vadd.f32 %v1246_v60, %v5048_v17  ;;  %v4272_v62 = vpop.f32.mrb[15].mxu1  ;;  %v1250_v0 = vadd.f32 %v1246_v60, %v1174_v63  ;;  %v299_v60 = vadd.f32 %v5042_v12, %v298_v59 }
0x1709   :  { %1259 = vrot.lane.b32.xlu0 %v1257_v61, %s4955_s8  ;;  %v3893_v1 = vmul.f32 -1.442695, %v1250_v0  ;;  %402 = vst.msk [vmem:[#allocation2 + $0x70] sm:$0xff] %vm387_vm3, %v299_v60  ;;  %v4163_v61 = vpop.f32.mrb[16].mxu0 }
0x170a   :  { %v314_v62 = vadd.f32 %v4163_v61, %v5042_v12 }
0x170b   :  { %4778 = vpow2.f32 %v3893_v1 }
0x170c   :  { %405 = vst.msk [vmem:[#allocation2 + $0x88] sm:$0xff] %vm387_vm3, %v314_v62 }
0x1715   :  { %v4779_v2 = vpop.eup %4778 }
0x1716   :  { %v1254_v3 = vadd.f32 1.0, %v4779_v2 }
0x1718   :  { %4780 = vrcp.f32 %v1254_v3 }
0x1722   :  { %v4781_v4 = vpop.eup %4780 }
0x177b   :  { %v1260_v7 = vpop.permute.xlu0 %1259 }
0x177c   :  { %v1262_v8 = vmul.f32 %v4781_v4, %v1260_v7 }
0x177e   :  { %1264 = vrot.lane.b32.xlu1 %v1262_v8, %s4955_s8 }
0x17f0   :  { %v1265_v9 = vpop.permute.xlu1 %1264 }
0x17f1   :  { %v1267_v13 = vadd.f32 %v1265_v9, %v1174_v63  ;;  %v308_v63 = vpop.f32.mrb[17].mxu0 }
0x17f2   :  { %v309_v0 = vadd.f32 %v5042_v12, %v308_v63  ;;  %v4166_v1 = vpop.f32.mrb[18].mxu0 }
0x17f3   :  { %4782 = vtanh.f32 %v1267_v13  ;;  %v324_v2 = vadd.f32 %v4166_v1, %v5042_v12  ;;  %v318_v3 = vpop.f32.mrb[19].mxu0 }
0x17f4   :  { %404 = vst.msk [vmem:[#allocation2 + $0x80] sm:$0xff] %vm387_vm3, %v309_v0  ;;  %v4169_v7 = vpop.f32.mrb[20].mxu0 }
0x17f5   :  { %407 = vst.msk [vmem:[#allocation2 + $0x98] sm:$0xff] %vm387_vm3, %v324_v2  ;;  %v334_v8 = vadd.f32 %v4169_v7, %v5042_v12  ;;  %v328_v9 = vpop.f32.mrb[21].mxu0 }
0x17f6   :  { %v329_v13 = vadd.f32 %v5042_v12, %v328_v9 }
0x17f7   :  { %409 = vst.msk [vmem:[#allocation2 + $0xa8] sm:$0xff] %vm387_vm3, %v334_v8 }
0x17f8   :  { %408 = vst.msk [vmem:[#allocation2 + $0xa0] sm:$0xff] %vm387_vm3, %v329_v13 }
0x17fd   :  { %v4783_v14 = vpop.eup %4782 }
0x17fe   :  { %v1269_v15 = vsub.f32 %v1173_v58, %v4783_v14  ;;  %v304_v58 = vadd.f32 %v4160_v57, %v5042_v12 }
0x1800   :  { %1271 = vrot.lane.b32.xlu0 %v1269_v15, %s4956_s2  ;;  %403 = vst.msk [vmem:[#allocation2 + $0x78] sm:$0xff] %vm387_vm3, %v304_v58  ;;  %v1386_v58 = vld [vmem:[#allocation2 + $0x48] sm:$0xff] }
0x1872   :  { %v1272_v23 = vpop.permute.xlu0 %1271 }
0x1873   :  { %v1274_v25 = vmul.f32 %v4781_v4, %v1272_v23  ;;  %v319_v4 = vadd.f32 %v5042_v12, %v318_v3 }
0x1875   :  { %1276 = vrot.lane.b32.xlu1 %v1274_v25, %s4957_s9  ;;  %406 = vst.msk [vmem:[#allocation2 + $0x90] sm:$0xff] %vm387_vm3, %v319_v4 }
0x18e7   :  { %v1277_v43 = vpop.permute.xlu1 %1276 }
0x18e8   :  { %v5280_v44 = vadd.f32 %v4783_v14, %v1277_v43  ;;  %v4172_v14 = vpop.f32.mrb[22].mxu0 }
0x18e9   :  { %v344_v16 = vadd.f32 %v4172_v14, %v5042_v12  ;;  %v338_v18 = vpop.f32.mrb[23].mxu0 }
0x18ea   :  { %1282 = vrot.lane.b32.xlu0 %v5280_v44, %s4955_s8  ;;  %v339_v19 = vadd.f32 %v5042_v12, %v338_v18  ;;  %v4175_v20 = vpop.f32.mrb[24].mxu0 }
0x18eb   :  { %411 = vst.msk [vmem:[#allocation2 + $0xb8] sm:$0xff] %vm387_vm3, %v344_v16  ;;  %v354_v21 = vadd.f32 %v4175_v20, %v5042_v12  ;;  %v348_v22 = vpop.f32.mrb[25].mxu0  ;;  %v1492_v20 = vld [vmem:[#allocation2 + $0x50] sm:$0xff] }
0x18ec   :  { %410 = vst.msk [vmem:[#allocation2 + $0xb0] sm:$0xff] %vm387_vm3, %v339_v19  ;;  %v349_v23 = vadd.f32 %v5042_v12, %v348_v22  ;;  %v4178_v24 = vpop.f32.mrb[26].mxu0 }
0x18ed   :  { %413 = vst.msk [vmem:[#allocation2 + $0xc8] sm:$0xff] %vm387_vm3, %v354_v21  ;;  %v364_v25 = vadd.f32 %v4178_v24, %v5042_v12  ;;  %v358_v26 = vpop.f32.mrb[27].mxu0 }
0x18ee   :  { %412 = vst.msk [vmem:[#allocation2 + $0xc0] sm:$0xff] %vm387_vm3, %v349_v23  ;;  %v359_v27 = vadd.f32 %v5042_v12, %v358_v26  ;;  %v4181_v28 = vpop.f32.mrb[28].mxu0 }
0x18ef   :  { %415 = vst.msk [vmem:[#allocation2 + $0xd8] sm:$0xff] %vm387_vm3, %v364_v25  ;;  %v374_v29 = vadd.f32 %v4181_v28, %v5042_v12  ;;  %v368_v30 = vpop.f32.mrb[29].mxu0 }
0x18f0   :  { %414 = vst.msk [vmem:[#allocation2 + $0xd0] sm:$0xff] %vm387_vm3, %v359_v27  ;;  %v369_v31 = vadd.f32 %v5042_v12, %v368_v30  ;;  %v4184_v32 = vpop.f32.mrb[30].mxu0 }
0x18f1   :  { %417 = vst.msk [vmem:[#allocation2 + $0xe8] sm:$0xff] %vm387_vm3, %v374_v29  ;;  %v384_v33 = vadd.f32 %v4184_v32, %v5042_v12  ;;  %v378_v34 = vpop.f32.mrb[31].mxu0 }
0x18f2   :  { %416 = vst.msk [vmem:[#allocation2 + $0xe0] sm:$0xff] %vm387_vm3, %v369_v31  ;;  %v379_v35 = vadd.f32 %v5042_v12, %v378_v34 }
0x18f3   :  { %419 = vst.msk [vmem:[#allocation2 + $0xf8] sm:$0xff] %vm387_vm3, %v384_v33 }
0x18f4   :  { %418 = vst.msk [vmem:[#allocation2 + $0xf0] sm:$0xff] %vm387_vm3, %v379_v35 }
0x195c   :  { %v1283_v15 = vpop.permute.xlu0 %1282 }
0x195d   :  { %4282 = vmatmul.mubr.msk.f32.vlgmr.msra.gmra.mrb[32].mxu0 %vm431_vm4, %v1283_v15 }
0x195e   :  { %4599 = vmatpush3.bf16.msra.mxu0 %v5006_v6  ;;  %4303 = vmatprep.mubr.msk.f32.mxu0 %vm4953_vm2, %v4954_v10 }
0x195f   :  { %4600 = vmatprep.subr.bf16.mxu0 %v4952_v5 }
0x1962   :  { %4602 = vmatpush3.bf16.msra.mxu0 %v5021_v11 }
0x1963   :  { %4609 = vmatprep.subr.bf16.mxu0 %v4952_v5 }
0x1a30   :  { %v1352_v36 = vpop.f32.mrb[32].mxu0 }
0x1a31   :  { %v1363_v37 = vadd.f32 %v1352_v36, %v5048_v17  ;;  %v4283_v38 = vpop.f32.mrb[33].mxu0  ;;  %v1356_v40 = vadd.f32 %v1352_v36, %v1280_v39 }
0x1a33   :  { %1365 = vrot.lane.b32.xlu1 %v1363_v37, %s4955_s8  ;;  %v3895_v41 = vmul.f32 -1.442695, %v1356_v40  ;;  %v1598_v40 = vld [vmem:[#allocation2 + $0x58] sm:$0xff] }
0x1a35   :  { %4784 = vpow2.f32 %v3895_v41 }
0x1a3f   :  { %v4785_v42 = vpop.eup %4784 }
0x1a40   :  { %v1360_v43 = vadd.f32 1.0, %v4785_v42 }
0x1a42   :  { %4786 = vrcp.f32 %v1360_v43 }
0x1a4c   :  { %v4787_v45 = vpop.eup %4786 }
0x1aa5   :  { %v1366_v46 = vpop.permute.xlu1 %1365 }
0x1aa6   :  { %v1368_v12 = vmul.f32 %v4787_v45, %v1366_v46 }
0x1aa8   :  { %1370 = vrot.lane.b32.xlu0 %v1368_v12, %s4955_s8 }
0x1b1a   :  { %v1371_v47 = vpop.permute.xlu0 %1370 }
0x1b1b   :  { %v1373_v48 = vadd.f32 %v1371_v47, %v1280_v39 }
0x1b1d   :  { %4788 = vtanh.f32 %v1373_v48 }
0x1b27   :  { %v4789_v49 = vpop.eup %4788 }
0x1b28   :  { %v1375_v50 = vsub.f32 %v5280_v44, %v4789_v49 }
0x1b2a   :  { %1377 = vrot.lane.b32.xlu1 %v1375_v50, %s4956_s2 }
0x1b9c   :  { %v1378_v51 = vpop.permute.xlu1 %1377 }
0x1b9d   :  { %v1380_v52 = vmul.f32 %v4787_v45, %v1378_v51 }
0x1b9f   :  { %1382 = vrot.lane.b32.xlu0 %v1380_v52, %s4957_s9 }
0x1c11   :  { %v1383_v53 = vpop.permute.xlu0 %1382 }
0x1c12   :  { %v1385_v54 = vadd.f32 %v4789_v49, %v1383_v53 }
0x1c14   :  { %1388 = vrot.lane.b32.xlu1 %v1385_v54, %s4955_s8 }
0x1c86   :  { %v1389_v55 = vpop.permute.xlu1 %1388 }
0x1c87   :  { %4293 = vmatmul.mubr.msk.f32.vlgmr.msra.gmra.mrb[16].mxu1 %vm431_vm4, %v1389_v55 }
0x1c88   :  { %4605 = vmatpush3.bf16.msra.mxu1 %v5006_v6  ;;  %4314 = vmatprep.mubr.msk.f32.mxu1 %vm4953_vm2, %v4954_v10 }
0x1c89   :  { %4606 = vmatprep.subr.bf16.mxu1 %v4952_v5 }
0x1c8c   :  { %4608 = vmatpush3.bf16.msra.mxu1 %v5021_v11 }
0x1c8d   :  { %4615 = vmatprep.subr.bf16.mxu1 %v4952_v5 }
0x1d5a   :  { %v1458_v44 = vpop.f32.mrb[16].mxu1 }
0x1d5b   :  { %v1469_v56 = vadd.f32 %v1458_v44, %v5048_v17  ;;  %v4294_v57 = vpop.f32.mrb[17].mxu1  ;;  %v1462_v59 = vadd.f32 %v1458_v44, %v1386_v58 }
0x1d5d   :  { %1471 = vrot.lane.b32.xlu0 %v1469_v56, %s4955_s8  ;;  %v3897_v60 = vmul.f32 -1.442695, %v1462_v59  ;;  %v1704_v59 = vld [vmem:[#allocation2 + $0x60] sm:$0xff] }
0x1d5f   :  { %4790 = vpow2.f32 %v3897_v60 }
0x1d69   :  { %v4791_v61 = vpop.eup %4790 }
0x1d6a   :  { %v1466_v62 = vadd.f32 1.0, %v4791_v61 }
0x1d6c   :  { %4792 = vrcp.f32 %v1466_v62 }
0x1d76   :  { %v4793_v63 = vpop.eup %4792 }
0x1dcf   :  { %v1472_v0 = vpop.permute.xlu0 %1471 }
0x1dd0   :  { %v1474_v1 = vmul.f32 %v4793_v63, %v1472_v0 }
0x1dd2   :  { %1476 = vrot.lane.b32.xlu1 %v1474_v1, %s4955_s8 }
0x1e44   :  { %v1477_v2 = vpop.permute.xlu1 %1476 }
0x1e45   :  { %v1479_v3 = vadd.f32 %v1477_v2, %v1386_v58 }
0x1e47   :  { %4794 = vtanh.f32 %v1479_v3 }
0x1e51   :  { %v4795_v4 = vpop.eup %4794 }
0x1e52   :  { %v1481_v7 = vsub.f32 %v1385_v54, %v4795_v4 }
0x1e54   :  { %1483 = vrot.lane.b32.xlu0 %v1481_v7, %s4956_s2 }
0x1ec6   :  { %v1484_v8 = vpop.permute.xlu0 %1483 }
0x1ec7   :  { %v1486_v9 = vmul.f32 %v4793_v63, %v1484_v8 }
0x1ec9   :  { %1488 = vrot.lane.b32.xlu1 %v1486_v9, %s4957_s9 }
0x1f3b   :  { %v1489_v13 = vpop.permute.xlu1 %1488 }
0x1f3c   :  { %v1491_v14 = vadd.f32 %v4795_v4, %v1489_v13 }
0x1f3e   :  { %1494 = vrot.lane.b32.xlu0 %v1491_v14, %s4955_s8 }
0x1fb0   :  { %v1495_v15 = vpop.permute.xlu0 %1494 }
0x1fb1   :  { %4304 = vmatmul.mubr.msk.f32.vlgmr.msra.gmra.mrb[34].mxu0 %vm431_vm4, %v1495_v15 }
0x1fb2   :  { %4611 = vmatpush3.bf16.msra.mxu0 %v5006_v6  ;;  %4325 = vmatprep.mubr.msk.f32.mxu0 %vm4953_vm2, %v4954_v10 }
0x1fb3   :  { %4612 = vmatprep.subr.bf16.mxu0 %v4952_v5 }
0x1fb6   :  { %4614 = vmatpush3.bf16.msra.mxu0 %v5021_v11 }
0x1fb7   :  { %4621 = vmatprep.subr.bf16.mxu0 %v4952_v5 }
0x2084   :  { %v1564_v16 = vpop.f32.mrb[34].mxu0 }
0x2085   :  { %v1575_v18 = vadd.f32 %v1564_v16, %v5048_v17  ;;  %v4305_v19 = vpop.f32.mrb[35].mxu0  ;;  %v1568_v21 = vadd.f32 %v1564_v16, %v1492_v20 }
0x2087   :  { %1577 = vrot.lane.b32.xlu1 %v1575_v18, %s4955_s8  ;;  %v3899_v22 = vmul.f32 -1.442695, %v1568_v21  ;;  %v1810_v21 = vld [vmem:[#allocation2 + $0x68] sm:$0xff] }
0x2089   :  { %4796 = vpow2.f32 %v3899_v22 }
0x2093   :  { %v4797_v23 = vpop.eup %4796 }
0x2094   :  { %v1572_v24 = vadd.f32 1.0, %v4797_v23 }
0x2096   :  { %4798 = vrcp.f32 %v1572_v24 }
0x20a0   :  { %v4799_v25 = vpop.eup %4798 }
0x20f9   :  { %v1578_v26 = vpop.permute.xlu1 %1577 }
0x20fa   :  { %v1580_v27 = vmul.f32 %v4799_v25, %v1578_v26 }
0x20fc   :  { %1582 = vrot.lane.b32.xlu0 %v1580_v27, %s4955_s8 }
0x216e   :  { %v1583_v28 = vpop.permute.xlu0 %1582 }
0x216f   :  { %v1585_v29 = vadd.f32 %v1583_v28, %v1492_v20 }
0x2171   :  { %4800 = vtanh.f32 %v1585_v29 }
0x217b   :  { %v4801_v30 = vpop.eup %4800 }
0x217c   :  { %v1587_v31 = vsub.f32 %v1491_v14, %v4801_v30 }
0x217e   :  { %1589 = vrot.lane.b32.xlu1 %v1587_v31, %s4956_s2 }
0x21f0   :  { %v1590_v32 = vpop.permute.xlu1 %1589 }
0x21f1   :  { %v1592_v33 = vmul.f32 %v4799_v25, %v1590_v32 }
0x21f3   :  { %1594 = vrot.lane.b32.xlu0 %v1592_v33, %s4957_s9 }
0x2265   :  { %v1595_v34 = vpop.permute.xlu0 %1594 }
0x2266   :  { %v1597_v35 = vadd.f32 %v4801_v30, %v1595_v34 }
0x2268   :  { %1600 = vrot.lane.b32.xlu1 %v1597_v35, %s4955_s8 }
0x22da   :  { %v1601_v36 = vpop.permute.xlu1 %1600 }
0x22db   :  { %4315 = vmatmul.mubr.msk.f32.vlgmr.msra.gmra.mrb[18].mxu1 %vm431_vm4, %v1601_v36 }
0x22dc   :  { %4617 = vmatpush3.bf16.msra.mxu1 %v5006_v6  ;;  %4336 = vmatprep.mubr.msk.f32.mxu1 %vm4953_vm2, %v4954_v10 }
0x22dd   :  { %4618 = vmatprep.subr.bf16.mxu1 %v4952_v5 }
0x22e0   :  { %4620 = vmatpush3.bf16.msra.mxu1 %v5021_v11 }
0x22e1   :  { %4627 = vmatprep.subr.bf16.mxu1 %v4952_v5 }
0x23ae   :  { %v1670_v37 = vpop.f32.mrb[18].mxu1 }
0x23af   :  { %v1681_v38 = vadd.f32 %v1670_v37, %v5048_v17  ;;  %v4316_v39 = vpop.f32.mrb[19].mxu1  ;;  %v1674_v41 = vadd.f32 %v1670_v37, %v1598_v40 }
0x23b1   :  { %1683 = vrot.lane.b32.xlu0 %v1681_v38, %s4955_s8  ;;  %v3901_v42 = vmul.f32 -1.442695, %v1674_v41  ;;  %v1916_v41 = vld [vmem:[#allocation2 + $0x70] sm:$0xff] }
0x23b3   :  { %4802 = vpow2.f32 %v3901_v42 }
0x23bd   :  { %v4803_v43 = vpop.eup %4802 }
0x23be   :  { %v1678_v45 = vadd.f32 1.0, %v4803_v43 }
0x23c0   :  { %4804 = vrcp.f32 %v1678_v45 }
0x23ca   :  { %v4805_v46 = vpop.eup %4804 }
0x2423   :  { %v1684_v12 = vpop.permute.xlu0 %1683 }
0x2424   :  { %v1686_v47 = vmul.f32 %v4805_v46, %v1684_v12 }
0x2426   :  { %1688 = vrot.lane.b32.xlu1 %v1686_v47, %s4955_s8 }
0x2498   :  { %v1689_v48 = vpop.permute.xlu1 %1688 }
0x2499   :  { %v1691_v49 = vadd.f32 %v1689_v48, %v1598_v40 }
0x249b   :  { %4806 = vtanh.f32 %v1691_v49 }
0x24a5   :  { %v4807_v50 = vpop.eup %4806 }
0x24a6   :  { %v1693_v51 = vsub.f32 %v1597_v35, %v4807_v50 }
0x24a8   :  { %1695 = vrot.lane.b32.xlu0 %v1693_v51, %s4956_s2 }
0x251a   :  { %v1696_v52 = vpop.permute.xlu0 %1695 }
0x251b   :  { %v1698_v53 = vmul.f32 %v4805_v46, %v1696_v52 }
0x251d   :  { %1700 = vrot.lane.b32.xlu1 %v1698_v53, %s4957_s9 }
0x258f   :  { %v1701_v54 = vpop.permute.xlu1 %1700 }
0x2590   :  { %v1703_v55 = vadd.f32 %v4807_v50, %v1701_v54 }
0x2592   :  { %1706 = vrot.lane.b32.xlu0 %v1703_v55, %s4955_s8 }
0x2604   :  { %v1707_v44 = vpop.permute.xlu0 %1706 }
0x2605   :  { %4326 = vmatmul.mubr.msk.f32.vlgmr.msra.gmra.mrb[36].mxu0 %vm431_vm4, %v1707_v44 }
0x2606   :  { %4623 = vmatpush3.bf16.msra.mxu0 %v5006_v6  ;;  %4347 = vmatprep.mubr.msk.f32.mxu0 %vm4953_vm2, %v4954_v10 }
0x2607   :  { %4624 = vmatprep.subr.bf16.mxu0 %v4952_v5 }
0x260a   :  { %4626 = vmatpush3.bf16.msra.mxu0 %v5021_v11 }
0x260b   :  { %4633 = vmatprep.subr.bf16.mxu0 %v4952_v5 }
0x26d8   :  { %v1776_v56 = vpop.f32.mrb[36].mxu0 }
0x26d9   :  { %v1787_v57 = vadd.f32 %v1776_v56, %v5048_v17  ;;  %v4327_v58 = vpop.f32.mrb[37].mxu0  ;;  %v1780_v60 = vadd.f32 %v1776_v56, %v1704_v59 }
0x26db   :  { %1789 = vrot.lane.b32.xlu1 %v1787_v57, %s4955_s8  ;;  %v3903_v61 = vmul.f32 -1.442695, %v1780_v60  ;;  %v2022_v60 = vld [vmem:[#allocation2 + $0x78] sm:$0xff] }
0x26dd   :  { %4808 = vpow2.f32 %v3903_v61 }
0x26e7   :  { %v4809_v62 = vpop.eup %4808 }
0x26e8   :  { %v1784_v63 = vadd.f32 1.0, %v4809_v62 }
0x26ea   :  { %4810 = vrcp.f32 %v1784_v63 }
0x26f4   :  { %v4811_v0 = vpop.eup %4810 }
0x274d   :  { %v1790_v1 = vpop.permute.xlu1 %1789 }
0x274e   :  { %v1792_v2 = vmul.f32 %v4811_v0, %v1790_v1 }
0x2750   :  { %1794 = vrot.lane.b32.xlu0 %v1792_v2, %s4955_s8 }
0x27c2   :  { %v1795_v3 = vpop.permute.xlu0 %1794 }
0x27c3   :  { %v1797_v4 = vadd.f32 %v1795_v3, %v1704_v59 }
0x27c5   :  { %4812 = vtanh.f32 %v1797_v4 }
0x27cf   :  { %v4813_v7 = vpop.eup %4812 }
0x27d0   :  { %v1799_v8 = vsub.f32 %v1703_v55, %v4813_v7 }
0x27d2   :  { %1801 = vrot.lane.b32.xlu1 %v1799_v8, %s4956_s2 }
0x2844   :  { %v1802_v9 = vpop.permute.xlu1 %1801 }
0x2845   :  { %v1804_v13 = vmul.f32 %v4811_v0, %v1802_v9 }
0x2847   :  { %1806 = vrot.lane.b32.xlu0 %v1804_v13, %s4957_s9 }
0x28b9   :  { %v1807_v14 = vpop.permute.xlu0 %1806 }
0x28ba   :  { %v1809_v15 = vadd.f32 %v4813_v7, %v1807_v14 }
0x28bc   :  { %1812 = vrot.lane.b32.xlu1 %v1809_v15, %s4955_s8 }
0x292e   :  { %v1813_v16 = vpop.permute.xlu1 %1812 }
0x292f   :  { %4337 = vmatmul.mubr.msk.f32.vlgmr.msra.gmra.mrb[20].mxu1 %vm431_vm4, %v1813_v16 }
0x2930   :  { %4629 = vmatpush3.bf16.msra.mxu1 %v5006_v6  ;;  %4358 = vmatprep.mubr.msk.f32.mxu1 %vm4953_vm2, %v4954_v10 }
0x2931   :  { %4630 = vmatprep.subr.bf16.mxu1 %v4952_v5 }
0x2934   :  { %4632 = vmatpush3.bf16.msra.mxu1 %v5021_v11 }
0x2935   :  { %4639 = vmatprep.subr.bf16.mxu1 %v4952_v5 }
0x2a02   :  { %v1882_v18 = vpop.f32.mrb[20].mxu1 }
0x2a03   :  { %v1893_v19 = vadd.f32 %v1882_v18, %v5048_v17  ;;  %v4338_v20 = vpop.f32.mrb[21].mxu1  ;;  %v1886_v22 = vadd.f32 %v1882_v18, %v1810_v21 }
0x2a05   :  { %1895 = vrot.lane.b32.xlu0 %v1893_v19, %s4955_s8  ;;  %v3905_v23 = vmul.f32 -1.442695, %v1886_v22  ;;  %v2128_v22 = vld [vmem:[#allocation2 + $0x80] sm:$0xff] }
0x2a07   :  { %4814 = vpow2.f32 %v3905_v23 }
0x2a11   :  { %v4815_v24 = vpop.eup %4814 }
0x2a12   :  { %v1890_v25 = vadd.f32 1.0, %v4815_v24 }
0x2a14   :  { %4816 = vrcp.f32 %v1890_v25 }
0x2a1e   :  { %v4817_v26 = vpop.eup %4816 }
0x2a77   :  { %v1896_v27 = vpop.permute.xlu0 %1895 }
0x2a78   :  { %v1898_v28 = vmul.f32 %v4817_v26, %v1896_v27 }
0x2a7a   :  { %1900 = vrot.lane.b32.xlu1 %v1898_v28, %s4955_s8 }
0x2aec   :  { %v1901_v29 = vpop.permute.xlu1 %1900 }
0x2aed   :  { %v1903_v30 = vadd.f32 %v1901_v29, %v1810_v21 }
0x2aef   :  { %4818 = vtanh.f32 %v1903_v30 }
0x2af9   :  { %v4819_v31 = vpop.eup %4818 }
0x2afa   :  { %v1905_v32 = vsub.f32 %v1809_v15, %v4819_v31 }
0x2afc   :  { %1907 = vrot.lane.b32.xlu0 %v1905_v32, %s4956_s2 }
0x2b6e   :  { %v1908_v33 = vpop.permute.xlu0 %1907 }
0x2b6f   :  { %v1910_v34 = vmul.f32 %v4817_v26, %v1908_v33 }
0x2b71   :  { %1912 = vrot.lane.b32.xlu1 %v1910_v34, %s4957_s9 }
0x2be3   :  { %v1913_v35 = vpop.permute.xlu1 %1912 }
0x2be4   :  { %v1915_v36 = vadd.f32 %v4819_v31, %v1913_v35 }
0x2be6   :  { %1918 = vrot.lane.b32.xlu0 %v1915_v36, %s4955_s8 }
0x2c58   :  { %v1919_v37 = vpop.permute.xlu0 %1918 }
0x2c59   :  { %4348 = vmatmul.mubr.msk.f32.vlgmr.msra.gmra.mrb[38].mxu0 %vm431_vm4, %v1919_v37 }
0x2c5a   :  { %4635 = vmatpush3.bf16.msra.mxu0 %v5006_v6  ;;  %4369 = vmatprep.mubr.msk.f32.mxu0 %vm4953_vm2, %v4954_v10 }
0x2c5b   :  { %4636 = vmatprep.subr.bf16.mxu0 %v4952_v5 }
0x2c5e   :  { %4638 = vmatpush3.bf16.msra.mxu0 %v5021_v11 }
0x2c5f   :  { %4645 = vmatprep.subr.bf16.mxu0 %v4952_v5 }
0x2d2c   :  { %v1988_v38 = vpop.f32.mrb[38].mxu0 }
0x2d2d   :  { %v1999_v39 = vadd.f32 %v1988_v38, %v5048_v17  ;;  %v4349_v40 = vpop.f32.mrb[39].mxu0  ;;  %v1992_v42 = vadd.f32 %v1988_v38, %v1916_v41 }
0x2d2f   :  { %2001 = vrot.lane.b32.xlu1 %v1999_v39, %s4955_s8  ;;  %v3907_v43 = vmul.f32 -1.442695, %v1992_v42  ;;  %v2234_v42 = vld [vmem:[#allocation2 + $0x88] sm:$0xff] }
0x2d31   :  { %4820 = vpow2.f32 %v3907_v43 }
0x2d3b   :  { %v4821_v45 = vpop.eup %4820 }
0x2d3c   :  { %v1996_v46 = vadd.f32 1.0, %v4821_v45 }
0x2d3e   :  { %4822 = vrcp.f32 %v1996_v46 }
0x2d48   :  { %v4823_v12 = vpop.eup %4822 }
0x2da1   :  { %v2002_v47 = vpop.permute.xlu1 %2001 }
0x2da2   :  { %v2004_v48 = vmul.f32 %v4823_v12, %v2002_v47 }
0x2da4   :  { %2006 = vrot.lane.b32.xlu0 %v2004_v48, %s4955_s8 }
0x2e16   :  { %v2007_v49 = vpop.permute.xlu0 %2006 }
0x2e17   :  { %v2009_v50 = vadd.f32 %v2007_v49, %v1916_v41 }
0x2e19   :  { %4824 = vtanh.f32 %v2009_v50 }
0x2e23   :  { %v4825_v51 = vpop.eup %4824 }
0x2e24   :  { %v2011_v52 = vsub.f32 %v1915_v36, %v4825_v51 }
0x2e26   :  { %2013 = vrot.lane.b32.xlu1 %v2011_v52, %s4956_s2 }
0x2e98   :  { %v2014_v53 = vpop.permute.xlu1 %2013 }
0x2e99   :  { %v2016_v54 = vmul.f32 %v4823_v12, %v2014_v53 }
0x2e9b   :  { %2018 = vrot.lane.b32.xlu0 %v2016_v54, %s4957_s9 }
0x2f0d   :  { %v2019_v55 = vpop.permute.xlu0 %2018 }
0x2f0e   :  { %v2021_v44 = vadd.f32 %v4825_v51, %v2019_v55 }
0x2f10   :  { %2024 = vrot.lane.b32.xlu1 %v2021_v44, %s4955_s8 }
0x2f82   :  { %v2025_v56 = vpop.permute.xlu1 %2024 }
0x2f83   :  { %4359 = vmatmul.mubr.msk.f32.vlgmr.msra.gmra.mrb[22].mxu1 %vm431_vm4, %v2025_v56 }
0x2f84   :  { %4641 = vmatpush3.bf16.msra.mxu1 %v5006_v6  ;;  %4380 = vmatprep.mubr.msk.f32.mxu1 %vm4953_vm2, %v4954_v10 }
0x2f85   :  { %4642 = vmatprep.subr.bf16.mxu1 %v4952_v5 }
0x2f88   :  { %4644 = vmatpush3.bf16.msra.mxu1 %v5021_v11 }
0x2f89   :  { %4651 = vmatprep.subr.bf16.mxu1 %v4952_v5 }
0x3056   :  { %v2094_v57 = vpop.f32.mrb[22].mxu1 }
0x3057   :  { %v2105_v58 = vadd.f32 %v2094_v57, %v5048_v17  ;;  %v4360_v59 = vpop.f32.mrb[23].mxu1  ;;  %v2098_v61 = vadd.f32 %v2094_v57, %v2022_v60 }
0x3059   :  { %2107 = vrot.lane.b32.xlu0 %v2105_v58, %s4955_s8  ;;  %v3909_v62 = vmul.f32 -1.442695, %v2098_v61  ;;  %v2340_v61 = vld [vmem:[#allocation2 + $0x90] sm:$0xff] }
0x305b   :  { %4826 = vpow2.f32 %v3909_v62 }
0x3065   :  { %v4827_v63 = vpop.eup %4826 }
0x3066   :  { %v2102_v0 = vadd.f32 1.0, %v4827_v63 }
0x3068   :  { %4828 = vrcp.f32 %v2102_v0 }
0x3072   :  { %v4829_v1 = vpop.eup %4828 }
0x30cb   :  { %v2108_v2 = vpop.permute.xlu0 %2107 }
0x30cc   :  { %v2110_v3 = vmul.f32 %v4829_v1, %v2108_v2 }
0x30ce   :  { %2112 = vrot.lane.b32.xlu1 %v2110_v3, %s4955_s8 }
0x3140   :  { %v2113_v4 = vpop.permute.xlu1 %2112 }
0x3141   :  { %v2115_v7 = vadd.f32 %v2113_v4, %v2022_v60 }
0x3143   :  { %4830 = vtanh.f32 %v2115_v7 }
0x314d   :  { %v4831_v8 = vpop.eup %4830 }
0x314e   :  { %v2117_v9 = vsub.f32 %v2021_v44, %v4831_v8 }
0x3150   :  { %2119 = vrot.lane.b32.xlu0 %v2117_v9, %s4956_s2 }
0x31c2   :  { %v2120_v13 = vpop.permute.xlu0 %2119 }
0x31c3   :  { %v2122_v14 = vmul.f32 %v4829_v1, %v2120_v13 }
0x31c5   :  { %2124 = vrot.lane.b32.xlu1 %v2122_v14, %s4957_s9 }
0x3237   :  { %v2125_v15 = vpop.permute.xlu1 %2124 }
0x3238   :  { %v2127_v16 = vadd.f32 %v4831_v8, %v2125_v15 }
0x323a   :  { %2130 = vrot.lane.b32.xlu0 %v2127_v16, %s4955_s8 }
0x32ac   :  { %v2131_v18 = vpop.permute.xlu0 %2130 }
0x32ad   :  { %4370 = vmatmul.mubr.msk.f32.vlgmr.msra.gmra.mrb[40].mxu0 %vm431_vm4, %v2131_v18 }
0x32ae   :  { %4647 = vmatpush3.bf16.msra.mxu0 %v5006_v6  ;;  %4391 = vmatprep.mubr.msk.f32.mxu0 %vm4953_vm2, %v4954_v10 }
0x32af   :  { %4648 = vmatprep.subr.bf16.mxu0 %v4952_v5 }
0x32b2   :  { %4650 = vmatpush3.bf16.msra.mxu0 %v5021_v11 }
0x32b3   :  { %4657 = vmatprep.subr.bf16.mxu0 %v4952_v5 }
0x3380   :  { %v2200_v19 = vpop.f32.mrb[40].mxu0 }
0x3381   :  { %v2211_v20 = vadd.f32 %v2200_v19, %v5048_v17  ;;  %v4371_v21 = vpop.f32.mrb[41].mxu0  ;;  %v2204_v23 = vadd.f32 %v2200_v19, %v2128_v22 }
0x3383   :  { %2213 = vrot.lane.b32.xlu1 %v2211_v20, %s4955_s8  ;;  %v3911_v24 = vmul.f32 -1.442695, %v2204_v23  ;;  %v2446_v23 = vld [vmem:[#allocation2 + $0x98] sm:$0xff] }
0x3385   :  { %4832 = vpow2.f32 %v3911_v24 }
0x338f   :  { %v4833_v25 = vpop.eup %4832 }
0x3390   :  { %v2208_v26 = vadd.f32 1.0, %v4833_v25 }
0x3392   :  { %4834 = vrcp.f32 %v2208_v26 }
0x339c   :  { %v4835_v27 = vpop.eup %4834 }
0x33f5   :  { %v2214_v28 = vpop.permute.xlu1 %2213 }
0x33f6   :  { %v2216_v29 = vmul.f32 %v4835_v27, %v2214_v28 }
0x33f8   :  { %2218 = vrot.lane.b32.xlu0 %v2216_v29, %s4955_s8 }
0x346a   :  { %v2219_v30 = vpop.permute.xlu0 %2218 }
0x346b   :  { %v2221_v31 = vadd.f32 %v2219_v30, %v2128_v22 }
0x346d   :  { %4836 = vtanh.f32 %v2221_v31 }
0x3477   :  { %v4837_v32 = vpop.eup %4836 }
0x3478   :  { %v2223_v33 = vsub.f32 %v2127_v16, %v4837_v32 }
0x347a   :  { %2225 = vrot.lane.b32.xlu1 %v2223_v33, %s4956_s2 }
0x34ec   :  { %v2226_v34 = vpop.permute.xlu1 %2225 }
0x34ed   :  { %v2228_v35 = vmul.f32 %v4835_v27, %v2226_v34 }
0x34ef   :  { %2230 = vrot.lane.b32.xlu0 %v2228_v35, %s4957_s9 }
0x3561   :  { %v2231_v36 = vpop.permute.xlu0 %2230 }
0x3562   :  { %v2233_v37 = vadd.f32 %v4837_v32, %v2231_v36 }
0x3564   :  { %2236 = vrot.lane.b32.xlu1 %v2233_v37, %s4955_s8 }
0x35d6   :  { %v2237_v38 = vpop.permute.xlu1 %2236 }
0x35d7   :  { %4381 = vmatmul.mubr.msk.f32.vlgmr.msra.gmra.mrb[24].mxu1 %vm431_vm4, %v2237_v38 }
0x35d8   :  { %4653 = vmatpush3.bf16.msra.mxu1 %v5006_v6  ;;  %4402 = vmatprep.mubr.msk.f32.mxu1 %vm4953_vm2, %v4954_v10 }
0x35d9   :  { %4654 = vmatprep.subr.bf16.mxu1 %v4952_v5 }
0x35dc   :  { %4656 = vmatpush3.bf16.msra.mxu1 %v5021_v11 }
0x35dd   :  { %4663 = vmatprep.subr.bf16.mxu1 %v4952_v5 }
0x36aa   :  { %v2306_v39 = vpop.f32.mrb[24].mxu1 }
0x36ab   :  { %v2317_v40 = vadd.f32 %v2306_v39, %v5048_v17  ;;  %v4382_v41 = vpop.f32.mrb[25].mxu1  ;;  %v2310_v43 = vadd.f32 %v2306_v39, %v2234_v42 }
0x36ad   :  { %2319 = vrot.lane.b32.xlu0 %v2317_v40, %s4955_s8  ;;  %v3913_v45 = vmul.f32 -1.442695, %v2310_v43  ;;  %v2552_v43 = vld [vmem:[#allocation2 + $0xa0] sm:$0xff] }
0x36af   :  { %4838 = vpow2.f32 %v3913_v45 }
0x36b9   :  { %v4839_v46 = vpop.eup %4838 }
0x36ba   :  { %v2314_v12 = vadd.f32 1.0, %v4839_v46 }
0x36bc   :  { %4840 = vrcp.f32 %v2314_v12 }
0x36c6   :  { %v4841_v47 = vpop.eup %4840 }
0x371f   :  { %v2320_v48 = vpop.permute.xlu0 %2319 }
0x3720   :  { %v2322_v49 = vmul.f32 %v4841_v47, %v2320_v48 }
0x3722   :  { %2324 = vrot.lane.b32.xlu1 %v2322_v49, %s4955_s8 }
0x3794   :  { %v2325_v50 = vpop.permute.xlu1 %2324 }
0x3795   :  { %v2327_v51 = vadd.f32 %v2325_v50, %v2234_v42 }
0x3797   :  { %4842 = vtanh.f32 %v2327_v51 }
0x37a1   :  { %v4843_v52 = vpop.eup %4842 }
0x37a2   :  { %v2329_v53 = vsub.f32 %v2233_v37, %v4843_v52 }
0x37a4   :  { %2331 = vrot.lane.b32.xlu0 %v2329_v53, %s4956_s2 }
0x3816   :  { %v2332_v54 = vpop.permute.xlu0 %2331 }
0x3817   :  { %v2334_v55 = vmul.f32 %v4841_v47, %v2332_v54 }
0x3819   :  { %2336 = vrot.lane.b32.xlu1 %v2334_v55, %s4957_s9 }
0x388b   :  { %v2337_v44 = vpop.permute.xlu1 %2336 }
0x388c   :  { %v2339_v56 = vadd.f32 %v4843_v52, %v2337_v44 }
0x388e   :  { %2342 = vrot.lane.b32.xlu0 %v2339_v56, %s4955_s8 }
0x3900   :  { %v2343_v57 = vpop.permute.xlu0 %2342 }
0x3901   :  { %4392 = vmatmul.mubr.msk.f32.vlgmr.msra.gmra.mrb[42].mxu0 %vm431_vm4, %v2343_v57 }
0x3902   :  { %4659 = vmatpush3.bf16.msra.mxu0 %v5006_v6  ;;  %4413 = vmatprep.mubr.msk.f32.mxu0 %vm4953_vm2, %v4954_v10 }
0x3903   :  { %4660 = vmatprep.subr.bf16.mxu0 %v4952_v5 }
0x3906   :  { %4662 = vmatpush3.bf16.msra.mxu0 %v5021_v11 }
0x3907   :  { %4669 = vmatprep.subr.bf16.mxu0 %v4952_v5 }
0x39d4   :  { %v2412_v58 = vpop.f32.mrb[42].mxu0 }
0x39d5   :  { %v2423_v59 = vadd.f32 %v2412_v58, %v5048_v17  ;;  %v4393_v60 = vpop.f32.mrb[43].mxu0  ;;  %v2416_v62 = vadd.f32 %v2412_v58, %v2340_v61 }
0x39d7   :  { %2425 = vrot.lane.b32.xlu1 %v2423_v59, %s4955_s8  ;;  %v3915_v63 = vmul.f32 -1.442695, %v2416_v62  ;;  %v2658_v62 = vld [vmem:[#allocation2 + $0xa8] sm:$0xff] }
0x39d9   :  { %4844 = vpow2.f32 %v3915_v63 }
0x39e3   :  { %v4845_v0 = vpop.eup %4844 }
0x39e4   :  { %v2420_v1 = vadd.f32 1.0, %v4845_v0 }
0x39e6   :  { %4846 = vrcp.f32 %v2420_v1 }
0x39f0   :  { %v4847_v2 = vpop.eup %4846 }
0x3a49   :  { %v2426_v3 = vpop.permute.xlu1 %2425 }
0x3a4a   :  { %v2428_v4 = vmul.f32 %v4847_v2, %v2426_v3 }
0x3a4c   :  { %2430 = vrot.lane.b32.xlu0 %v2428_v4, %s4955_s8 }
0x3abe   :  { %v2431_v7 = vpop.permute.xlu0 %2430 }
0x3abf   :  { %v2433_v8 = vadd.f32 %v2431_v7, %v2340_v61 }
0x3ac1   :  { %4848 = vtanh.f32 %v2433_v8 }
0x3acb   :  { %v4849_v9 = vpop.eup %4848 }
0x3acc   :  { %v2435_v13 = vsub.f32 %v2339_v56, %v4849_v9 }
0x3ace   :  { %2437 = vrot.lane.b32.xlu1 %v2435_v13, %s4956_s2 }
0x3b40   :  { %v2438_v14 = vpop.permute.xlu1 %2437 }
0x3b41   :  { %v2440_v15 = vmul.f32 %v4847_v2, %v2438_v14 }
0x3b43   :  { %2442 = vrot.lane.b32.xlu0 %v2440_v15, %s4957_s9 }
0x3bb5   :  { %v2443_v16 = vpop.permute.xlu0 %2442 }
0x3bb6   :  { %v2445_v18 = vadd.f32 %v4849_v9, %v2443_v16 }
0x3bb8   :  { %2448 = vrot.lane.b32.xlu1 %v2445_v18, %s4955_s8 }
0x3c2a   :  { %v2449_v19 = vpop.permute.xlu1 %2448 }
0x3c2b   :  { %4403 = vmatmul.mubr.msk.f32.vlgmr.msra.gmra.mrb[26].mxu1 %vm431_vm4, %v2449_v19 }
0x3c2c   :  { %4665 = vmatpush3.bf16.msra.mxu1 %v5006_v6  ;;  %4424 = vmatprep.mubr.msk.f32.mxu1 %vm4953_vm2, %v4954_v10 }
0x3c2d   :  { %4666 = vmatprep.subr.bf16.mxu1 %v4952_v5 }
0x3c30   :  { %4668 = vmatpush3.bf16.msra.mxu1 %v5021_v11 }
0x3c31   :  { %4675 = vmatprep.subr.bf16.mxu1 %v4952_v5 }
0x3cfe   :  { %v2518_v20 = vpop.f32.mrb[26].mxu1 }
0x3cff   :  { %v2529_v21 = vadd.f32 %v2518_v20, %v5048_v17  ;;  %v4404_v22 = vpop.f32.mrb[27].mxu1  ;;  %v2522_v24 = vadd.f32 %v2518_v20, %v2446_v23 }
0x3d01   :  { %2531 = vrot.lane.b32.xlu0 %v2529_v21, %s4955_s8  ;;  %v3917_v25 = vmul.f32 -1.442695, %v2522_v24  ;;  %v2764_v24 = vld [vmem:[#allocation2 + $0xb0] sm:$0xff] }
0x3d03   :  { %4850 = vpow2.f32 %v3917_v25 }
0x3d0d   :  { %v4851_v26 = vpop.eup %4850 }
0x3d0e   :  { %v2526_v27 = vadd.f32 1.0, %v4851_v26 }
0x3d10   :  { %4852 = vrcp.f32 %v2526_v27 }
0x3d1a   :  { %v4853_v28 = vpop.eup %4852 }
0x3d73   :  { %v2532_v29 = vpop.permute.xlu0 %2531 }
0x3d74   :  { %v2534_v30 = vmul.f32 %v4853_v28, %v2532_v29 }
0x3d76   :  { %2536 = vrot.lane.b32.xlu1 %v2534_v30, %s4955_s8 }
0x3de8   :  { %v2537_v31 = vpop.permute.xlu1 %2536 }
0x3de9   :  { %v2539_v32 = vadd.f32 %v2537_v31, %v2446_v23 }
0x3deb   :  { %4854 = vtanh.f32 %v2539_v32 }
0x3df5   :  { %v4855_v33 = vpop.eup %4854 }
0x3df6   :  { %v2541_v34 = vsub.f32 %v2445_v18, %v4855_v33 }
0x3df8   :  { %2543 = vrot.lane.b32.xlu0 %v2541_v34, %s4956_s2 }
0x3e6a   :  { %v2544_v35 = vpop.permute.xlu0 %2543 }
0x3e6b   :  { %v2546_v36 = vmul.f32 %v4853_v28, %v2544_v35 }
0x3e6d   :  { %2548 = vrot.lane.b32.xlu1 %v2546_v36, %s4957_s9 }
0x3edf   :  { %v2549_v37 = vpop.permute.xlu1 %2548 }
0x3ee0   :  { %v2551_v38 = vadd.f32 %v4855_v33, %v2549_v37 }
0x3ee2   :  { %2554 = vrot.lane.b32.xlu0 %v2551_v38, %s4955_s8 }
0x3f54   :  { %v2555_v39 = vpop.permute.xlu0 %2554 }
0x3f55   :  { %4414 = vmatmul.mubr.msk.f32.vlgmr.msra.gmra.mrb[44].mxu0 %vm431_vm4, %v2555_v39 }
0x3f56   :  { %4671 = vmatpush3.bf16.msra.mxu0 %v5006_v6  ;;  %4435 = vmatprep.mubr.msk.f32.mxu0 %vm4953_vm2, %v4954_v10 }
0x3f57   :  { %4672 = vmatprep.subr.bf16.mxu0 %v4952_v5 }
0x3f5a   :  { %4674 = vmatpush3.bf16.msra.mxu0 %v5021_v11 }
0x3f5b   :  { %4681 = vmatprep.subr.bf16.mxu0 %v4952_v5 }
0x4028   :  { %v2624_v40 = vpop.f32.mrb[44].mxu0 }
0x4029   :  { %v2635_v41 = vadd.f32 %v2624_v40, %v5048_v17  ;;  %v4415_v42 = vpop.f32.mrb[45].mxu0  ;;  %v2628_v45 = vadd.f32 %v2624_v40, %v2552_v43 }
0x402b   :  { %2637 = vrot.lane.b32.xlu1 %v2635_v41, %s4955_s8  ;;  %v3919_v46 = vmul.f32 -1.442695, %v2628_v45  ;;  %v2870_v45 = vld [vmem:[#allocation2 + $0xb8] sm:$0xff] }
0x402d   :  { %4856 = vpow2.f32 %v3919_v46 }
0x4037   :  { %v4857_v12 = vpop.eup %4856 }
0x4038   :  { %v2632_v47 = vadd.f32 1.0, %v4857_v12 }
0x403a   :  { %4858 = vrcp.f32 %v2632_v47 }
0x4044   :  { %v4859_v48 = vpop.eup %4858 }
0x409d   :  { %v2638_v49 = vpop.permute.xlu1 %2637 }
0x409e   :  { %v2640_v50 = vmul.f32 %v4859_v48, %v2638_v49 }
0x40a0   :  { %2642 = vrot.lane.b32.xlu0 %v2640_v50, %s4955_s8 }
0x4112   :  { %v2643_v51 = vpop.permute.xlu0 %2642 }
0x4113   :  { %v2645_v52 = vadd.f32 %v2643_v51, %v2552_v43 }
0x4115   :  { %4860 = vtanh.f32 %v2645_v52 }
0x411f   :  { %v4861_v53 = vpop.eup %4860 }
0x4120   :  { %v2647_v54 = vsub.f32 %v2551_v38, %v4861_v53 }
0x4122   :  { %2649 = vrot.lane.b32.xlu1 %v2647_v54, %s4956_s2 }
0x4194   :  { %v2650_v55 = vpop.permute.xlu1 %2649 }
0x4195   :  { %v2652_v44 = vmul.f32 %v4859_v48, %v2650_v55 }
0x4197   :  { %2654 = vrot.lane.b32.xlu0 %v2652_v44, %s4957_s9 }
0x4209   :  { %v2655_v56 = vpop.permute.xlu0 %2654 }
0x420a   :  { %v2657_v57 = vadd.f32 %v4861_v53, %v2655_v56 }
0x420c   :  { %2660 = vrot.lane.b32.xlu1 %v2657_v57, %s4955_s8 }
0x427e   :  { %v2661_v58 = vpop.permute.xlu1 %2660 }
0x427f   :  { %4425 = vmatmul.mubr.msk.f32.vlgmr.msra.gmra.mrb[28].mxu1 %vm431_vm4, %v2661_v58 }
0x4280   :  { %4677 = vmatpush3.bf16.msra.mxu1 %v5006_v6  ;;  %4446 = vmatprep.mubr.msk.f32.mxu1 %vm4953_vm2, %v4954_v10 }
0x4281   :  { %4678 = vmatprep.subr.bf16.mxu1 %v4952_v5 }
0x4284   :  { %4680 = vmatpush3.bf16.msra.mxu1 %v5021_v11 }
0x4285   :  { %4687 = vmatprep.subr.bf16.mxu1 %v4952_v5 }
0x4352   :  { %v2730_v59 = vpop.f32.mrb[28].mxu1 }
0x4353   :  { %v2741_v60 = vadd.f32 %v2730_v59, %v5048_v17  ;;  %v4426_v61 = vpop.f32.mrb[29].mxu1  ;;  %v2734_v63 = vadd.f32 %v2730_v59, %v2658_v62 }
0x4355   :  { %2743 = vrot.lane.b32.xlu0 %v2741_v60, %s4955_s8  ;;  %v3921_v0 = vmul.f32 -1.442695, %v2734_v63  ;;  %v2976_v63 = vld [vmem:[#allocation2 + $0xc0] sm:$0xff] }
0x4357   :  { %4862 = vpow2.f32 %v3921_v0 }
0x4361   :  { %v4863_v1 = vpop.eup %4862 }
0x4362   :  { %v2738_v2 = vadd.f32 1.0, %v4863_v1 }
0x4364   :  { %4864 = vrcp.f32 %v2738_v2 }
0x436e   :  { %v4865_v3 = vpop.eup %4864 }
0x43c7   :  { %v2744_v4 = vpop.permute.xlu0 %2743 }
0x43c8   :  { %v2746_v7 = vmul.f32 %v4865_v3, %v2744_v4 }
0x43ca   :  { %2748 = vrot.lane.b32.xlu1 %v2746_v7, %s4955_s8 }
0x443c   :  { %v2749_v8 = vpop.permute.xlu1 %2748 }
0x443d   :  { %v2751_v9 = vadd.f32 %v2749_v8, %v2658_v62 }
0x443f   :  { %4866 = vtanh.f32 %v2751_v9 }
0x4449   :  { %v4867_v13 = vpop.eup %4866 }
0x444a   :  { %v2753_v14 = vsub.f32 %v2657_v57, %v4867_v13 }
0x444c   :  { %2755 = vrot.lane.b32.xlu0 %v2753_v14, %s4956_s2 }
0x44be   :  { %v2756_v15 = vpop.permute.xlu0 %2755 }
0x44bf   :  { %v2758_v16 = vmul.f32 %v4865_v3, %v2756_v15 }
0x44c1   :  { %2760 = vrot.lane.b32.xlu1 %v2758_v16, %s4957_s9 }
0x4533   :  { %v2761_v18 = vpop.permute.xlu1 %2760 }
0x4534   :  { %v2763_v19 = vadd.f32 %v4867_v13, %v2761_v18 }
0x4536   :  { %2766 = vrot.lane.b32.xlu0 %v2763_v19, %s4955_s8 }
0x45a8   :  { %v2767_v20 = vpop.permute.xlu0 %2766 }
0x45a9   :  { %4436 = vmatmul.mubr.msk.f32.vlgmr.msra.gmra.mrb[46].mxu0 %vm431_vm4, %v2767_v20 }
0x45aa   :  { %4683 = vmatpush3.bf16.msra.mxu0 %v5006_v6  ;;  %4457 = vmatprep.mubr.msk.f32.mxu0 %vm4953_vm2, %v4954_v10 }
0x45ab   :  { %4684 = vmatprep.subr.bf16.mxu0 %v4952_v5 }
0x45ae   :  { %4686 = vmatpush3.bf16.msra.mxu0 %v5021_v11 }
0x45af   :  { %4693 = vmatprep.subr.bf16.mxu0 %v4952_v5 }
0x467c   :  { %v2836_v21 = vpop.f32.mrb[46].mxu0 }
0x467d   :  { %v2847_v22 = vadd.f32 %v2836_v21, %v5048_v17  ;;  %v4437_v23 = vpop.f32.mrb[47].mxu0  ;;  %v2840_v25 = vadd.f32 %v2836_v21, %v2764_v24 }
0x467f   :  { %2849 = vrot.lane.b32.xlu1 %v2847_v22, %s4955_s8  ;;  %v3923_v26 = vmul.f32 -1.442695, %v2840_v25  ;;  %v3082_v25 = vld [vmem:[#allocation2 + $0xc8] sm:$0xff] }
0x4681   :  { %4868 = vpow2.f32 %v3923_v26 }
0x468b   :  { %v4869_v27 = vpop.eup %4868 }
0x468c   :  { %v2844_v28 = vadd.f32 1.0, %v4869_v27 }
0x468e   :  { %4870 = vrcp.f32 %v2844_v28 }
0x4698   :  { %v4871_v29 = vpop.eup %4870 }
0x46f1   :  { %v2850_v30 = vpop.permute.xlu1 %2849 }
0x46f2   :  { %v2852_v31 = vmul.f32 %v4871_v29, %v2850_v30 }
0x46f4   :  { %2854 = vrot.lane.b32.xlu0 %v2852_v31, %s4955_s8 }
0x4766   :  { %v2855_v32 = vpop.permute.xlu0 %2854 }
0x4767   :  { %v2857_v33 = vadd.f32 %v2855_v32, %v2764_v24 }
0x4769   :  { %4872 = vtanh.f32 %v2857_v33 }
0x4773   :  { %v4873_v34 = vpop.eup %4872 }
0x4774   :  { %v2859_v35 = vsub.f32 %v2763_v19, %v4873_v34 }
0x4776   :  { %2861 = vrot.lane.b32.xlu1 %v2859_v35, %s4956_s2 }
0x47e8   :  { %v2862_v36 = vpop.permute.xlu1 %2861 }
0x47e9   :  { %v2864_v37 = vmul.f32 %v4871_v29, %v2862_v36 }
0x47eb   :  { %2866 = vrot.lane.b32.xlu0 %v2864_v37, %s4957_s9 }
0x485d   :  { %v2867_v38 = vpop.permute.xlu0 %2866 }
0x485e   :  { %v2869_v39 = vadd.f32 %v4873_v34, %v2867_v38 }
0x4860   :  { %2872 = vrot.lane.b32.xlu1 %v2869_v39, %s4955_s8 }
0x48d2   :  { %v2873_v40 = vpop.permute.xlu1 %2872 }
0x48d3   :  { %4447 = vmatmul.mubr.msk.f32.vlgmr.msra.gmra.mrb[30].mxu1 %vm431_vm4, %v2873_v40 }
0x48d4   :  { %4689 = vmatpush3.bf16.msra.mxu1 %v5006_v6  ;;  %4468 = vmatprep.mubr.msk.f32.mxu1 %vm4953_vm2, %v4954_v10 }
0x48d5   :  { %4690 = vmatprep.subr.bf16.mxu1 %v4952_v5 }
0x48d8   :  { %4692 = vmatpush3.bf16.msra.mxu1 %v5021_v11 }
0x48d9   :  { %4699 = vmatprep.subr.bf16.mxu1 %v4952_v5 }
0x49a6   :  { %v2942_v41 = vpop.f32.mrb[30].mxu1 }
0x49a7   :  { %v2953_v42 = vadd.f32 %v2942_v41, %v5048_v17  ;;  %v4448_v43 = vpop.f32.mrb[31].mxu1  ;;  %v2946_v46 = vadd.f32 %v2942_v41, %v2870_v45 }
0x49a9   :  { %2955 = vrot.lane.b32.xlu0 %v2953_v42, %s4955_s8  ;;  %v3925_v12 = vmul.f32 -1.442695, %v2946_v46  ;;  %v3188_v46 = vld [vmem:[#allocation2 + $0xd0] sm:$0xff] }
0x49ab   :  { %4874 = vpow2.f32 %v3925_v12 }
0x49b5   :  { %v4875_v47 = vpop.eup %4874 }
0x49b6   :  { %v2950_v48 = vadd.f32 1.0, %v4875_v47 }
0x49b8   :  { %4876 = vrcp.f32 %v2950_v48 }
0x49c2   :  { %v4877_v49 = vpop.eup %4876 }
0x4a1b   :  { %v2956_v50 = vpop.permute.xlu0 %2955 }
0x4a1c   :  { %v2958_v51 = vmul.f32 %v4877_v49, %v2956_v50 }
0x4a1e   :  { %2960 = vrot.lane.b32.xlu1 %v2958_v51, %s4955_s8 }
0x4a90   :  { %v2961_v52 = vpop.permute.xlu1 %2960 }
0x4a91   :  { %v2963_v53 = vadd.f32 %v2961_v52, %v2870_v45 }
0x4a93   :  { %4878 = vtanh.f32 %v2963_v53 }
0x4a9d   :  { %v4879_v54 = vpop.eup %4878 }
0x4a9e   :  { %v2965_v55 = vsub.f32 %v2869_v39, %v4879_v54 }
0x4aa0   :  { %2967 = vrot.lane.b32.xlu0 %v2965_v55, %s4956_s2 }
0x4b12   :  { %v2968_v44 = vpop.permute.xlu0 %2967 }
0x4b13   :  { %v2970_v56 = vmul.f32 %v4877_v49, %v2968_v44 }
0x4b15   :  { %2972 = vrot.lane.b32.xlu1 %v2970_v56, %s4957_s9 }
0x4b87   :  { %v2973_v57 = vpop.permute.xlu1 %2972 }
0x4b88   :  { %v2975_v58 = vadd.f32 %v4879_v54, %v2973_v57 }
0x4b8a   :  { %2978 = vrot.lane.b32.xlu0 %v2975_v58, %s4955_s8 }
0x4bfc   :  { %v2979_v59 = vpop.permute.xlu0 %2978 }
0x4bfd   :  { %4458 = vmatmul.mubr.msk.f32.vlgmr.msra.gmra.mrb[48].mxu0 %vm431_vm4, %v2979_v59 }
0x4bfe   :  { %4695 = vmatpush3.bf16.msra.mxu0 %v5006_v6  ;;  %4479 = vmatprep.mubr.msk.f32.mxu0 %vm4953_vm2, %v4954_v10 }
0x4bff   :  { %4696 = vmatprep.subr.bf16.mxu0 %v4952_v5 }
0x4c02   :  { %4698 = vmatpush3.bf16.msra.mxu0 %v5021_v11 }
0x4c03   :  { %4705 = vmatprep.subr.bf16.mxu0 %v4952_v5 }
0x4cd0   :  { %v3048_v60 = vpop.f32.mrb[48].mxu0 }
0x4cd1   :  { %v3059_v61 = vadd.f32 %v3048_v60, %v5048_v17  ;;  %v4459_v62 = vpop.f32.mrb[49].mxu0  ;;  %v3052_v0 = vadd.f32 %v3048_v60, %v2976_v63 }
0x4cd3   :  { %3061 = vrot.lane.b32.xlu1 %v3059_v61, %s4955_s8  ;;  %v3927_v1 = vmul.f32 -1.442695, %v3052_v0  ;;  %v3294_v0 = vld [vmem:[#allocation2 + $0xd8] sm:$0xff] }
0x4cd5   :  { %4880 = vpow2.f32 %v3927_v1 }
0x4cdf   :  { %v4881_v2 = vpop.eup %4880 }
0x4ce0   :  { %v3056_v3 = vadd.f32 1.0, %v4881_v2 }
0x4ce2   :  { %4882 = vrcp.f32 %v3056_v3 }
0x4cec   :  { %v4883_v4 = vpop.eup %4882 }
0x4d45   :  { %v3062_v7 = vpop.permute.xlu1 %3061 }
0x4d46   :  { %v3064_v8 = vmul.f32 %v4883_v4, %v3062_v7 }
0x4d48   :  { %3066 = vrot.lane.b32.xlu0 %v3064_v8, %s4955_s8 }
0x4dba   :  { %v3067_v9 = vpop.permute.xlu0 %3066 }
0x4dbb   :  { %v3069_v13 = vadd.f32 %v3067_v9, %v2976_v63 }
0x4dbd   :  { %4884 = vtanh.f32 %v3069_v13 }
0x4dc7   :  { %v4885_v14 = vpop.eup %4884 }
0x4dc8   :  { %v3071_v15 = vsub.f32 %v2975_v58, %v4885_v14 }
0x4dca   :  { %3073 = vrot.lane.b32.xlu1 %v3071_v15, %s4956_s2 }
0x4e3c   :  { %v3074_v16 = vpop.permute.xlu1 %3073 }
0x4e3d   :  { %v3076_v18 = vmul.f32 %v4883_v4, %v3074_v16 }
0x4e3f   :  { %3078 = vrot.lane.b32.xlu0 %v3076_v18, %s4957_s9 }
0x4eb1   :  { %v3079_v19 = vpop.permute.xlu0 %3078 }
0x4eb2   :  { %v3081_v20 = vadd.f32 %v4885_v14, %v3079_v19 }
0x4eb4   :  { %3084 = vrot.lane.b32.xlu1 %v3081_v20, %s4955_s8 }
0x4f26   :  { %v3085_v21 = vpop.permute.xlu1 %3084 }
0x4f27   :  { %4469 = vmatmul.mubr.msk.f32.vlgmr.msra.gmra.mrb[32].mxu1 %vm431_vm4, %v3085_v21 }
0x4f28   :  { %4701 = vmatpush3.bf16.msra.mxu1 %v5006_v6  ;;  %4490 = vmatprep.mubr.msk.f32.mxu1 %vm4953_vm2, %v4954_v10 }
0x4f29   :  { %4702 = vmatprep.subr.bf16.mxu1 %v4952_v5 }
0x4f2c   :  { %4704 = vmatpush3.bf16.msra.mxu1 %v5021_v11 }
0x4f2d   :  { %4711 = vmatprep.subr.bf16.mxu1 %v4952_v5 }
0x4ffa   :  { %v3154_v22 = vpop.f32.mrb[32].mxu1 }
0x4ffb   :  { %v3165_v23 = vadd.f32 %v3154_v22, %v5048_v17  ;;  %v4470_v24 = vpop.f32.mrb[33].mxu1  ;;  %v3158_v26 = vadd.f32 %v3154_v22, %v3082_v25 }
0x4ffd   :  { %3167 = vrot.lane.b32.xlu0 %v3165_v23, %s4955_s8  ;;  %v3929_v27 = vmul.f32 -1.442695, %v3158_v26  ;;  %v3400_v26 = vld [vmem:[#allocation2 + $0xe0] sm:$0xff] }
0x4fff   :  { %4886 = vpow2.f32 %v3929_v27 }
0x5009   :  { %v4887_v28 = vpop.eup %4886 }
0x500a   :  { %v3162_v29 = vadd.f32 1.0, %v4887_v28 }
0x500c   :  { %4888 = vrcp.f32 %v3162_v29 }
0x5016   :  { %v4889_v30 = vpop.eup %4888 }
0x506f   :  { %v3168_v31 = vpop.permute.xlu0 %3167 }
0x5070   :  { %v3170_v32 = vmul.f32 %v4889_v30, %v3168_v31 }
0x5072   :  { %3172 = vrot.lane.b32.xlu1 %v3170_v32, %s4955_s8 }
0x50e4   :  { %v3173_v33 = vpop.permute.xlu1 %3172 }
0x50e5   :  { %v3175_v34 = vadd.f32 %v3173_v33, %v3082_v25 }
0x50e7   :  { %4890 = vtanh.f32 %v3175_v34 }
0x50f1   :  { %v4891_v35 = vpop.eup %4890 }
0x50f2   :  { %v3177_v36 = vsub.f32 %v3081_v20, %v4891_v35 }
0x50f4   :  { %3179 = vrot.lane.b32.xlu0 %v3177_v36, %s4956_s2 }
0x5166   :  { %v3180_v37 = vpop.permute.xlu0 %3179 }
0x5167   :  { %v3182_v38 = vmul.f32 %v4889_v30, %v3180_v37 }
0x5169   :  { %3184 = vrot.lane.b32.xlu1 %v3182_v38, %s4957_s9 }
0x51db   :  { %v3185_v39 = vpop.permute.xlu1 %3184 }
0x51dc   :  { %v3187_v40 = vadd.f32 %v4891_v35, %v3185_v39 }
0x51de   :  { %3190 = vrot.lane.b32.xlu0 %v3187_v40, %s4955_s8 }
0x5250   :  { %v3191_v41 = vpop.permute.xlu0 %3190 }
0x5251   :  { %4480 = vmatmul.mubr.msk.f32.vlgmr.msra.gmra.mrb[50].mxu0 %vm431_vm4, %v3191_v41 }
0x5252   :  { %4707 = vmatpush3.bf16.msra.mxu0 %v5006_v6  ;;  %4501 = vmatprep.mubr.msk.f32.mxu0 %vm4953_vm2, %v4954_v10 }
0x5253   :  { %4708 = vmatprep.subr.bf16.mxu0 %v4952_v5 }
0x5256   :  { %4710 = vmatpush3.bf16.msra.mxu0 %v5021_v11 }
0x5257   :  { %4717 = vmatprep.subr.bf16.mxu0 %v4952_v5 }
0x5324   :  { %v3260_v42 = vpop.f32.mrb[50].mxu0 }
0x5325   :  { %v3271_v43 = vadd.f32 %v3260_v42, %v5048_v17  ;;  %v4481_v45 = vpop.f32.mrb[51].mxu0  ;;  %v3264_v12 = vadd.f32 %v3260_v42, %v3188_v46 }
0x5327   :  { %3273 = vrot.lane.b32.xlu1 %v3271_v43, %s4955_s8  ;;  %v3931_v47 = vmul.f32 -1.442695, %v3264_v12  ;;  %v3506_v12 = vld [vmem:[#allocation2 + $0xe8] sm:$0xff] }
0x5329   :  { %4892 = vpow2.f32 %v3931_v47 }
0x5333   :  { %v4893_v48 = vpop.eup %4892 }
0x5334   :  { %v3268_v49 = vadd.f32 1.0, %v4893_v48 }
0x5336   :  { %4894 = vrcp.f32 %v3268_v49 }
0x5340   :  { %v4895_v50 = vpop.eup %4894 }
0x5399   :  { %v3274_v51 = vpop.permute.xlu1 %3273 }
0x539a   :  { %v3276_v52 = vmul.f32 %v4895_v50, %v3274_v51 }
0x539c   :  { %3278 = vrot.lane.b32.xlu0 %v3276_v52, %s4955_s8 }
0x540e   :  { %v3279_v53 = vpop.permute.xlu0 %3278 }
0x540f   :  { %v3281_v54 = vadd.f32 %v3279_v53, %v3188_v46 }
0x5411   :  { %4896 = vtanh.f32 %v3281_v54 }
0x541b   :  { %v4897_v55 = vpop.eup %4896 }
0x541c   :  { %v3283_v44 = vsub.f32 %v3187_v40, %v4897_v55 }
0x541e   :  { %3285 = vrot.lane.b32.xlu1 %v3283_v44, %s4956_s2 }
0x5490   :  { %v3286_v56 = vpop.permute.xlu1 %3285 }
0x5491   :  { %v3288_v57 = vmul.f32 %v4895_v50, %v3286_v56 }
0x5493   :  { %3290 = vrot.lane.b32.xlu0 %v3288_v57, %s4957_s9 }
0x5505   :  { %v3291_v58 = vpop.permute.xlu0 %3290 }
0x5506   :  { %v3293_v59 = vadd.f32 %v4897_v55, %v3291_v58 }
0x5508   :  { %3296 = vrot.lane.b32.xlu1 %v3293_v59, %s4955_s8 }
0x557a   :  { %v3297_v60 = vpop.permute.xlu1 %3296 }
0x557b   :  { %4491 = vmatmul.mubr.msk.f32.vlgmr.msra.gmra.mrb[34].mxu1 %vm431_vm4, %v3297_v60 }
0x557c   :  { %4713 = vmatpush3.bf16.msra.mxu1 %v5006_v6  ;;  %4512 = vmatprep.mubr.msk.f32.mxu1 %vm4953_vm2, %v4954_v10 }
0x557d   :  { %4714 = vmatprep.subr.bf16.mxu1 %v4952_v5 }
0x5580   :  { %4716 = vmatpush3.bf16.msra.mxu1 %v5021_v11 }
0x5581   :  { %4723 = vmatprep.subr.bf16.mxu1 %v4952_v5 }
0x564e   :  { %v3366_v61 = vpop.f32.mrb[34].mxu1 }
0x564f   :  { %v3377_v62 = vadd.f32 %v3366_v61, %v5048_v17  ;;  %v4492_v63 = vpop.f32.mrb[35].mxu1  ;;  %v3370_v1 = vadd.f32 %v3366_v61, %v3294_v0  ;;  %v3612_v61 = vld [vmem:[#allocation2 + $0xf0] sm:$0xff] }
0x5651   :  { %3379 = vrot.lane.b32.xlu0 %v3377_v62, %s4955_s8  ;;  %v3933_v2 = vmul.f32 -1.442695, %v3370_v1 }
0x5653   :  { %4898 = vpow2.f32 %v3933_v2 }
0x565d   :  { %v4899_v3 = vpop.eup %4898 }
0x565e   :  { %v3374_v4 = vadd.f32 1.0, %v4899_v3 }
0x5660   :  { %4900 = vrcp.f32 %v3374_v4 }
0x566a   :  { %v4901_v7 = vpop.eup %4900 }
0x56c3   :  { %v3380_v8 = vpop.permute.xlu0 %3379 }
0x56c4   :  { %v3382_v9 = vmul.f32 %v4901_v7, %v3380_v8 }
0x56c6   :  { %3384 = vrot.lane.b32.xlu1 %v3382_v9, %s4955_s8 }
0x5738   :  { %v3385_v13 = vpop.permute.xlu1 %3384 }
0x5739   :  { %v3387_v14 = vadd.f32 %v3385_v13, %v3294_v0 }
0x573b   :  { %4902 = vtanh.f32 %v3387_v14 }
0x5745   :  { %v4903_v15 = vpop.eup %4902 }
0x5746   :  { %v3389_v16 = vsub.f32 %v3293_v59, %v4903_v15 }
0x5748   :  { %3391 = vrot.lane.b32.xlu0 %v3389_v16, %s4956_s2 }
0x57ba   :  { %v3392_v18 = vpop.permute.xlu0 %3391 }
0x57bb   :  { %v3394_v19 = vmul.f32 %v4901_v7, %v3392_v18 }
0x57bd   :  { %3396 = vrot.lane.b32.xlu1 %v3394_v19, %s4957_s9 }
0x582f   :  { %v3397_v20 = vpop.permute.xlu1 %3396 }
0x5830   :  { %v3399_v21 = vadd.f32 %v4903_v15, %v3397_v20 }
0x5832   :  { %3402 = vrot.lane.b32.xlu0 %v3399_v21, %s4955_s8 }
0x58a4   :  { %v3403_v22 = vpop.permute.xlu0 %3402 }
0x58a5   :  { %4502 = vmatmul.mubr.msk.f32.vlgmr.msra.gmra.mrb[52].mxu0 %vm431_vm4, %v3403_v22 }
0x58a6   :  { %4719 = vmatpush3.bf16.msra.mxu0 %v5006_v6  ;;  %4523 = vmatprep.mubr.msk.f32.mxu0 %vm4953_vm2, %v4954_v10 }
0x58a7   :  { %4720 = vmatprep.subr.bf16.mxu0 %v4952_v5 }
0x58aa   :  { %4722 = vmatpush3.bf16.msra.mxu0 %v5021_v11 }
0x5978   :  { %v3472_v23 = vpop.f32.mrb[52].mxu0 }
0x5979   :  { %v3483_v24 = vadd.f32 %v3472_v23, %v5048_v17  ;;  %v4503_v25 = vpop.f32.mrb[53].mxu0  ;;  %v3476_v27 = vadd.f32 %v3472_v23, %v3400_v26  ;;  %v3718_v23 = vld [vmem:[#allocation2 + $0xf8] sm:$0xff] }
0x597b   :  { %3485 = vrot.lane.b32.xlu1 %v3483_v24, %s4955_s8  ;;  %v3935_v28 = vmul.f32 -1.442695, %v3476_v27 }
0x597d   :  { %4904 = vpow2.f32 %v3935_v28 }
0x5987   :  { %v4905_v29 = vpop.eup %4904 }
0x5988   :  { %v3480_v30 = vadd.f32 1.0, %v4905_v29 }
0x598a   :  { %4906 = vrcp.f32 %v3480_v30 }
0x5994   :  { %v4907_v31 = vpop.eup %4906 }
0x59ed   :  { %v3486_v32 = vpop.permute.xlu1 %3485 }
0x59ee   :  { %v3488_v33 = vmul.f32 %v4907_v31, %v3486_v32 }
0x59f0   :  { %3490 = vrot.lane.b32.xlu0 %v3488_v33, %s4955_s8 }
0x5a62   :  { %v3491_v34 = vpop.permute.xlu0 %3490 }
0x5a63   :  { %v3493_v35 = vadd.f32 %v3491_v34, %v3400_v26 }
0x5a65   :  { %4908 = vtanh.f32 %v3493_v35 }
0x5a6f   :  { %v4909_v36 = vpop.eup %4908 }
0x5a70   :  { %v3495_v37 = vsub.f32 %v3399_v21, %v4909_v36 }
0x5a72   :  { %3497 = vrot.lane.b32.xlu1 %v3495_v37, %s4956_s2 }
0x5ae4   :  { %v3498_v38 = vpop.permute.xlu1 %3497 }
0x5ae5   :  { %v3500_v39 = vmul.f32 %v4907_v31, %v3498_v38 }
0x5ae7   :  { %3502 = vrot.lane.b32.xlu0 %v3500_v39, %s4957_s9 }
0x5b59   :  { %v3503_v40 = vpop.permute.xlu0 %3502 }
0x5b5a   :  { %v3505_v41 = vadd.f32 %v4909_v36, %v3503_v40 }
0x5b5c   :  { %3508 = vrot.lane.b32.xlu1 %v3505_v41, %s4955_s8 }
0x5bce   :  { %v3509_v42 = vpop.permute.xlu1 %3508 }
0x5bcf   :  { %4513 = vmatmul.mubr.msk.f32.vlgmr.msra.gmra.mrb[36].mxu1 %vm431_vm4, %v3509_v42 }
0x5bd0   :  { %4725 = vmatpush3.bf16.msra.mxu1 %v5006_v6  ;;  %4534 = vmatprep.mubr.msk.f32.mxu1 %vm4953_vm2, %v4954_v10 }
0x5bd1   :  { %4726 = vmatprep.subr.bf16.mxu1 %v4952_v5 }
0x5bd4   :  { %4728 = vmatpush3.bf16.msra.mxu1 %v5021_v11 }
0x5ca2   :  { %v3578_v43 = vpop.f32.mrb[36].mxu1 }
0x5ca3   :  { %v3589_v45 = vadd.f32 %v3578_v43, %v5048_v17  ;;  %v4514_v46 = vpop.f32.mrb[37].mxu1  ;;  %v3582_v47 = vadd.f32 %v3578_v43, %v3506_v12 }
0x5ca5   :  { %3591 = vrot.lane.b32.xlu0 %v3589_v45, %s4955_s8  ;;  %v3937_v48 = vmul.f32 -1.442695, %v3582_v47 }
0x5ca7   :  { %4910 = vpow2.f32 %v3937_v48 }
0x5cb1   :  { %v4911_v49 = vpop.eup %4910 }
0x5cb2   :  { %v3586_v50 = vadd.f32 1.0, %v4911_v49 }
0x5cb4   :  { %4912 = vrcp.f32 %v3586_v50 }
0x5cbe   :  { %v4913_v6 = vpop.eup %4912 }
0x5d17   :  { %v3592_v51 = vpop.permute.xlu0 %3591 }
0x5d18   :  { %v3594_v10 = vmul.f32 %v4913_v6, %v3592_v51 }
0x5d1a   :  { %3596 = vrot.lane.b32.xlu1 %v3594_v10, %s4955_s8 }
0x5d8c   :  { %v3597_v5 = vpop.permute.xlu1 %3596 }
0x5d8d   :  { %v3599_v11 = vadd.f32 %v3597_v5, %v3506_v12 }
0x5d8f   :  { %4914 = vtanh.f32 %v3599_v11 }
0x5d99   :  { %v4915_v52 = vpop.eup %4914 }
0x5d9a   :  { %v3601_v53 = vsub.f32 %v3505_v41, %v4915_v52 }
0x5d9c   :  { %3603 = vrot.lane.b32.xlu0 %v3601_v53, %s4956_s2 }
0x5e0e   :  { %v3604_v54 = vpop.permute.xlu0 %3603 }
0x5e0f   :  { %v3606_v55 = vmul.f32 %v4913_v6, %v3604_v54 }
0x5e11   :  { %3608 = vrot.lane.b32.xlu1 %v3606_v55, %s4957_s9 }
0x5e83   :  { %v3609_v44 = vpop.permute.xlu1 %3608 }
0x5e84   :  { %v3611_v56 = vadd.f32 %v4915_v52, %v3609_v44 }
0x5e86   :  { %3614 = vrot.lane.b32.xlu0 %v3611_v56, %s4955_s8 }
0x5ef8   :  { %v3615_v57 = vpop.permute.xlu0 %3614 }
0x5ef9   :  { %4524 = vmatmul.mubr.msk.f32.vlgmr.msra.gmra.mrb[54].mxu0 %vm431_vm4, %v3615_v57 }
0x5fcc   :  { %v3684_v58 = vpop.f32.mrb[54].mxu0 }
0x5fcd   :  { %v3695_v59 = vadd.f32 %v3684_v58, %v5048_v17  ;;  %v4525_v60 = vpop.f32.mrb[55].mxu0  ;;  %v3688_v62 = vadd.f32 %v3684_v58, %v3612_v61 }
0x5fcf   :  { %3697 = vrot.lane.b32.xlu1 %v3695_v59, %s4955_s8  ;;  %v3939_v63 = vmul.f32 -1.442695, %v3688_v62 }
0x5fd1   :  { %4916 = vpow2.f32 %v3939_v63 }
0x5fdb   :  { %v4917_v0 = vpop.eup %4916 }
0x5fdc   :  { %v3692_v1 = vadd.f32 1.0, %v4917_v0 }
0x5fde   :  { %4918 = vrcp.f32 %v3692_v1 }
0x5fe8   :  { %v4919_v2 = vpop.eup %4918 }
0x6041   :  { %v3698_v3 = vpop.permute.xlu1 %3697 }
0x6042   :  { %v3700_v4 = vmul.f32 %v4919_v2, %v3698_v3 }
0x6044   :  { %3702 = vrot.lane.b32.xlu0 %v3700_v4, %s4955_s8 }
0x60b6   :  { %v3703_v7 = vpop.permute.xlu0 %3702 }
0x60b7   :  { %v3705_v8 = vadd.f32 %v3703_v7, %v3612_v61 }
0x60b9   :  { %4920 = vtanh.f32 %v3705_v8 }
0x60c3   :  { %v4921_v9 = vpop.eup %4920 }
0x60c4   :  { %v3707_v13 = vsub.f32 %v3611_v56, %v4921_v9 }
0x60c6   :  { %3709 = vrot.lane.b32.xlu1 %v3707_v13, %s4956_s2 }
0x6138   :  { %v3710_v14 = vpop.permute.xlu1 %3709 }
0x6139   :  { %v3712_v15 = vmul.f32 %v4919_v2, %v3710_v14 }
0x613b   :  { %3714 = vrot.lane.b32.xlu0 %v3712_v15, %s4957_s9 }
0x61ad   :  { %v3715_v16 = vpop.permute.xlu0 %3714 }
0x61ae   :  { %v3717_v18 = vadd.f32 %v4921_v9, %v3715_v16 }
0x61b0   :  { %3720 = vrot.lane.b32.xlu1 %v3717_v18, %s4955_s8 }
0x6222   :  { %v3721_v19 = vpop.permute.xlu1 %3720 }
0x6223   :  { %4535 = vmatmul.mubr.msk.f32.vlgmr.msra.gmra.mrb[38].mxu1 %vm431_vm4, %v3721_v19 }
0x62f6   :  { %v3790_v20 = vpop.f32.mrb[38].mxu1 }
0x62f7   :  { %v3801_v21 = vadd.f32 %v3790_v20, %v5048_v17  ;;  %v4536_v22 = vpop.f32.mrb[39].mxu1  ;;  %v3794_v24 = vadd.f32 %v3790_v20, %v3718_v23 }
0x62f9   :  { %3803 = vrot.lane.b32.xlu0 %v3801_v21, %s4955_s8  ;;  %v3941_v25 = vmul.f32 -1.442695, %v3794_v24 }
0x62fb   :  { %4922 = vpow2.f32 %v3941_v25 }
0x6305   :  { %v4923_v26 = vpop.eup %4922 }
0x6306   :  { %v3798_v27 = vadd.f32 1.0, %v4923_v26 }
0x6308   :  { %4924 = vrcp.f32 %v3798_v27 }
0x6312   :  { %v4925_v28 = vpop.eup %4924 }
0x636b   :  { %v3804_v29 = vpop.permute.xlu0 %3803 }
0x636c   :  { %v3806_v30 = vmul.f32 %v4925_v28, %v3804_v29 }
0x636e   :  { %3808 = vrot.lane.b32.xlu1 %v3806_v30, %s4955_s8 }
0x63e0   :  { %v3809_v31 = vpop.permute.xlu1 %3808 }
0x63e1   :  { %v3811_v32 = vadd.f32 %v3809_v31, %v3718_v23 }
0x63e3   :  { %4926 = vtanh.f32 %v3811_v32 }
0x63ed   :  { %v4927_v33 = vpop.eup %4926 }
0x63ee   :  { %v3813_v17 = vsub.f32 %v3717_v18, %v4927_v33 }
0x63f0   :  { %3815 = vrot.lane.b32.xlu0 %v3813_v17, %s4956_s2 }
0x6462   :  { %v3816_v34 = vpop.permute.xlu0 %3815 }
0x6463   :  { %v3818_v35 = vmul.f32 %v4925_v28, %v3816_v34 }
0x6465   :  { %3820 = vrot.lane.b32.xlu1 %v3818_v35, %s4957_s9 }
0x64d7   :  { %v3821_v36 = vpop.permute.xlu1 %3820 }
0x64d8   :  { %v3823_v37 = vadd.f32 %v4927_v33, %v3821_v36 }
0x64da   :  { %3825 = vrot.lane.b32.xlu0 %v3823_v37, %s4955_s8 }
0x654c   :  { %v3826_v38 = vpop.permute.xlu0 %3825 }
0x654d   :  { %3829 = vst.msk [vmem:[#allocation3] sm:$0x3] %vm3828_vm5, %v3826_v38 }
0x654e   :  { %4939 = shalt.err (!%p4936_p4)
}
0x654f   :  { %s4940_s9 = scalar_lea.hbm %s5648_s5, 32 }
0x6550   :  { %p4941_p5 = scmp.ne.s32.totalorder %s5648_s5, %s4940_s9  ;;  %p4944_p6 = scmp.lt.u32.totalorder %s4940_s9, %s5648_s5 }
0x6552   :  { %p4946_p7 = pnand %p4944_p6, %p4941_p5 }
0x6554   :  { %4949 = shalt.err (!%p4946_p7)
}
0x6555   :  { %3839 = dma.vmem_to_hbm [thread:$0]  %s3837_s18, 32, %s5648_s5, [#allocation4]  }
0x6556   :  { %4950 = dma.done.wait [#allocation4], 32  }
0x6557   :  { %4951 = vsyncadd [#allocation4], 4294967264 }
0x6558   :  { %3843 = vsyncpa [#allocation4], 1 }

</bundles_post_ra>
